<compile_context>
chip_gen: v6e
topology: v6e:2x2x1
jax: 0.10.0
libtpu: 0.0.40
codegen_flags: <defaults>
</compile_context>

<pallas_src>
import functools

import jax
import jax.numpy as jnp
from jax.experimental import pallas as pl
from jax.experimental.pallas import tpu as pltpu

C_IN = 320            # stage-7 feature-map channels (EfficientNet-B0)
C_HID = 1280          # features[8] output channels
H1, H2 = 256, 128     # classifier_layer hidden sizes
NUM_CLASSES = 5
OUT_PAD = 128         # lane-dense padded logits width
BN_EPS = 1e-3         # torchvision EfficientNet BatchNorm eps
TARGET_ROWS = 2048    # MXU rows (= images * spatial positions) per grid step
MAX_BT = 64           # bounds the unrolled per-image transpose / pool loops


def _head_kernel(x_ref, wc_ref, shift_ref, weff_ref, beff_ref, o_ref, *, n_spatial_pad):
    # x_ref:     (bt, C_IN, HWp) f32  -- NCHW stage-7 block, HWp = HW rounded up to 8
    # wc_ref:    (C_IN, C_HID)   bf16 -- features[8] 1x1 conv weight with BN scale folded in
    # shift_ref: (1, C_HID)      f32  -- folded BN shift
    # weff_ref:  (C_HID, OUT_PAD) bf16-- folded classifier (x 1/HW), zero cols beyond 5
    # beff_ref:  (1, OUT_PAD)    f32  -- folded classifier bias
    # o_ref:     (1, bt, OUT_PAD) f32
    bt, _, hwp = x_ref.shape
    shift = shift_ref[...]                                              # (1, 1280)

    # Build the (bt*HWp, C_IN) matmul LHS straight from the NCHW block: per-image 2D
    # transposes in VMEM (vex-slot XLU work that hides under the MXU matmul below).
    xt = jnp.concatenate([x_ref[b].T for b in range(bt)], axis=0)       # (bt*HWp, 320) f32
    xt = xt.astype(jnp.bfloat16)

    # features[8]: 1x1 conv (BN scale pre-folded), bf16 MXU operands / f32 accumulation.
    h = jnp.dot(xt, wc_ref[...], preferred_element_type=jnp.float32)    # (bt*HWp, 1280) f32

    # Folded BN shift + SiLU + per-image spatial SUM (1/HW lives in weff), one image at a
    # time so f32 elementwise temporaries stay ~HWp*1280*4 bytes instead of rows*1280*4.
    pooled_rows = []
    for b in range(bt):
        hb = h[b * hwp:(b + 1) * hwp, :] + shift
        hb = hb * jax.nn.sigmoid(hb)                                    # SiLU (f32: v5e-safe)
        pooled_rows.append(jnp.sum(hb, axis=0, keepdims=True))          # (1, 1280)
    pooled = jnp.concatenate(pooled_rows, axis=0)                       # (bt, 1280) f32
    if n_spatial_pad:
        # zero-padded spatial rows contribute exactly SiLU(shift) each; remove them.
        pooled = pooled - float(n_spatial_pad) * (shift * jax.nn.sigmoid(shift))

    # avgpool flatten + classifier[0] Dropout (identity in eval) + classifier_layer: the
    # three activation-free Linears (dropouts identity) are pre-folded into one bf16 matmul.
    logits = jnp.dot(pooled.astype(jnp.bfloat16), weff_ref[...],
                     preferred_element_type=jnp.float32) + beff_ref[...]
    o_ref[0] = logits                                                   # (bt, OUT_PAD) lane-dense


def _pick_bt(B, hwp):
    """Images per grid step: enough for ~TARGET_ROWS MXU rows.  No B//2 cap (single TC on
    v5e/v6e; TODO(synk): use pltpu.CORE_PARALLEL on a leading core axis to shard v7x's 2 TCs)."""
    bt = max(1, TARGET_ROWS // hwp)
    bt = min(bt, MAX_BT)
    return min(bt, B)


@jax.jit
def garbage_effnet_head(x_nchw, params):
    """x_nchw: (B, 320, H, W) stage-7 feature map (float32, NCHW). Returns (B, 5) logits."""
    B, C, H, W = x_nchw.shape
    assert C == C_IN
    HW = H * W
    HWp = ((HW + 7) // 8) * 8                 # keep in-kernel slices/stores 8-row aligned
    x3 = x_nchw.reshape(B, C, HW)             # free reshape (contiguous minor dims), no copy
    n_pad = HWp - HW
    if n_pad:
        # TODO(synk): only non-8-multiple spatial sizes (e.g. 7x7=49) pay this pad pass.
        x3 = jnp.pad(x3, ((0, 0), (0, 0), (0, n_pad)))

    bt = _pick_bt(B, HWp)
    n_steps = pl.cdiv(B, bt)                  # tail block: clipped DMA, extra rows sliced off

    # Fold eval-mode BN scale into the 1x1 conv weight in f32, THEN cast the MXU operand.
    wc = (params["wc"] * params["scale"]).astype(jnp.bfloat16)                            # (320, 1280)
    shift = params["shift"]                                                               # (1, 1280) f32
    # Fold the activation-free classifier MLP into one Linear and fold 1/HW into it so the
    # in-kernel pool is a plain sum; pad lane-dense to 128 output columns.
    w_eff = (params["w1"] @ params["w2"] @ params["w3"]) * (1.0 / HW)                     # (1280, 5)
    b_eff = (params["b1"] @ params["w2"] + params["b2"]) @ params["w3"] + params["b3"]    # (1, 5)
    w_eff = jnp.pad(w_eff, ((0, 0), (0, OUT_PAD - NUM_CLASSES))).astype(jnp.bfloat16)
    b_eff = jnp.pad(b_eff, ((0, 0), (0, OUT_PAD - NUM_CLASSES)))                          # f32

    kernel = functools.partial(_head_kernel, n_spatial_pad=n_pad)

    grid_spec = pltpu.PrefetchScalarGridSpec(
        num_scalar_prefetch=0,
        grid=(n_steps,),
        in_specs=[
            pl.BlockSpec((bt, C_IN, HWp), lambda i: (i, 0, 0)),   # NCHW activation tile
            pl.BlockSpec((C_IN, C_HID), lambda i: (0, 0)),        # conv weight (resident)
            pl.BlockSpec((1, C_HID), lambda i: (0, 0)),           # BN shift (resident)
            pl.BlockSpec((C_HID, OUT_PAD), lambda i: (0, 0)),     # folded classifier weight
            pl.BlockSpec((1, OUT_PAD), lambda i: (0, 0)),         # folded classifier bias
        ],
        out_specs=pl.BlockSpec((1, bt, OUT_PAD), lambda i: (i, 0, 0)),
    )

    out = pl.pallas_call(
        kernel,
        grid_spec=grid_spec,
        out_shape=jax.ShapeDtypeStruct((n_steps, bt, OUT_PAD), jnp.float32),
        compiler_params=pltpu.CompilerParams(
            dimension_semantics=("arbitrary",),
            vmem_limit_bytes=48 << 20,        # v7x-safe; raiseable to 64-96 MiB on v5e/v6e
        ),
    )(x3, wc, shift, w_eff, b_eff)

    return out.reshape(n_steps * bt, OUT_PAD)[:B, :NUM_CLASSES]


def init_params(key):
    ks = jax.random.split(key, 10)
    # features[8] 1x1 conv weight, stored (C_in, C_out) for x @ W
    wc = 0.02 * jax.random.normal(ks[0], (C_IN, C_HID), jnp.float32)
    # eval-mode BatchNorm, folded: scale = gamma/sqrt(var+eps), shift = beta - mean*scale
    gamma = 1.0 + 0.01 * jax.random.normal(ks[1], (C_HID,), jnp.float32)
    beta = 0.01 * jax.random.normal(ks[2], (C_HID,), jnp.float32)
    mean = 0.01 * jax.random.normal(ks[3], (C_HID,), jnp.float32)
    var = jax.random.uniform(ks[4], (C_HID,), jnp.float32, 0.5, 1.5)
    scale = gamma / jnp.sqrt(var + BN_EPS)
    shift = beta - mean * scale
    # classifier_layer linears (stored input-major for x @ W)
    s = 0.1
    w1 = s * jax.random.normal(ks[5], (C_HID, H1), jnp.float32)
    b1 = s * jax.random.normal(ks[6], (H1,), jnp.float32)
    w2 = s * jax.random.normal(ks[7], (H1, H2), jnp.float32)
    b2 = s * jax.random.normal(ks[8], (H2,), jnp.float32)
    w3 = s * jax.random.normal(ks[9], (H2, NUM_CLASSES), jnp.float32)
    b3 = jnp.zeros((NUM_CLASSES,), jnp.float32)
    return {
        "wc": wc,
        "scale": scale.reshape(1, C_HID),
        "shift": shift.reshape(1, C_HID),
        "w1": w1, "b1": b1.reshape(1, H1),
        "w2": w2, "b2": b2.reshape(1, H2),
        "w3": w3, "b3": b3.reshape(1, NUM_CLASSES),
    }


def reference(x_nchw, p):
    """Pure-JAX f32 reference of the original (unfolded) head; eval dropouts are identity."""
    B, C, H, W = x_nchw.shape
    x = jnp.transpose(x_nchw, (0, 2, 3, 1)).reshape(B, H * W, C)
    h = jnp.einsum("bsc,cd->bsd", x, p["wc"]) * p["scale"] + p["shift"]
    h = h * jax.nn.sigmoid(h)
    pooled = jnp.mean(h, axis=1)                      # (B, 1280)
    h1 = pooled @ p["w1"] + p["b1"][0]
    h2 = h1 @ p["w2"] + p["b2"][0]
    return h2 @ p["w3"] + p["b3"][0]


if __name__ == "__main__":
    key = jax.random.PRNGKey(0)
    k_x, k_p = jax.random.split(key)

    # Stage-7 EfficientNet-B0 feature map at small spatial size: (B=2, 320, 8, 8)
    x = jax.random.normal(k_x, (2, C_IN, 8, 8), jnp.float32)
    params = init_params(k_p)

    out = jax.block_until_ready(garbage_effnet_head(x, params))

    ref = reference(x, params)
    assert out.shape == (2, NUM_CLASSES)
    # bf16 MXU operands (f32 accumulation) + weight folding => loosened tolerance vs f32 ref.
    assert jnp.allclose(out, ref, atol=5e-2, rtol=5e-2), (out, ref)
    print("KERNEL_OK")
</pallas_src>

<mosaic_0001>
module attributes {stable_mosaic.version = 11 : i64} {
  func.func @_head_kernel(%arg0: i32, %arg1: memref<2x320x64xf32, #tpu.memory_space<vmem>>, %arg2: memref<320x1280xbf16, #tpu.memory_space<vmem>>, %arg3: memref<1x1280xf32, #tpu.memory_space<vmem>>, %arg4: memref<1280x128xbf16, #tpu.memory_space<vmem>>, %arg5: memref<1x128xf32, #tpu.memory_space<vmem>>, %arg6: memref<1x2x128xf32, #tpu.memory_space<vmem>>) attributes {dimension_semantics = [#tpu.dimension_semantics<arbitrary>], iteration_bounds = array<i64: 1>, scalar_prefetch = 0 : i64, scratch_operands = 0 : i64, tpu.core_type = #tpu.core_type<tc>, window_params = [{transform_indices = @transform_0, window_bounds = array<i64: 2, 320, 64>}, {pipeline_mode = #tpu.pipeline_mode<synchronous>, transform_indices = @transform_1, window_bounds = array<i64: 320, 1280>}, {pipeline_mode = #tpu.pipeline_mode<synchronous>, transform_indices = @transform_2, window_bounds = array<i64: 1, 1280>}, {pipeline_mode = #tpu.pipeline_mode<synchronous>, transform_indices = @transform_3, window_bounds = array<i64: 1280, 128>}, {pipeline_mode = #tpu.pipeline_mode<synchronous>, transform_indices = @transform_4, window_bounds = array<i64: 1, 128>}, {transform_indices = @transform_5, window_bounds = array<i64: 1, 2, 128>}]} {
    %c0 = arith.constant 0 : index
    %c0_0 = arith.constant 0 : index
    %0 = vector.load %arg3[%c0, %c0_0] : memref<1x1280xf32, #tpu.memory_space<vmem>>, vector<1x1280xf32>
    %c0_1 = arith.constant 0 : index
    %c0_2 = arith.constant 0 : index
    %c0_3 = arith.constant 0 : index
    %1 = vector.load %arg1[%c0_1, %c0_2, %c0_3] : memref<2x320x64xf32, #tpu.memory_space<vmem>>, vector<1x320x64xf32>
    %2 = vector.shape_cast %1 : vector<1x320x64xf32> to vector<320x64xf32>
    %3 = tpu.transpose %2, [1, 0] : vector<320x64xf32> -> vector<64x320xf32>
    %c1 = arith.constant 1 : index
    %c0_4 = arith.constant 0 : index
    %c0_5 = arith.constant 0 : index
    %4 = vector.load %arg1[%c1, %c0_4, %c0_5] : memref<2x320x64xf32, #tpu.memory_space<vmem>>, vector<1x320x64xf32>
    %5 = vector.shape_cast %4 : vector<1x320x64xf32> to vector<320x64xf32>
    %6 = tpu.transpose %5, [1, 0] : vector<320x64xf32> -> vector<64x320xf32>
    %7 = tpu.concatenate %3, %6 in 0 : vector<64x320xf32>, vector<64x320xf32> -> vector<128x320xf32>
    %8 = arith.truncf %7 : vector<128x320xf32> to vector<128x320xbf16>
    %c0_6 = arith.constant 0 : index
    %c0_7 = arith.constant 0 : index
    %9 = vector.load %arg2[%c0_6, %c0_7] : memref<320x1280xbf16, #tpu.memory_space<vmem>>, vector<320x1280xbf16>
    %cst = arith.constant dense<0.000000e+00> : vector<128x1280xf32>
    %10 = tpu.matmul %8, %9, %cst {dimension_numbers = #tpu.dot_dimension_numbers<[1], [0], [0], [1], [0, 0, 1, 1], [], []>} : vector<128x320xbf16>, vector<320x1280xbf16>, vector<128x1280xf32> -> vector<128x1280xf32>
    %11 = vector.extract_strided_slice %10 {offsets = [0, 0], sizes = [64, 1280], strides = [1, 1]} : vector<128x1280xf32> to vector<64x1280xf32>
    %12 = vector.broadcast %0 : vector<1x1280xf32> to vector<64x1280xf32>
    %13 = arith.addf %11, %12 : vector<64x1280xf32>
    %14 = arith.negf %13 : vector<64x1280xf32>
    %15 = math.exp %14 : vector<64x1280xf32>
    %cst_8 = arith.constant 1.000000e+00 : f32
    %16 = vector.broadcast %cst_8 : f32 to vector<64x1280xf32>
    %17 = arith.addf %16, %15 : vector<64x1280xf32>
    %18 = arith.divf %16, %17 : vector<64x1280xf32>
    %19 = arith.mulf %13, %18 : vector<64x1280xf32>
    %cst_9 = arith.constant dense<0.000000e+00> : vector<1280xf32>
    %20 = vector.multi_reduction <add>, %19, %cst_9 [0] : vector<64x1280xf32> to vector<1280xf32>
    %21 = vector.shape_cast %20 : vector<1280xf32> to vector<1x1280xf32>
    %22 = vector.extract_strided_slice %10 {offsets = [64, 0], sizes = [64, 1280], strides = [1, 1]} : vector<128x1280xf32> to vector<64x1280xf32>
    %23 = vector.broadcast %0 : vector<1x1280xf32> to vector<64x1280xf32>
    %24 = arith.addf %22, %23 : vector<64x1280xf32>
    %25 = arith.negf %24 : vector<64x1280xf32>
    %26 = math.exp %25 : vector<64x1280xf32>
    %cst_10 = arith.constant 1.000000e+00 : f32
    %27 = vector.broadcast %cst_10 : f32 to vector<64x1280xf32>
    %28 = arith.addf %27, %26 : vector<64x1280xf32>
    %29 = arith.divf %27, %28 : vector<64x1280xf32>
    %30 = arith.mulf %24, %29 : vector<64x1280xf32>
    %cst_11 = arith.constant dense<0.000000e+00> : vector<1280xf32>
    %31 = vector.multi_reduction <add>, %30, %cst_11 [0] : vector<64x1280xf32> to vector<1280xf32>
    %32 = vector.shape_cast %31 : vector<1280xf32> to vector<1x1280xf32>
    %33 = tpu.concatenate %21, %32 in 0 : vector<1x1280xf32>, vector<1x1280xf32> -> vector<2x1280xf32>
    %34 = arith.truncf %33 : vector<2x1280xf32> to vector<2x1280xbf16>
    %c0_12 = arith.constant 0 : index
    %c0_13 = arith.constant 0 : index
    %35 = vector.load %arg4[%c0_12, %c0_13] : memref<1280x128xbf16, #tpu.memory_space<vmem>>, vector<1280x128xbf16>
    %cst_14 = arith.constant dense<0.000000e+00> : vector<2x128xf32>
    %36 = tpu.matmul %34, %35, %cst_14 {dimension_numbers = #tpu.dot_dimension_numbers<[1], [0], [0], [1], [0, 0, 1, 1], [], []>} : vector<2x1280xbf16>, vector<1280x128xbf16>, vector<2x128xf32> -> vector<2x128xf32>
    %c0_15 = arith.constant 0 : index
    %c0_16 = arith.constant 0 : index
    %37 = vector.load %arg5[%c0_15, %c0_16] : memref<1x128xf32, #tpu.memory_space<vmem>>, vector<1x128xf32>
    %38 = vector.broadcast %37 : vector<1x128xf32> to vector<2x128xf32>
    %39 = arith.addf %36, %38 : vector<2x128xf32>
    %c0_17 = arith.constant 0 : index
    %c0_18 = arith.constant 0 : index
    %c0_19 = arith.constant 0 : index
    %40 = vector.load %arg6[%c0_17, %c0_18, %c0_19] : memref<1x2x128xf32, #tpu.memory_space<vmem>>, vector<1x2x128xf32>
    %41 = vector.shape_cast %40 : vector<1x2x128xf32> to vector<2x128xf32>
    %42 = vector.shape_cast %39 : vector<2x128xf32> to vector<1x2x128xf32>
    tpu.vector_store %arg6[%c0_17, %c0_18, %c0_19], %42 {strides = array<i32>} : memref<1x2x128xf32, #tpu.memory_space<vmem>>, vector<1x2x128xf32>,
    return
  }
  func.func @transform_0(%arg0: i32) -> (i32, i32, i32) {
    %c0_i32 = arith.constant 0 : i32
    %c0_i32_0 = arith.constant 0 : i32
    %c0_i32_1 = arith.constant 0 : i32
    return %arg0, %c0_i32, %c0_i32_0 : i32, i32, i32
  }
  func.func @transform_1(%arg0: i32) -> (i32, i32) {
    %c0_i32 = arith.constant 0 : i32
    %c0_i32_0 = arith.constant 0 : i32
    %c0_i32_1 = arith.constant 0 : i32
    return %c0_i32, %c0_i32_0 : i32, i32
  }
  func.func @transform_2(%arg0: i32) -> (i32, i32) {
    %c0_i32 = arith.constant 0 : i32
    %c0_i32_0 = arith.constant 0 : i32
    %c0_i32_1 = arith.constant 0 : i32
    return %c0_i32, %c0_i32_0 : i32, i32
  }
  func.func @transform_3(%arg0: i32) -> (i32, i32) {
    %c0_i32 = arith.constant 0 : i32
    %c0_i32_0 = arith.constant 0 : i32
    %c0_i32_1 = arith.constant 0 : i32
    return %c0_i32, %c0_i32_0 : i32, i32
  }
  func.func @transform_4(%arg0: i32) -> (i32, i32) {
    %c0_i32 = arith.constant 0 : i32
    %c0_i32_0 = arith.constant 0 : i32
    %c0_i32_1 = arith.constant 0 : i32
    return %c0_i32, %c0_i32_0 : i32, i32
  }
  func.func @transform_5(%arg0: i32) -> (i32, i32, i32) {
    %c0_i32 = arith.constant 0 : i32
    %c0_i32_0 = arith.constant 0 : i32
    %c0_i32_1 = arith.constant 0 : i32
    return %arg0, %c0_i32, %c0_i32_0 : i32, i32, i32
  }
}

</mosaic_0001>

<bundles_post_ra>
// kernel: garbage_effnet_head.1
= control target key start
LH: loop header
LB: loop body
LE: loop exit
PB: predicated region body
PF: predicated region fallthrough
CT: control target
= control target key end

     0   :  { %v9975_v14 = vmov 0   ;;  %vm1521_vm0 = vcmask 523264   ;;  %s9963_s0 = inlined_call_operand.vmem [shape: f32[2,320,64], index: 0, kind: input, shape index: {}]   ;;  %s9964_s1 = inlined_call_operand.vmem [shape: bf16[320,1280], index: 1, kind: input, shape index: {}]   ;;  %s9965_s2 = inlined_call_operand.vmem [shape: f32[1,1280], index: 2, kind: input, shape index: {}]   ;;  %s9966_s3 = inlined_call_operand.vmem [shape: bf16[1280,128], index: 3, kind: input, shape index: {}]   ;;  %s9967_s4 = inlined_call_operand.vmem [shape: f32[1,128], index: 4, kind: input, shape index: {}]   ;;  %s9968_s5 = inlined_call_operand.hbm [shape: f32[1,2,128], index: 5, kind: output, shape index: {}]  }
   0x1   :  { %v56_v0 = vld [vmem:[%s9963_s0 + $0x100] sm:$0xff]  ;;  %v25_v4 = vld [vmem:[%s9963_s0 + $0x8] sm:$0xff]  ;;  %v26_v8 = vld [vmem:[%s9963_s0 + $0x10] sm:$0xff]  ;;  %1691 = vmatprep.mubr.bf16.mxu1 %v9975_v14 }
   0x2   :  { %v24_v1 = vld [vmem:[%s9963_s0] sm:$0xff]  ;;  %128 = vxpose.xlu1.b32.start [1/8] (short) (narrow) %v56_v0, 64  ;;  %v41_v5 = vld [vmem:[%s9963_s0 + $0x88] sm:$0xff]  ;;  %v42_v9 = vld [vmem:[%s9963_s0 + $0x90] sm:$0xff] }
   0x3   :  { %v40_v2 = vld [vmem:[%s9963_s0 + $0x80] sm:$0xff]  ;;  %v57_v6 = vld [vmem:[%s9963_s0 + $0x108] sm:$0xff]  ;;  %v5787_v7 = vpack.i.bf16 %v25_v4, %v41_v5  ;;  %v58_v10 = vld [vmem:[%s9963_s0 + $0x110] sm:$0xff]  ;;  %v5789_v11 = vpack.i.bf16 %v26_v8, %v42_v9 }
   0x4   :  { %v5785_v3 = vpack.i.bf16 %v24_v1, %v40_v2  ;;  %v27_v12 = vld [vmem:[%s9963_s0 + $0x18] sm:$0xff]  ;;  %v28_v17 = vld [vmem:[%s9963_s0 + $0x20] sm:$0xff]  ;;  %v29_v21 = vld [vmem:[%s9963_s0 + $0x28] sm:$0xff] }
   0x5   :  { %v43_v13 = vld [vmem:[%s9963_s0 + $0x98] sm:$0xff]  ;;  %v44_v18 = vld [vmem:[%s9963_s0 + $0xa0] sm:$0xff]  ;;  %v45_v22 = vld [vmem:[%s9963_s0 + $0xa8] sm:$0xff] }
   0x6   :  { %5786 = vxpose.xlu0.b32.start [1/16] (narrow) %v5785_v3, 64  ;;  %129 = vxpose.xlu1.b32.cont [2/8] (short) (narrow) %v57_v6, 64  ;;  %v59_v15 = vld [vmem:[%s9963_s0 + $0x118] sm:$0xff]  ;;  %v5791_v16 = vpack.i.bf16 %v27_v12, %v43_v13  ;;  %v60_v19 = vld [vmem:[%s9963_s0 + $0x120] sm:$0xff]  ;;  %v5793_v20 = vpack.i.bf16 %v28_v17, %v44_v18  ;;  %v61_v23 = vld [vmem:[%s9963_s0 + $0x128] sm:$0xff]  ;;  %v5795_v24 = vpack.i.bf16 %v29_v21, %v45_v22 }
   0x7   :  { %v30_v25 = vld [vmem:[%s9963_s0 + $0x30] sm:$0xff]  ;;  %v5932_v31 = vld [vmem:[%s9964_s1 + $0x1e4] ss:$40 sps:$4 sm:$0xff]   ;;  %v31_v32 = vld [vmem:[%s9963_s0 + $0x38] sm:$0xff] }
   0x8   :  { %v46_v26 = vld [vmem:[%s9963_s0 + $0xb0] sm:$0xff]  ;;  %v47_v33 = vld [vmem:[%s9963_s0 + $0xb8] sm:$0xff]  ;;  %v5934_v34 = vld [vmem:[%s9964_s1 + $0x1e0] ss:$40 sps:$4 sm:$0xff]  }
   0x9   :  { %v5929_v27 = vld [vmem:[%s9964_s1 + $0x234] ss:$40 sps:$4 sm:$0xff]   ;;  %v5931_v28 = vld [vmem:[%s9964_s1 + $0x230] ss:$40 sps:$4 sm:$0xff]   ;;  %v5797_v30 = vpack.i.bf16 %v30_v25, %v46_v26  ;;  %v5151_v36 = vld [vmem:[%s9963_s0 + $0x140] sm:$0xff]  ;;  %v5799_v39 = vpack.i.bf16 %v31_v32, %v47_v33 }
   0xa   :  { %5788 = vxpose.xlu0.b32.cont [2/16] (narrow) %v5787_v7, 64  ;;  %130 = vxpose.xlu1.b32.cont [3/8] (short) (narrow) %v58_v10, 64  ;;  %v62_v29 = vld [vmem:[%s9963_s0 + $0x130] sm:$0xff]  ;;  %v63_v35 = vld [vmem:[%s9963_s0 + $0x138] sm:$0xff]  ;;  %v5167_v37 = vld [vmem:[%s9963_s0 + $0x1c0] sm:$0xff] }
   0xb   :  { %1546 = vmatprep.subr.bf16.mxu0 %v5929_v27  ;;  %v5935_v38 = vld [vmem:[%s9964_s1 + $0x194] ss:$40 sps:$4 sm:$0xff]   ;;  %v32_v40 = vld [vmem:[%s9963_s0 + $0x40] sm:$0xff]  ;;  %v5937_v42 = vld [vmem:[%s9964_s1 + $0x190] ss:$40 sps:$4 sm:$0xff]   ;;  %v5857_v43 = vpack.i.bf16 %v5151_v36, %v5167_v37 }
   0xc   :  { %1547 = vmatpush1.bf16.msra.mxu0 %v5931_v28  ;;  %v48_v41 = vld [vmem:[%s9963_s0 + $0xc0] sm:$0xff]  ;;  %v5152_v44 = vld [vmem:[%s9963_s0 + $0x148] sm:$0xff]  ;;  %v5941_v52 = vld [vmem:[%s9964_s1 + $0xf4] ss:$40 sps:$4 sm:$0xff]  }
   0xd   :  { %1548 = vmatprep.subr.bf16.mxu0 %v5932_v31  ;;  %v5938_v45 = vld [vmem:[%s9964_s1 + $0x144] ss:$40 sps:$4 sm:$0xff]   ;;  %v5801_v47 = vpack.i.bf16 %v32_v40, %v48_v41  ;;  %v5940_v50 = vld [vmem:[%s9964_s1 + $0x140] ss:$40 sps:$4 sm:$0xff]   ;;  %v5153_v53 = vld [vmem:[%s9963_s0 + $0x150] sm:$0xff] }
   0xe   :  { %5790 = vxpose.xlu0.b32.cont [3/16] (narrow) %v5789_v11, 64  ;;  %131 = vxpose.xlu1.b32.cont [4/8] (short) (narrow) %v59_v15, 64  ;;  %v5168_v46 = vld [vmem:[%s9963_s0 + $0x1c8] sm:$0xff]  ;;  %v5169_v54 = vld [vmem:[%s9963_s0 + $0x1d0] sm:$0xff]  ;;  %v5154_v61 = vld [vmem:[%s9963_s0 + $0x158] sm:$0xff] }
   0xf   :  { %v33_v48 = vld [vmem:[%s9963_s0 + $0x48] sm:$0xff]  ;;  %v5859_v51 = vpack.i.bf16 %v5152_v44, %v5168_v46  ;;  %v34_v56 = vld [vmem:[%s9963_s0 + $0x50] sm:$0xff]  ;;  %v5861_v59 = vpack.i.bf16 %v5153_v53, %v5169_v54  ;;  %v5170_v62 = vld [vmem:[%s9963_s0 + $0x1d8] sm:$0xff] }
  0x10   :  { %1549 = vmatpush1.bf16.msra.mxu0 %v5934_v34  ;;  %v49_v49 = vld [vmem:[%s9963_s0 + $0xc8] sm:$0xff]  ;;  %v50_v57 = vld [vmem:[%s9963_s0 + $0xd0] sm:$0xff]  ;;  %v35_v0 = vld [vmem:[%s9963_s0 + $0x58] sm:$0xff]  ;;  %v5863_v5 = vpack.i.bf16 %v5154_v61, %v5170_v62 }
  0x11   :  { %1550 = vmatprep.subr.bf16.mxu0 %v5935_v38  ;;  %v5803_v55 = vpack.i.bf16 %v33_v48, %v49_v49  ;;  %v5943_v58 = vld [vmem:[%s9964_s1 + $0xf0] ss:$40 sps:$4 sm:$0xff]   ;;  %v5944_v60 = vld [vmem:[%s9964_s1 + $0xa4] ss:$40 sps:$4 sm:$0xff]   ;;  %v5805_v63 = vpack.i.bf16 %v34_v56, %v50_v57  ;;  %v5946_v4 = vld [vmem:[%s9964_s1 + $0xa0] ss:$40 sps:$4 sm:$0xff]  }
  0x12   :  { %5792 = vxpose.xlu0.b32.cont [4/16] (narrow) %v5791_v16, 64  ;;  %132 = vxpose.xlu1.b32.cont [5/8] (short) (narrow) %v60_v19, 64  ;;  %v51_v1 = vld [vmem:[%s9963_s0 + $0xd8] sm:$0xff]  ;;  %v5155_v2 = vld [vmem:[%s9963_s0 + $0x160] sm:$0xff]  ;;  %v5156_v11 = vld [vmem:[%s9963_s0 + $0x168] sm:$0xff] }
  0x13   :  { %v5171_v3 = vld [vmem:[%s9963_s0 + $0x1e0] sm:$0xff]  ;;  %v5947_v6 = vld [vmem:[%s9964_s1 + $0x54] ss:$40 sps:$4 sm:$0xff]   ;;  %v5807_v9 = vpack.i.bf16 %v35_v0, %v51_v1  ;;  %v5949_v10 = vld [vmem:[%s9964_s1 + $0x50] ss:$40 sps:$4 sm:$0xff]  }
  0x14   :  { %1551 = vmatpush1.bf16.msra.mxu0 %v5937_v42  ;;  %v36_v7 = vld [vmem:[%s9963_s0 + $0x60] sm:$0xff]  ;;  %v5172_v12 = vld [vmem:[%s9963_s0 + $0x1e8] sm:$0xff]  ;;  %v5967_v15 = vld [vmem:[%s9964_s1 + $0x5f4] ss:$40 sps:$4 sm:$0xff]   ;;  %v5865_v16 = vpack.i.bf16 %v5155_v2, %v5171_v3 }
  0x15   :  { %1552 = vmatprep.subr.bf16.mxu0 %v5938_v45  ;;  %v52_v8 = vld [vmem:[%s9963_s0 + $0xe0] sm:$0xff]  ;;  %v5970_v17 = vld [vmem:[%s9964_s1 + $0x5f0] ss:$40 sps:$4 sm:$0xff]   ;;  %v37_v18 = vld [vmem:[%s9963_s0 + $0x68] sm:$0xff]  ;;  %1667 = vmatprep.subr.bf16.mxu1 %v5967_v15  ;;  %v5867_v27 = vpack.i.bf16 %v5156_v11, %v5172_v12 }
  0x16   :  { %5794 = vxpose.xlu0.b32.cont [5/16] (narrow) %v5793_v20, 64  ;;  %133 = vxpose.xlu1.b32.cont [6/8] (short) (narrow) %v61_v23, 64  ;;  %v5950_v13 = vld [vmem:[%s9964_s1 + $0x4] ss:$40 sps:$4 sm:$0xff]   ;;  %v5809_v20 = vpack.i.bf16 %v36_v7, %v52_v8  ;;  %v5952_v21 = vld [vmem:[%s9964_s1] ss:$40 sps:$4 sm:$0xff]  }
  0x17   :  { %v53_v19 = vld [vmem:[%s9963_s0 + $0xe8] sm:$0xff]  ;;  %1668 = vmatpush1.bf16.msra.mxu1 %v5970_v17  ;;  %v5157_v23 = vld [vmem:[%s9963_s0 + $0x170] sm:$0xff]  ;;  %v5158_v33 = vld [vmem:[%s9963_s0 + $0x178] sm:$0xff] }
  0x18   :  { %1553 = vmatpush1.bf16.msra.mxu0 %v5940_v50  ;;  %v5973_v22 = vld [vmem:[%s9964_s1 + $0x5a4] ss:$40 sps:$4 sm:$0xff]   ;;  %v5953_v25 = vld [vmem:[%s9964_s1 + $0x4b4] ss:$40 sps:$4 sm:$0xff]   ;;  %v5976_v26 = vld [vmem:[%s9964_s1 + $0x5a0] ss:$40 sps:$4 sm:$0xff]   ;;  %v5811_v31 = vpack.i.bf16 %v37_v18, %v53_v19 }
  0x19   :  { %1554 = vmatprep.subr.bf16.mxu0 %v5941_v52  ;;  %v5979_v28 = vld [vmem:[%s9964_s1 + $0x554] ss:$40 sps:$4 sm:$0xff]   ;;  %1669 = vmatprep.subr.bf16.mxu1 %v5973_v22  ;;  %v5982_v32 = vld [vmem:[%s9964_s1 + $0x550] ss:$40 sps:$4 sm:$0xff]   ;;  %v5985_v36 = vld [vmem:[%s9964_s1 + $0x504] ss:$40 sps:$4 sm:$0xff]  }
  0x1a   :  { %5796 = vxpose.xlu0.b32.cont [6/16] (narrow) %v5795_v24, 64  ;;  %134 = vxpose.xlu1.b32.cont [7/8] (short) (narrow) %v62_v29, 64  ;;  %v5173_v24 = vld [vmem:[%s9963_s0 + $0x1f0] sm:$0xff]  ;;  %v5174_v34 = vld [vmem:[%s9963_s0 + $0x1f8] sm:$0xff]  ;;  %v5956_v38 = vld [vmem:[%s9964_s1 + $0x464] ss:$40 sps:$4 sm:$0xff]  }
  0x1b   :  { %v38_v29 = vld [vmem:[%s9963_s0 + $0x70] sm:$0xff]  ;;  %1670 = vmatpush1.bf16.msra.mxu1 %v5976_v26  ;;  %v5869_v37 = vpack.i.bf16 %v5157_v23, %v5173_v24  ;;  %v55_v40 = vld [vmem:[%s9963_s0 + $0xf8] sm:$0xff]  ;;  %v5958_v42 = vld [vmem:[%s9964_s1 + $0x460] ss:$40 sps:$4 sm:$0xff]   ;;  %v5871_v45 = vpack.i.bf16 %v5158_v33, %v5174_v34 }
  0x1c   :  { %1555 = vmatpush1.bf16.msra.mxu0 %v5943_v58  ;;  %1671 = vmatprep.subr.bf16.mxu1 %v5979_v28  ;;  %v5991_v44 = vld [vmem:[%s9964_s1 + $0x23c] ss:$40 sps:$4 sm:$0xff]   ;;  %v5961_v50 = vld [vmem:[%s9964_s1 + $0x410] ss:$40 sps:$4 sm:$0xff]   ;;  %v5160_v53 = vld [vmem:[%s9963_s0 + $0x188] sm:$0xff] }
  0x1d   :  { %1556 = vmatprep.subr.bf16.mxu0 %v5944_v60  ;;  %v5959_v46 = vld [vmem:[%s9964_s1 + $0x414] ss:$40 sps:$4 sm:$0xff]   ;;  %v5175_v48 = vld [vmem:[%s9963_s0 + $0x200] sm:$0xff]  ;;  %v5176_v54 = vld [vmem:[%s9963_s0 + $0x208] sm:$0xff] }
  0x1e   :  { %5798 = vxpose.xlu0.b32.cont [7/16] (narrow) %v5797_v30, 64  ;;  %135 = vxpose.xlu1.b32.end [8/8] (short) (narrow) %v63_v35, 64  ;;  %v54_v30 = vld [vmem:[%s9963_s0 + $0xf0] sm:$0xff]  ;;  %v5962_v52 = vld [vmem:[%s9964_s1 + $0x3c4] ss:$40 sps:$4 sm:$0xff]   ;;  %v5875_v57 = vpack.i.bf16 %v5160_v53, %v5176_v54  ;;  %v5162_v2 = vld [vmem:[%s9963_s0 + $0x198] sm:$0xff] }
  0x1f   :  { %v5955_v35 = vld [vmem:[%s9964_s1 + $0x4b0] ss:$40 sps:$4 sm:$0xff]   ;;  %v5813_v41 = vpack.i.bf16 %v38_v29, %v54_v30  ;;  %1672 = vmatpush1.bf16.msra.mxu1 %v5982_v32  ;;  %v5964_v56 = vld [vmem:[%s9964_s1 + $0x3c0] ss:$40 sps:$4 sm:$0xff]   ;;  %v5965_v58 = vld [vmem:[%s9964_s1 + $0x374] ss:$40 sps:$4 sm:$0xff]  }
  0x20   :  { %1557 = vmatpush1.bf16.msra.mxu0 %v5946_v4  ;;  %1673 = vmatprep.subr.bf16.mxu1 %v5985_v36  ;;  %v5177_v60 = vld [vmem:[%s9963_s0 + $0x210] sm:$0xff]  ;;  %v5184_v61 = vld [vmem:[%s9963_s0 + $0x248] sm:$0xff]  ;;  %v5178_v3 = vld [vmem:[%s9963_s0 + $0x218] sm:$0xff] }
  0x21   :  { %1558 = vmatprep.subr.bf16.mxu0 %v5947_v6  ;;  %v5969_v62 = vld [vmem:[%s9964_s1 + $0x370] ss:$40 sps:$4 sm:$0xff]   ;;  %v5971_v0 = vld [vmem:[%s9964_s1 + $0x324] ss:$40 sps:$4 sm:$0xff]   ;;  %v5975_v4 = vld [vmem:[%s9964_s1 + $0x320] ss:$40 sps:$4 sm:$0xff]   ;;  %v5879_v8 = vpack.i.bf16 %v5162_v2, %v5178_v3 }
  0x22   :  { %5800 = vxpose.xlu0.b32.cont [8/16] (narrow) %v5799_v39, 64  ;;  %5858 = vxpose.xlu1.b32.start [1/16] (narrow) %v5857_v43, 64  ;;  %v39_v39 = vld [vmem:[%s9963_s0 + $0x78] sm:$0xff]  ;;  %v5988_v43 = vld [vmem:[%s9964_s1 + $0x500] ss:$40 sps:$4 sm:$0xff]   ;;  %v5185_v1 = vld [vmem:[%s9963_s0 + $0x250] sm:$0xff] }
  0x23   :  { %v5815_v49 = vpack.i.bf16 %v39_v39, %v55_v40  ;;  %1674 = vmatpush1.bf16.msra.mxu1 %v5988_v43  ;;  %v5163_v6 = vld [vmem:[%s9963_s0 + $0x1a0] sm:$0xff]  ;;  %v5180_v11 = vld [vmem:[%s9963_s0 + $0x228] sm:$0xff]  ;;  %v5981_v12 = vld [vmem:[%s9964_s1 + $0x2d0] ss:$40 sps:$4 sm:$0xff]  }
  0x24   :  { %1559 = vmatpush1.bf16.msra.mxu0 %v5949_v10  ;;  %1772 = vmatprep.subr.bf16.mxu1 %v5991_v44  ;;  %v5179_v7 = vld [vmem:[%s9963_s0 + $0x220] sm:$0xff]  ;;  %v5164_v10 = vld [vmem:[%s9963_s0 + $0x1a8] sm:$0xff]  ;;  %v5165_v19 = vld [vmem:[%s9963_s0 + $0x1b0] sm:$0xff] }
  0x25   :  { %1560 = vmatprep.subr.bf16.mxu0 %v5950_v13  ;;  %v5983_v13 = vld [vmem:[%s9964_s1 + $0x284] ss:$40 sps:$4 sm:$0xff]   ;;  %v5881_v15 = vpack.i.bf16 %v5163_v6, %v5179_v7  ;;  %v5987_v17 = vld [vmem:[%s9964_s1 + $0x280] ss:$40 sps:$4 sm:$0xff]   ;;  %v5166_v23 = vld [vmem:[%s9963_s0 + $0x1b8] sm:$0xff] }
  0x26   :  { %5802 = vxpose.xlu0.b32.cont [9/16] (narrow) %v5801_v47, 64  ;;  %5860 = vxpose.xlu1.b32.cont [2/16] (narrow) %v5859_v51, 64  ;;  %v5159_v47 = vld [vmem:[%s9963_s0 + $0x180] sm:$0xff]  ;;  %v5188_v22 = vld [vmem:[%s9963_s0 + $0x268] sm:$0xff]  ;;  %v5182_v24 = vld [vmem:[%s9963_s0 + $0x238] sm:$0xff] }
  0x27   :  { %v5873_v51 = vpack.i.bf16 %v5159_v47, %v5175_v48  ;;  %v5994_v18 = vld [vmem:[%s9964_s1 + $0x5fc] ss:$40 sps:$4 sm:$0xff]   ;;  %v5189_v26 = vld [vmem:[%s9963_s0 + $0x270] sm:$0xff]  ;;  %v5998_v47 = vld [vmem:[%s9964_s1 + $0x198] ss:$40 sps:$4 sm:$0xff]  }
  0x28   :  { %1561 = vmatpush1.bf16.msra.mxu0 %v5952_v21  ;;  %v5883_v21 = vpack.i.bf16 %v5164_v10, %v5180_v11  ;;  %v5190_v28 = vld [vmem:[%s9963_s0 + $0x278] sm:$0xff]  ;;  %v5997_v33 = vld [vmem:[%s9964_s1 + $0x1ec] ss:$40 sps:$4 sm:$0xff]   ;;  %v6010_v11 = vld [vmem:[%s9964_s1 + $0xa8] ss:$40 sps:$4 sm:$0xff]  }
  0x29   :  { %1562 = vmatprep.subr.bf16.mxu0 %v5953_v25  ;;  %v6009_v48 = vld [vmem:[%s9964_s1 + $0x5ac] ss:$40 sps:$4 sm:$0xff]   ;;  %v6004_v2 = vld [vmem:[%s9964_s1 + $0xf8] ss:$40 sps:$4 sm:$0xff]  }
  0x2a   :  { %5804 = vxpose.xlu0.b32.cont [10/16] (narrow) %v5803_v55, 64  ;;  %5862 = vxpose.xlu1.b32.cont [3/16] (narrow) %v5861_v59, 64  ;;  %v5183_v55 = vld [vmem:[%s9963_s0 + $0x240] sm:$0xff]  ;;  %v5161_v59 = vld [vmem:[%s9963_s0 + $0x190] sm:$0xff] }
  0x2b   :  { %v6027_v3 = vld [vmem:[%s9964_s1 + $0x50c] ss:$40 sps:$4 sm:$0xff]  }
  0x2c   :  { %1563 = vmatpush2.bf16.msra.mxu0 %v5955_v35 }
  0x2d   :  { %1564 = vmatprep.subr.bf16.mxu0 %v5956_v38  ;;  %v5995_v38 = vld [vmem:[%s9964_s1 + $0x1e8] ss:$40 sps:$4 sm:$0xff]  }
  0x2e   :  { %5806 = vxpose.xlu0.b32.cont [11/16] (narrow) %v5805_v63, 64  ;;  %5864 = vxpose.xlu1.b32.cont [4/16] (narrow) %v5863_v5, 64  ;;  %v5877_v63 = vpack.i.bf16 %v5161_v59, %v5177_v60  ;;  %v5977_v5 = vld [vmem:[%s9964_s1 + $0x2d4] ss:$40 sps:$4 sm:$0xff]  }
  0x2f   :  { %v6006_v60 = vld [vmem:[%s9964_s1 + $0xfc] ss:$40 sps:$4 sm:$0xff]  }
  0x30   :  { %1565 = vmatpush2.bf16.msra.mxu0 %v5958_v42  ;;  %v6000_v42 = vld [vmem:[%s9964_s1 + $0x19c] ss:$40 sps:$4 sm:$0xff]  }
  0x31   :  { %1566 = vmatprep.subr.bf16.mxu0 %v5959_v46 }
  0x32   :  { %5808 = vxpose.xlu0.b32.cont [12/16] (narrow) %v5807_v9, 64  ;;  %5866 = vxpose.xlu1.b32.cont [5/16] (narrow) %v5865_v16, 64  ;;  %v5186_v9 = vld [vmem:[%s9963_s0 + $0x258] sm:$0xff]  ;;  %v5187_v16 = vld [vmem:[%s9963_s0 + $0x260] sm:$0xff] }
  0x34   :  { %1567 = vmatpush2.bf16.msra.mxu0 %v5961_v50  ;;  %v6007_v50 = vld [vmem:[%s9964_s1 + $0x5a8] ss:$40 sps:$4 sm:$0xff]  }
  0x35   :  { %1568 = vmatprep.subr.bf16.mxu0 %v5962_v52 }
  0x36   :  { %5810 = vxpose.xlu0.b32.cont [13/16] (narrow) %v5809_v20, 64  ;;  %5868 = vxpose.xlu1.b32.cont [6/16] (narrow) %v5867_v27, 64  ;;  %v5181_v20 = vld [vmem:[%s9963_s0 + $0x230] sm:$0xff]  ;;  %v5887_v27 = vpack.i.bf16 %v5166_v23, %v5182_v24 }
  0x37   :  { %v5885_v25 = vpack.i.bf16 %v5165_v19, %v5181_v20 }
  0x38   :  { %1569 = vmatpush2.bf16.msra.mxu0 %v5964_v56  ;;  %v6001_v56 = vld [vmem:[%s9964_s1 + $0x148] ss:$40 sps:$4 sm:$0xff]  }
  0x39   :  { %1570 = vmatprep.subr.bf16.mxu0 %v5965_v58 }
  0x3a   :  { %5812 = vxpose.xlu0.b32.cont [14/16] (narrow) %v5811_v31, 64  ;;  %5870 = vxpose.xlu1.b32.cont [7/16] (narrow) %v5869_v37, 64  ;;  %v5989_v31 = vld [vmem:[%s9964_s1 + $0x238] ss:$40 sps:$4 sm:$0xff]  }
  0x3c   :  { %1571 = vmatpush2.bf16.msra.mxu0 %v5969_v62 }
  0x3d   :  { %1572 = vmatprep.subr.bf16.mxu0 %v5971_v0 }
  0x3e   :  { %5814 = vxpose.xlu0.b32.cont [15/16] (narrow) %v5813_v41, 64  ;;  %5872 = vxpose.xlu1.b32.cont [8/16] (narrow) %v5871_v45, 64  ;;  %v5992_v41 = vld [vmem:[%s9964_s1 + $0x5f8] ss:$40 sps:$4 sm:$0xff]  }
  0x40   :  { %1573 = vmatpush2.bf16.msra.mxu0 %v5975_v4  ;;  %v6012_v4 = vld [vmem:[%s9964_s1 + $0xac] ss:$40 sps:$4 sm:$0xff]  }
  0x41   :  { %1574 = vmatprep.subr.bf16.mxu0 %v5977_v5  ;;  %v6025_v5 = vld [vmem:[%s9964_s1 + $0x508] ss:$40 sps:$4 sm:$0xff]  }
  0x42   :  { %5816 = vxpose.xlu0.b32.end [16/16] (narrow) %v5815_v49, 64  ;;  %5874 = vxpose.xlu1.b32.cont [9/16] (narrow) %v5873_v51, 64  ;;  %v6003_v49 = vld [vmem:[%s9964_s1 + $0x14c] ss:$40 sps:$4 sm:$0xff]  }
  0x44   :  { %1575 = vmatpush2.bf16.msra.mxu0 %v5981_v12  ;;  %v6054_v12 = vld [vmem:[%s9964_s1 + $0x604] ss:$40 sps:$4 sm:$0xff]  }
  0x45   :  { %1576 = vmatprep.subr.bf16.mxu0 %v5983_v13 }
  0x46   :  { %265 = vxpose.xlu0.b32.start [1/8] (short) (narrow) %v5183_v55, 64  ;;  %5876 = vxpose.xlu1.b32.cont [10/16] (narrow) %v5875_v57, 64  ;;  %v6021_v57 = vld [vmem:[%s9964_s1 + $0x55c] ss:$40 sps:$4 sm:$0xff]  }
  0x48   :  { %1577 = vmatpush2.bf16.msra.mxu0 %v5987_v17 }
  0x49   :  { %1893 = vmatprep.subr.bf16.mxu0 %v5994_v18 }
  0x4a   :  { %266 = vxpose.xlu0.b32.cont [2/8] (short) (narrow) %v5184_v61, 64  ;;  %5878 = vxpose.xlu1.b32.cont [11/16] (narrow) %v5877_v63, 64  ;;  %v6019_v61 = vld [vmem:[%s9964_s1 + $0x558] ss:$40 sps:$4 sm:$0xff]  }
  0x4e   :  { %267 = vxpose.xlu0.b32.cont [3/8] (short) (narrow) %v5185_v1, 64  ;;  %5880 = vxpose.xlu1.b32.cont [12/16] (narrow) %v5879_v8, 64 }
  0x52   :  { %268 = vxpose.xlu0.b32.cont [4/8] (short) (narrow) %v5186_v9, 64  ;;  %5882 = vxpose.xlu1.b32.cont [13/16] (narrow) %v5881_v15, 64 }
  0x56   :  { %269 = vxpose.xlu0.b32.cont [5/8] (short) (narrow) %v5187_v16, 64  ;;  %5884 = vxpose.xlu1.b32.cont [14/16] (narrow) %v5883_v21, 64  ;;  %v6015_v16 = vld [vmem:[%s9964_s1 + $0x5c] ss:$40 sps:$4 sm:$0xff]   ;;  %v6013_v21 = vld [vmem:[%s9964_s1 + $0x58] ss:$40 sps:$4 sm:$0xff]  }
  0x5a   :  { %270 = vxpose.xlu0.b32.cont [6/8] (short) (narrow) %v5188_v22, 64  ;;  %5886 = vxpose.xlu1.b32.cont [15/16] (narrow) %v5885_v25, 64  ;;  %v6018_v22 = vld [vmem:[%s9964_s1 + $0xc] ss:$40 sps:$4 sm:$0xff]  }
  0x5e   :  { %271 = vxpose.xlu0.b32.cont [7/8] (short) (narrow) %v5189_v26, 64  ;;  %5888 = vxpose.xlu1.b32.end [16/16] (narrow) %v5887_v27, 64 }
  0x62   :  { %272 = vxpose.xlu0.b32.end [8/8] (short) (narrow) %v5190_v28, 64  ;;  %v6016_v28 = vld [vmem:[%s9964_s1 + $0x8] ss:$40 sps:$4 sm:$0xff]  }
  0x7e   :  { %v144_v29 = vpop.trf.xlu1 }
  0x82   :  { %v5817_v30 = vpop.trf.xlu0  ;;  %v145_v32 = vpop.trf.xlu1 }
  0x83   :  { %v5821_v34 = vunpack.i.h.bf16 %v5817_v30  ;;  %v5818_v35 = vunpack.i.l.bf16 %v5817_v30  ;;  %v7378_v36 = vpack.c.bf16 %v145_v32, %v144_v29 }
  0x85   :  { %5391 = vmatmul.mubr.msk.bf16.vlgmr.msra.gmra.mxu1 %vm1521_vm0, %v7378_v36 }
  0x86   :  { %v5822_v37 = vpop.trf.xlu0  ;;  %v146_v43 = vpop.trf.xlu1  ;;  %1701 = vmatprep.mubr.bf16.mxu1 %v9975_v14  ;;  %1773 = vmatpush1.bf16.msra.mxu1 %v5989_v31  ;;  %v6024_v31 = vld [vmem:[%s9964_s1 + $0x4bc] ss:$40 sps:$4 sm:$0xff]  }
  0x87   :  { %v5826_v39 = vunpack.i.h.bf16 %v5822_v37  ;;  %v5823_v40 = vunpack.i.l.bf16 %v5822_v37  ;;  %1774 = vmatprep.subr.bf16.mxu1 %v5997_v33 }
  0x89   :  { %v7392_v44 = vpack.c.bf16 %v5826_v39, %v5821_v34  ;;  %v7394_v45 = vpack.c.bf16 %v5823_v40, %v5818_v35  ;;  %v6022_v35 = vld [vmem:[%s9964_s1 + $0x4b8] ss:$40 sps:$4 sm:$0xff]  }
  0x8a   :  { %v5827_v46 = vpop.trf.xlu0  ;;  %v147_v51 = vpop.trf.xlu1  ;;  %1775 = vmatpush1.bf16.msra.mxu1 %v5995_v38  ;;  %v6030_v38 = vld [vmem:[%s9964_s1 + $0x46c] ss:$40 sps:$4 sm:$0xff]  }
  0x8b   :  { %1578 = vmatprep.mubr.bf16.mxu0 %v7394_v45  ;;  %v5831_v52 = vunpack.i.h.bf16 %v5827_v46  ;;  %v5828_v53 = vunpack.i.l.bf16 %v5827_v46  ;;  %v7410_v54 = vpack.c.bf16 %v147_v51, %v146_v43  ;;  %1776 = vmatprep.subr.bf16.mxu1 %v6000_v42  ;;  %v6028_v46 = vld [vmem:[%s9964_s1 + $0x468] ss:$40 sps:$4 sm:$0xff]   ;;  %v6031_v51 = vld [vmem:[%s9964_s1 + $0x418] ss:$40 sps:$4 sm:$0xff]  }
  0x8c   :  { %1579 = vmatmul.mubr.bf16.vlgmr.msra.gmra.mxu0 %v7392_v44 }
  0x8d   :  { %1894 = vmatpush1.bf16.msra.mxu0 %v5992_v41  ;;  %5392 = vmatmul.mubr.msk.bf16.gmra.mxu1 %vm1521_vm0, %v7410_v54 }
  0x8e   :  { %v5832_v55 = vpop.trf.xlu0  ;;  %1895 = vmatprep.subr.bf16.mxu0 %v6009_v48  ;;  %v148_v62 = vpop.trf.xlu1  ;;  %1711 = vmatprep.mubr.bf16.mxu1 %v9975_v14 }
  0x8f   :  { %v5836_v58 = vunpack.i.h.bf16 %v5832_v55  ;;  %v5833_v59 = vunpack.i.l.bf16 %v5832_v55  ;;  %1777 = vmatpush1.bf16.msra.mxu1 %v5998_v47  ;;  %v6033_v47 = vld [vmem:[%s9964_s1 + $0x41c] ss:$40 sps:$4 sm:$0xff]   ;;  %v6036_v55 = vld [vmem:[%s9964_s1 + $0x3cc] ss:$40 sps:$4 sm:$0xff]  }
  0x90   :  { %1778 = vmatprep.subr.bf16.mxu1 %v6003_v49 }
  0x91   :  { %v7427_v63 = vpack.c.bf16 %v5836_v58, %v5831_v52  ;;  %v7429_v0 = vpack.c.bf16 %v5833_v59, %v5828_v53  ;;  %1896 = vmatpush1.bf16.msra.mxu0 %v6007_v50  ;;  %v6034_v58 = vld [vmem:[%s9964_s1 + $0x3c8] ss:$40 sps:$4 sm:$0xff]  }
  0x92   :  { %v5837_v1 = vpop.trf.xlu0  ;;  %1897 = vmatprep.subr.bf16.mxu0 %v6021_v57  ;;  %v149_v6 = vpop.trf.xlu1 }
  0x93   :  { %10000 = vst [vmem:[#allocation5_spill] sm:$0xff] %v7427_v63  ;;  %10001 = vst [vmem:[#allocation6_spill] sm:$0xff] %v7429_v0  ;;  %1588 = vmatprep.mubr.bf16.mxu0 %v7429_v0  ;;  %1779 = vmatpush1.bf16.msra.mxu1 %v6001_v56  ;;  %v5841_v7 = vunpack.i.h.bf16 %v5837_v1  ;;  %v5838_v8 = vunpack.i.l.bf16 %v5837_v1  ;;  %v7445_v9 = vpack.c.bf16 %v149_v6, %v148_v62 }
  0x94   :  { %1589 = vmatmul.mubr.bf16.gmra.mxu0 %v7427_v63  ;;  %1780 = vmatprep.subr.bf16.mxu1 %v6006_v60  ;;  %v6039_v60 = vld [vmem:[%s9964_s1 + $0x37c] ss:$40 sps:$4 sm:$0xff]  }
  0x95   :  { %1898 = vmatpush1.bf16.msra.mxu0 %v6019_v61  ;;  %5393 = vmatmul.mubr.msk.bf16.gmra.mxu1 %vm1521_vm0, %v7445_v9 }
  0x96   :  { %v5842_v10 = vpop.trf.xlu0  ;;  %1899 = vmatprep.subr.bf16.mxu0 %v6027_v3  ;;  %v150_v17 = vpop.trf.xlu1  ;;  %1721 = vmatprep.mubr.bf16.mxu1 %v9975_v14 }
  0x97   :  { %v5846_v13 = vunpack.i.h.bf16 %v5842_v10  ;;  %v5843_v15 = vunpack.i.l.bf16 %v5842_v10  ;;  %1781 = vmatpush1.bf16.msra.mxu1 %v6004_v2  ;;  %v6037_v2 = vld [vmem:[%s9964_s1 + $0x378] ss:$40 sps:$4 sm:$0xff]   ;;  %v6040_v10 = vld [vmem:[%s9964_s1 + $0x328] ss:$40 sps:$4 sm:$0xff]  }
  0x98   :  { %1782 = vmatprep.subr.bf16.mxu1 %v6012_v4 }
  0x99   :  { %v7459_v18 = vpack.c.bf16 %v5846_v13, %v5841_v7  ;;  %v7461_v19 = vpack.c.bf16 %v5843_v15, %v5838_v8  ;;  %1900 = vmatpush1.bf16.msra.mxu0 %v6025_v5  ;;  %v6042_v5 = vld [vmem:[%s9964_s1 + $0x32c] ss:$40 sps:$4 sm:$0xff]  }
  0x9a   :  { %v5847_v20 = vpop.trf.xlu0  ;;  %2119 = vmatprep.subr.bf16.mxu0 %v6054_v12  ;;  %v151_v23 = vpop.trf.xlu1 }
  0x9b   :  { %10002 = vst [vmem:[#allocation7_spill] sm:$0xff] %v7459_v18  ;;  %10003 = vst [vmem:[#allocation8_spill] sm:$0xff] %v7461_v19  ;;  %1598 = vmatprep.mubr.bf16.mxu0 %v7461_v19  ;;  %1783 = vmatpush1.bf16.msra.mxu1 %v6010_v11  ;;  %v5851_v24 = vunpack.i.h.bf16 %v5847_v20  ;;  %v5848_v25 = vunpack.i.l.bf16 %v5847_v20  ;;  %v7471_v26 = vpack.c.bf16 %v151_v23, %v150_v17  ;;  %v6045_v11 = vld [vmem:[%s9964_s1 + $0x2dc] ss:$40 sps:$4 sm:$0xff]  }
  0x9c   :  { %1599 = vmatmul.mubr.bf16.gmra.mxu0 %v7459_v18  ;;  %1784 = vmatprep.subr.bf16.mxu1 %v6015_v16  ;;  %v6043_v16 = vld [vmem:[%s9964_s1 + $0x2d8] ss:$40 sps:$4 sm:$0xff]  }
  0x9d   :  { %5394 = vmatmul.mubr.msk.bf16.gmra.mxu1 %vm1521_vm0, %v7471_v26 }
  0x9e   :  { %v5852_v27 = vpop.trf.xlu0  ;;  %v5889_v32 = vpop.trf.xlu1  ;;  %1731 = vmatprep.mubr.bf16.mxu1 %v9975_v14 }
  0x9f   :  { %v5856_v29 = vunpack.i.h.bf16 %v5852_v27  ;;  %v5853_v30 = vunpack.i.l.bf16 %v5852_v27  ;;  %1785 = vmatpush1.bf16.msra.mxu1 %v6013_v21  ;;  %v5890_v37 = vunpack.i.l.bf16 %v5889_v32  ;;  %v5893_v39 = vunpack.i.h.bf16 %v5889_v32  ;;  %v6048_v21 = vld [vmem:[%s9964_s1 + $0x28c] ss:$40 sps:$4 sm:$0xff]  }
  0xa0   :  { %1786 = vmatprep.subr.bf16.mxu1 %v6018_v22  ;;  %v6051_v27 = vld [vmem:[%s9964_s1 + $0x244] ss:$40 sps:$4 sm:$0xff]  }
  0xa1   :  { %v7482_v33 = vpack.c.bf16 %v5856_v29, %v5851_v24  ;;  %v7484_v34 = vpack.c.bf16 %v5853_v30, %v5848_v25  ;;  %v6046_v24 = vld [vmem:[%s9964_s1 + $0x288] ss:$40 sps:$4 sm:$0xff]  }
  0xa2   :  { %v5894_v40 = vpop.trf.xlu1 }
  0xa3   :  { %10004 = vst [vmem:[#allocation9_spill] sm:$0xff] %v7482_v33  ;;  %10005 = vst [vmem:[#allocation10_spill] sm:$0xff] %v7484_v34  ;;  %1608 = vmatprep.mubr.bf16.mxu0 %v7484_v34  ;;  %1787 = vmatpush1.bf16.msra.mxu1 %v6016_v28  ;;  %v5898_v41 = vunpack.i.h.bf16 %v5894_v40  ;;  %v5895_v42 = vunpack.i.l.bf16 %v5894_v40 }
  0xa4   :  { %1609 = vmatmul.mubr.bf16.gmra.mxu0 %v7482_v33  ;;  %1788 = vmatprep.subr.bf16.mxu1 %v6024_v31 }
  0xa5   :  { %v7494_v43 = vpack.c.bf16 %v5895_v42, %v5890_v37  ;;  %v7502_v48 = vpack.c.bf16 %v5898_v41, %v5893_v39 }
  0xa6   :  { %v5899_v49 = vpop.trf.xlu1 }
  0xa7   :  { %10006 = vst [vmem:[#allocation11_spill] sm:$0xff] %v7494_v43  ;;  %10007 = vst [vmem:[#allocation12_spill] sm:$0xff] %v7502_v48  ;;  %1789 = vmatpush2.bf16.msra.mxu1 %v6022_v35  ;;  %1618 = vmatprep.mubr.bf16.mxu0 %v7494_v43  ;;  %v5900_v50 = vunpack.i.l.bf16 %v5899_v49  ;;  %v5903_v52 = vunpack.i.h.bf16 %v5899_v49 }
  0xa8   :  { %1790 = vmatprep.subr.bf16.mxu1 %v6030_v38 }
  0xaa   :  { %v5904_v53 = vpop.trf.xlu1 }
  0xab   :  { %1791 = vmatpush2.bf16.msra.mxu1 %v6028_v46  ;;  %v5908_v56 = vunpack.i.h.bf16 %v5904_v53  ;;  %v5905_v57 = vunpack.i.l.bf16 %v5904_v53 }
  0xac   :  { %1619 = vmatmul.mubr.bf16.gmra.mxu0 %v7502_v48  ;;  %1792 = vmatprep.subr.bf16.mxu1 %v6033_v47 }
  0xad   :  { %v7515_v59 = vpack.c.bf16 %v5905_v57, %v5900_v50  ;;  %v7520_v61 = vpack.c.bf16 %v5908_v56, %v5903_v52 }
  0xae   :  { %v5909_v62 = vpop.trf.xlu1 }
  0xaf   :  { %10008 = vst [vmem:[#allocation13_spill] sm:$0xff] %v7515_v59  ;;  %1793 = vmatpush2.bf16.msra.mxu1 %v6031_v51  ;;  %1628 = vmatprep.mubr.bf16.mxu0 %v7515_v59  ;;  %v5910_v1 = vunpack.i.l.bf16 %v5909_v62  ;;  %v5913_v3 = vunpack.i.h.bf16 %v5909_v62 }
  0xb0   :  { %1794 = vmatprep.subr.bf16.mxu1 %v6036_v55 }
  0xb2   :  { %v5914_v4 = vpop.trf.xlu1 }
  0xb3   :  { %1795 = vmatpush2.bf16.msra.mxu1 %v6034_v58  ;;  %v5918_v6 = vunpack.i.h.bf16 %v5914_v4  ;;  %v5915_v7 = vunpack.i.l.bf16 %v5914_v4 }
  0xb4   :  { %1629 = vmatmul.mubr.bf16.gmra.mxu0 %v7520_v61  ;;  %1796 = vmatprep.subr.bf16.mxu1 %v6039_v60 }
  0xb5   :  { %v7530_v8 = vpack.c.bf16 %v5915_v7, %v5910_v1  ;;  %v7538_v12 = vpack.c.bf16 %v5918_v6, %v5913_v3 }
  0xb6   :  { %v5919_v13 = vpop.trf.xlu1 }
  0xb7   :  { %1797 = vmatpush2.bf16.msra.mxu1 %v6037_v2  ;;  %1638 = vmatprep.mubr.bf16.mxu0 %v7530_v8  ;;  %v5920_v15 = vunpack.i.l.bf16 %v5919_v13  ;;  %v5923_v17 = vunpack.i.h.bf16 %v5919_v13 }
  0xb8   :  { %1798 = vmatprep.subr.bf16.mxu1 %v6042_v5 }
  0xba   :  { %v5924_v20 = vpop.trf.xlu1 }
  0xbb   :  { %1799 = vmatpush2.bf16.msra.mxu1 %v6040_v10  ;;  %v5928_v22 = vunpack.i.h.bf16 %v5924_v20  ;;  %v5925_v23 = vunpack.i.l.bf16 %v5924_v20 }
  0xbc   :  { %1639 = vmatmul.mubr.bf16.gmra.mxu0 %v7538_v12  ;;  %1800 = vmatprep.subr.bf16.mxu1 %v6045_v11 }
  0xbd   :  { %v7551_v25 = vpack.c.bf16 %v5925_v23, %v5920_v15  ;;  %v7556_v28 = vpack.c.bf16 %v5928_v22, %v5923_v17 }
  0xbf   :  { %10009 = vst [vmem:[#allocation14_spill] sm:$0xff] %v7556_v28  ;;  %1801 = vmatpush2.bf16.msra.mxu1 %v6043_v16  ;;  %1648 = vmatprep.mubr.bf16.mxu0 %v7551_v25 }
  0xc0   :  { %1802 = vmatprep.subr.bf16.mxu1 %v6048_v21 }
  0xc2   :  { %v281_v29 = vpop.trf.xlu0 }
  0xc3   :  { %1803 = vmatpush2.bf16.msra.mxu1 %v6046_v24 }
  0xc4   :  { %1649 = vmatmul.mubr.bf16.gmra.mxu0 %v7556_v28  ;;  %1998 = vmatprep.subr.bf16.mxu1 %v6051_v27 }
  0xc5   :  { %1917 = vmatprep.mubr.bf16.mxu0 %v9975_v14 }
  0xc6   :  { %10 = vsyncpa [#allocation3], 0  ;;  %v282_v30 = vpop.trf.xlu0  ;;  %v6052_v32 = vld [vmem:[%s9964_s1 + $0x600] ss:$40 sps:$4 sm:$0xff]   ;;  %v6069_v37 = vld [vmem:[%s9964_s1 + $0x5b4] ss:$40 sps:$4 sm:$0xff]  }
  0xc7   :  { %v7561_v31 = vpack.c.bf16 %v282_v30, %v281_v29  ;;  %v6067_v38 = vld [vmem:[%s9964_s1 + $0x5b0] ss:$40 sps:$4 sm:$0xff]   ;;  %v6081_v40 = vld [vmem:[%s9964_s1 + $0x564] ss:$40 sps:$4 sm:$0xff]   ;;  %v6079_v42 = vld [vmem:[%s9964_s1 + $0x560] ss:$40 sps:$4 sm:$0xff]  }
  0xc8   :  { %v6087_v47 = vld [vmem:[%s9964_s1 + $0x514] ss:$40 sps:$4 sm:$0xff]   ;;  %v6085_v49 = vld [vmem:[%s9964_s1 + $0x510] ss:$40 sps:$4 sm:$0xff]   ;;  %v6049_v57 = vld [vmem:[%s9964_s1 + $0x240] ss:$40 sps:$4 sm:$0xff]  }
  0xc9   :  { %10010 = vst [vmem:[#allocation15_spill] sm:$0xff] %v7561_v31  ;;  %5395 = vmatmul.mubr.msk.bf16.gmra.mxu1 %vm1521_vm0, %v7561_v31  ;;  %v6114_v51 = vld [vmem:[%s9964_s1 + $0x60c] ss:$40 sps:$4 sm:$0xff]   ;;  %v6055_v60 = vld [vmem:[%s9964_s1 + $0x1f0] ss:$40 sps:$4 sm:$0xff]   ;;  %vm4268_vm1 = vcmask 1040384  }
  0xca   :  { %v283_v35 = vpop.trf.xlu0  ;;  %1741 = vmatprep.mubr.bf16.mxu1 %v9975_v14  ;;  %v6057_v58 = vld [vmem:[%s9964_s1 + $0x1f4] ss:$40 sps:$4 sm:$0xff]   ;;  %v6060_v62 = vld [vmem:[%s9964_s1 + $0x1a4] ss:$40 sps:$4 sm:$0xff]   ;;  %v6058_v1 = vld [vmem:[%s9964_s1 + $0x1a0] ss:$40 sps:$4 sm:$0xff]  }
  0xcb   :  { %v6063_v2 = vld [vmem:[%s9964_s1 + $0x154] ss:$40 sps:$4 sm:$0xff]   ;;  %v6061_v3 = vld [vmem:[%s9964_s1 + $0x150] ss:$40 sps:$4 sm:$0xff]   ;;  %v6066_v4 = vld [vmem:[%s9964_s1 + $0x104] ss:$40 sps:$4 sm:$0xff]  }
  0xcc   :  { %5399 = vmatmul.mubr.msk.bf16.vlgmr.msra.gmra.mxu0 %vm1521_vm0, %v7378_v36  ;;  %v6064_v5 = vld [vmem:[%s9964_s1 + $0x100] ss:$40 sps:$4 sm:$0xff]   ;;  %v6072_v6 = vld [vmem:[%s9964_s1 + $0xb4] ss:$40 sps:$4 sm:$0xff]   ;;  %v6070_v7 = vld [vmem:[%s9964_s1 + $0xb0] ss:$40 sps:$4 sm:$0xff]  }
  0xcd   :  { %1927 = vmatprep.mubr.bf16.mxu0 %v9975_v14  ;;  %2120 = vmatpush1.bf16.msra.mxu0 %v6052_v32  ;;  %v6075_v10 = vld [vmem:[%s9964_s1 + $0x64] ss:$40 sps:$4 sm:$0xff]   ;;  %v6073_v11 = vld [vmem:[%s9964_s1 + $0x60] ss:$40 sps:$4 sm:$0xff]   ;;  %v6078_v13 = vld [vmem:[%s9964_s1 + $0x14] ss:$40 sps:$4 sm:$0xff]  }
  0xce   :  { %v284_v39 = vpop.trf.xlu0  ;;  %2121 = vmatprep.subr.bf16.mxu0 %v6069_v37  ;;  %v6076_v15 = vld [vmem:[%s9964_s1 + $0x10] ss:$40 sps:$4 sm:$0xff]   ;;  %v6084_v16 = vld [vmem:[%s9964_s1 + $0x4c4] ss:$40 sps:$4 sm:$0xff]   ;;  %v6082_v17 = vld [vmem:[%s9964_s1 + $0x4c0] ss:$40 sps:$4 sm:$0xff]  }
  0xcf   :  { %v7581_v41 = vpack.c.bf16 %v284_v39, %v283_v35  ;;  %v6090_v20 = vld [vmem:[%s9964_s1 + $0x474] ss:$40 sps:$4 sm:$0xff]   ;;  %v6112_v21 = vld [vmem:[%s9964_s1 + $0x608] ss:$40 sps:$4 sm:$0xff]   ;;  %v6093_v24 = vld [vmem:[%s9964_s1 + $0x424] ss:$40 sps:$4 sm:$0xff]  }
  0xd0   :  { %v6088_v22 = vld [vmem:[%s9964_s1 + $0x470] ss:$40 sps:$4 sm:$0xff]   ;;  %v6129_v23 = vld [vmem:[%s9964_s1 + $0x5bc] ss:$40 sps:$4 sm:$0xff]   ;;  %v6091_v29 = vld [vmem:[%s9964_s1 + $0x420] ss:$40 sps:$4 sm:$0xff]  }
  0xd1   :  { %10011 = vst [vmem:[#allocation16_spill] sm:$0xff] %v7581_v41  ;;  %5396 = vmatmul.mubr.msk.bf16.gmra.mxu1 %vm1521_vm0, %v7581_v41  ;;  %2122 = vmatpush1.bf16.msra.mxu0 %v6067_v38  ;;  %v6127_v27 = vld [vmem:[%s9964_s1 + $0x5b8] ss:$40 sps:$4 sm:$0xff]   ;;  %v6096_v30 = vld [vmem:[%s9964_s1 + $0x3d4] ss:$40 sps:$4 sm:$0xff]  }
  0xd2   :  { %v285_v46 = vpop.trf.xlu0  ;;  %1751 = vmatprep.mubr.bf16.mxu1 %v9975_v14  ;;  %2123 = vmatprep.subr.bf16.mxu0 %v6081_v40  ;;  %v6141_v32 = vld [vmem:[%s9964_s1 + $0x56c] ss:$40 sps:$4 sm:$0xff]   ;;  %v6139_v35 = vld [vmem:[%s9964_s1 + $0x568] ss:$40 sps:$4 sm:$0xff]   ;;  %v6147_v38 = vld [vmem:[%s9964_s1 + $0x51c] ss:$40 sps:$4 sm:$0xff]  }
  0xd3   :  { %v6094_v37 = vld [vmem:[%s9964_s1 + $0x3d0] ss:$40 sps:$4 sm:$0xff]   ;;  %v6099_v39 = vld [vmem:[%s9964_s1 + $0x384] ss:$40 sps:$4 sm:$0xff]  }
  0xd4   :  { %5400 = vmatmul.mubr.msk.bf16.gmra.mxu0 %vm1521_vm0, %v7410_v54  ;;  %v6145_v40 = vld [vmem:[%s9964_s1 + $0x518] ss:$40 sps:$4 sm:$0xff]  }
  0xd5   :  { %1937 = vmatprep.mubr.bf16.mxu0 %v9975_v14  ;;  %2124 = vmatpush1.bf16.msra.mxu0 %v6079_v42  ;;  %v6097_v42 = vld [vmem:[%s9964_s1 + $0x380] ss:$40 sps:$4 sm:$0xff]  }
  0xd6   :  { %v286_v50 = vpop.trf.xlu0  ;;  %2125 = vmatprep.subr.bf16.mxu0 %v6087_v47  ;;  %v6174_v47 = vld [vmem:[%s9964_s1 + $0x614] ss:$40 sps:$4 sm:$0xff]  }
  0xd7   :  { %v7601_v52 = vpack.c.bf16 %v286_v50, %v285_v46  ;;  %v6102_v46 = vld [vmem:[%s9964_s1 + $0x334] ss:$40 sps:$4 sm:$0xff]   ;;  %v6105_v50 = vld [vmem:[%s9964_s1 + $0x2e4] ss:$40 sps:$4 sm:$0xff]  }
  0xd9   :  { %10012 = vst [vmem:[#allocation17_spill] sm:$0xff] %v7601_v52  ;;  %5397 = vmatmul.mubr.msk.bf16.gmra.mxu1 %vm1521_vm0, %v7601_v52  ;;  %2126 = vmatpush1.bf16.msra.mxu0 %v6085_v49  ;;  %v6100_v49 = vld [vmem:[%s9964_s1 + $0x330] ss:$40 sps:$4 sm:$0xff]  }
  0xda   :  { %v287_v53 = vpop.trf.xlu0  ;;  %1761 = vmatprep.mubr.bf16.mxu1 %v9975_v14  ;;  %2345 = vmatprep.subr.bf16.mxu0 %v6114_v51  ;;  %v6103_v51 = vld [vmem:[%s9964_s1 + $0x2e0] ss:$40 sps:$4 sm:$0xff]  }
  0xdc   :  { %5401 = vmatmul.mubr.msk.bf16.gmra.mxu0 %vm1521_vm0, %v7445_v9 }
  0xdd   :  { %1947 = vmatprep.mubr.bf16.mxu0 %v9975_v14 }
  0xde   :  { %v288_v55 = vpop.trf.xlu0 }
  0xdf   :  { %v7609_v56 = vpack.c.bf16 %v288_v55, %v287_v53  ;;  %v6108_v53 = vld [vmem:[%s9964_s1 + $0x294] ss:$40 sps:$4 sm:$0xff]   ;;  %v6106_v55 = vld [vmem:[%s9964_s1 + $0x290] ss:$40 sps:$4 sm:$0xff]  }
  0xe1   :  { %10013 = vst [vmem:[#allocation18_spill] sm:$0xff] %v7609_v56  ;;  %5398 = vmatmul.mubr.msk.bf16.gmra.mxu1 %vm1521_vm0, %v7609_v56 }
  0xe2   :  { %1804 = vmatprep.mubr.bf16.mxu1 %v7394_v45 }
  0xe4   :  { %5402 = vmatmul.mubr.msk.bf16.gmra.mxu0 %vm1521_vm0, %v7471_v26 }
  0xe5   :  { %1957 = vmatprep.mubr.bf16.mxu0 %v9975_v14 }
  0xe9   :  { %1805 = vmatmul.mubr.bf16.vlgmr.msra.gmra.mxu1 %v7392_v44 }
  0xea   :  { %1999 = vmatpush1.bf16.msra.mxu1 %v6049_v57  ;;  %1814 = vmatprep.mubr.bf16.mxu1 %v7429_v0  ;;  %v6111_v57 = vld [vmem:[%s9964_s1 + $0x24c] ss:$40 sps:$4 sm:$0xff]  }
  0xeb   :  { %2000 = vmatprep.subr.bf16.mxu1 %v6057_v58  ;;  %v6109_v58 = vld [vmem:[%s9964_s1 + $0x248] ss:$40 sps:$4 sm:$0xff]  }
  0xec   :  { %5403 = vmatmul.mubr.msk.bf16.gmra.mxu0 %vm1521_vm0, %v7561_v31 }
  0xed   :  { %1967 = vmatprep.mubr.bf16.mxu0 %v9975_v14 }
  0xee   :  { %2001 = vmatpush1.bf16.msra.mxu1 %v6055_v60  ;;  %v6117_v60 = vld [vmem:[%s9964_s1 + $0x1fc] ss:$40 sps:$4 sm:$0xff]  }
  0xef   :  { %2002 = vmatprep.subr.bf16.mxu1 %v6060_v62  ;;  %v6115_v62 = vld [vmem:[%s9964_s1 + $0x1f8] ss:$40 sps:$4 sm:$0xff]  }
  0xf1   :  { %1815 = vmatmul.mubr.bf16.gmra.mxu1 %v7427_v63 }
  0xf2   :  { %2003 = vmatpush1.bf16.msra.mxu1 %v6058_v1  ;;  %1824 = vmatprep.mubr.bf16.mxu1 %v7461_v19  ;;  %v6120_v1 = vld [vmem:[%s9964_s1 + $0x1ac] ss:$40 sps:$4 sm:$0xff]  }
  0xf3   :  { %2004 = vmatprep.subr.bf16.mxu1 %v6063_v2  ;;  %v6118_v2 = vld [vmem:[%s9964_s1 + $0x1a8] ss:$40 sps:$4 sm:$0xff]  }
  0xf4   :  { %5404 = vmatmul.mubr.msk.bf16.gmra.mxu0 %vm1521_vm0, %v7581_v41 }
  0xf5   :  { %1977 = vmatprep.mubr.bf16.mxu0 %v9975_v14 }
  0xf6   :  { %2005 = vmatpush1.bf16.msra.mxu1 %v6061_v3  ;;  %v6123_v3 = vld [vmem:[%s9964_s1 + $0x15c] ss:$40 sps:$4 sm:$0xff]  }
  0xf7   :  { %2006 = vmatprep.subr.bf16.mxu1 %v6066_v4  ;;  %v6121_v4 = vld [vmem:[%s9964_s1 + $0x158] ss:$40 sps:$4 sm:$0xff]  }
  0xf9   :  { %1825 = vmatmul.mubr.bf16.gmra.mxu1 %v7459_v18 }
  0xfa   :  { %2007 = vmatpush1.bf16.msra.mxu1 %v6064_v5  ;;  %1834 = vmatprep.mubr.bf16.mxu1 %v7484_v34  ;;  %v6126_v5 = vld [vmem:[%s9964_s1 + $0x10c] ss:$40 sps:$4 sm:$0xff]  }
  0xfb   :  { %2008 = vmatprep.subr.bf16.mxu1 %v6072_v6  ;;  %v6124_v6 = vld [vmem:[%s9964_s1 + $0x108] ss:$40 sps:$4 sm:$0xff]  }
  0xfc   :  { %5405 = vmatmul.mubr.msk.bf16.gmra.mxu0 %vm1521_vm0, %v7601_v52 }
  0xfd   :  { %1987 = vmatprep.mubr.bf16.mxu0 %v9975_v14 }
  0xfe   :  { %2009 = vmatpush1.bf16.msra.mxu1 %v6070_v7  ;;  %v6132_v7 = vld [vmem:[%s9964_s1 + $0xbc] ss:$40 sps:$4 sm:$0xff]  }
  0xff   :  { %2010 = vmatprep.subr.bf16.mxu1 %v6075_v10  ;;  %v6130_v10 = vld [vmem:[%s9964_s1 + $0xb8] ss:$40 sps:$4 sm:$0xff]  }
 0x101   :  { %1835 = vmatmul.mubr.bf16.gmra.mxu1 %v7482_v33 }
 0x102   :  { %2011 = vmatpush1.bf16.msra.mxu1 %v6073_v11  ;;  %1844 = vmatprep.mubr.bf16.mxu1 %v7494_v43  ;;  %v6135_v11 = vld [vmem:[%s9964_s1 + $0x6c] ss:$40 sps:$4 sm:$0xff]  }
 0x103   :  { %2012 = vmatprep.subr.bf16.mxu1 %v6078_v13  ;;  %v6133_v13 = vld [vmem:[%s9964_s1 + $0x68] ss:$40 sps:$4 sm:$0xff]  }
 0x104   :  { %5406 = vmatmul.mubr.msk.bf16.gmra.mxu0 %vm1521_vm0, %v7609_v56 }
 0x105   :  { %2143 = vmatprep.mubr.bf16.mxu0 %v9975_v14 }
 0x106   :  { %2013 = vmatpush1.bf16.msra.mxu1 %v6076_v15  ;;  %v6138_v15 = vld [vmem:[%s9964_s1 + $0x1c] ss:$40 sps:$4 sm:$0xff]  }
 0x107   :  { %2014 = vmatprep.subr.bf16.mxu1 %v6084_v16  ;;  %v2678_v16 = vlaneseq }
 0x109   :  { %1845 = vmatmul.mubr.bf16.gmra.mxu1 %v7502_v48 }
 0x10a   :  { %2015 = vmatpush2.bf16.msra.mxu1 %v6082_v17  ;;  %1854 = vmatprep.mubr.bf16.mxu1 %v7515_v59  ;;  %v6136_v17 = vld [vmem:[%s9964_s1 + $0x18] ss:$40 sps:$4 sm:$0xff]  }
 0x10b   :  { %2016 = vmatprep.subr.bf16.mxu1 %v6090_v20  ;;  %v6144_v20 = vld [vmem:[%s9964_s1 + $0x4cc] ss:$40 sps:$4 sm:$0xff]  }
 0x10c   :  { %5407 = vmatmul.mubr.msk.bf16.vlgmr.msra.gmra.mxu0 %vm1521_vm0, %v7378_v36 }
 0x10d   :  { %2153 = vmatprep.mubr.bf16.mxu0 %v9975_v14  ;;  %2346 = vmatpush1.bf16.msra.mxu0 %v6112_v21  ;;  %v7842_v21 = vshrl.u32 %v2678_v16, 7 }
 0x10e   :  { %2017 = vmatpush2.bf16.msra.mxu1 %v6088_v22  ;;  %2347 = vmatprep.subr.bf16.mxu0 %v6129_v23  ;;  %v6142_v22 = vld [vmem:[%s9964_s1 + $0x4c8] ss:$40 sps:$4 sm:$0xff]  }
 0x10f   :  { %2018 = vmatprep.subr.bf16.mxu1 %v6093_v24  ;;  %10014 = vst [vmem:[#allocation19_spill] sm:$0xff] %v7842_v21  ;;  %v9970_v24 = vsub.s32 0, %v7842_v21 }
 0x111   :  { %1855 = vmatmul.mubr.bf16.gmra.mxu1 %v7520_v61  ;;  %2348 = vmatpush1.bf16.msra.mxu0 %v6127_v27  ;;  %v6150_v27 = vld [vmem:[%s9964_s1 + $0x47c] ss:$40 sps:$4 sm:$0xff]  }
 0x112   :  { %2019 = vmatpush2.bf16.msra.mxu1 %v6091_v29  ;;  %1864 = vmatprep.mubr.bf16.mxu1 %v7530_v8  ;;  %v7857_v29 = vld [vmem:[%s9965_s2] sm:$0xff] }
 0x113   :  { %2020 = vmatprep.subr.bf16.mxu1 %v6096_v30  ;;  %2349 = vmatprep.subr.bf16.mxu0 %v6141_v32  ;;  %v6172_v32 = vld [vmem:[%s9964_s1 + $0x610] ss:$40 sps:$4 sm:$0xff]  }
 0x114   :  { %5408 = vmatmul.mubr.msk.bf16.gmra.mxu0 %vm1521_vm0, %v7410_v54 }
 0x115   :  { %2163 = vmatprep.mubr.bf16.mxu0 %v9975_v14  ;;  %2350 = vmatpush1.bf16.msra.mxu0 %v6139_v35  ;;  %v6148_v35 = vld [vmem:[%s9964_s1 + $0x478] ss:$40 sps:$4 sm:$0xff]  }
 0x116   :  { %2021 = vmatpush2.bf16.msra.mxu1 %v6094_v37  ;;  %2351 = vmatprep.subr.bf16.mxu0 %v6147_v38  ;;  %v6189_v37 = vld [vmem:[%s9964_s1 + $0x5c4] ss:$40 sps:$4 sm:$0xff]   ;;  %v7873_v38 = vrot.slane %v7857_v29, %v9970_v24 }
 0x117   :  { %2022 = vmatprep.subr.bf16.mxu1 %v6099_v39 }
 0x119   :  { %1865 = vmatmul.mubr.bf16.gmra.mxu1 %v7538_v12  ;;  %2352 = vmatpush1.bf16.msra.mxu0 %v6145_v40  ;;  %v6153_v40 = vld [vmem:[%s9964_s1 + $0x42c] ss:$40 sps:$4 sm:$0xff]  }
 0x11a   :  { %2023 = vmatpush2.bf16.msra.mxu1 %v6097_v42  ;;  %1874 = vmatprep.mubr.bf16.mxu1 %v7551_v25 }
 0x11b   :  { %2024 = vmatprep.subr.bf16.mxu1 %v6102_v46  ;;  %2571 = vmatprep.subr.bf16.mxu0 %v6174_v47 }
 0x11c   :  { %5409 = vmatmul.mubr.msk.bf16.gmra.mxu0 %vm1521_vm0, %v7445_v9 }
 0x11d   :  { %2173 = vmatprep.mubr.bf16.mxu0 %v9975_v14 }
 0x11e   :  { %2025 = vmatpush2.bf16.msra.mxu1 %v6100_v49  ;;  %v6187_v49 = vld [vmem:[%s9964_s1 + $0x5c0] ss:$40 sps:$4 sm:$0xff]  }
 0x11f   :  { %2026 = vmatprep.subr.bf16.mxu1 %v6105_v50 }
 0x121   :  { %1875 = vmatmul.mubr.bf16.gmra.mxu1 %v7556_v28 }
 0x122   :  { %2027 = vmatpush2.bf16.msra.mxu1 %v6103_v51  ;;  %2030 = vmatprep.mubr.bf16.mxu1 %v7394_v45  ;;  %v6151_v51 = vld [vmem:[%s9964_s1 + $0x428] ss:$40 sps:$4 sm:$0xff]  }
 0x123   :  { %2028 = vmatprep.subr.bf16.mxu1 %v6108_v53 }
 0x124   :  { %5410 = vmatmul.mubr.msk.bf16.gmra.mxu0 %vm1521_vm0, %v7471_v26 }
 0x125   :  { %2183 = vmatprep.mubr.bf16.mxu0 %v9975_v14 }
 0x126   :  { %2029 = vmatpush2.bf16.msra.mxu1 %v6106_v55 }
 0x127   :  { %2224 = vmatprep.subr.bf16.mxu1 %v6111_v57  ;;  %v6156_v57 = vld [vmem:[%s9964_s1 + $0x3dc] ss:$40 sps:$4 sm:$0xff]  }
 0x129   :  { %2031 = vmatmul.mubr.bf16.vlgmr.msra.gmra.mxu1 %v7392_v44 }
 0x12a   :  { %2225 = vmatpush1.bf16.msra.mxu1 %v6109_v58  ;;  %2040 = vmatprep.mubr.bf16.mxu1 %v7429_v0  ;;  %v6201_v58 = vld [vmem:[%s9964_s1 + $0x574] ss:$40 sps:$4 sm:$0xff]  }
 0x12b   :  { %2226 = vmatprep.subr.bf16.mxu1 %v6117_v60 }
 0x12c   :  { %5411 = vmatmul.mubr.msk.bf16.gmra.mxu0 %vm1521_vm0, %v7561_v31 }
 0x12d   :  { %2193 = vmatprep.mubr.bf16.mxu0 %v9975_v14 }
 0x12e   :  { %2227 = vmatpush1.bf16.msra.mxu1 %v6115_v62 }
 0x12f   :  { %2228 = vmatprep.subr.bf16.mxu1 %v6120_v1 }
 0x131   :  { %2041 = vmatmul.mubr.bf16.gmra.mxu1 %v7427_v63 }
 0x132   :  { %2229 = vmatpush1.bf16.msra.mxu1 %v6118_v2  ;;  %2050 = vmatprep.mubr.bf16.mxu1 %v7461_v19 }
 0x133   :  { %2230 = vmatprep.subr.bf16.mxu1 %v6123_v3  ;;  %v6199_v3 = vld [vmem:[%s9964_s1 + $0x570] ss:$40 sps:$4 sm:$0xff]  }
 0x134   :  { %5412 = vmatmul.mubr.msk.bf16.gmra.mxu0 %vm1521_vm0, %v7581_v41 }
 0x135   :  { %2203 = vmatprep.mubr.bf16.mxu0 %v9975_v14 }
 0x136   :  { %2231 = vmatpush1.bf16.msra.mxu1 %v6121_v4  ;;  %v9969_v4 = vsub.s32 1, %v7842_v21 }
 0x137   :  { %2232 = vmatprep.subr.bf16.mxu1 %v6126_v5 }
 0x139   :  { %2051 = vmatmul.mubr.bf16.gmra.mxu1 %v7459_v18 }
 0x13a   :  { %2233 = vmatpush1.bf16.msra.mxu1 %v6124_v6  ;;  %2060 = vmatprep.mubr.bf16.mxu1 %v7484_v34  ;;  %v6154_v6 = vld [vmem:[%s9964_s1 + $0x3d8] ss:$40 sps:$4 sm:$0xff]  }
 0x13b   :  { %2234 = vmatprep.subr.bf16.mxu1 %v6132_v7  ;;  %v6207_v7 = vld [vmem:[%s9964_s1 + $0x524] ss:$40 sps:$4 sm:$0xff]  }
 0x13c   :  { %5413 = vmatmul.mubr.msk.bf16.gmra.mxu0 %vm1521_vm0, %v7601_v52 }
 0x13d   :  { %2213 = vmatprep.mubr.bf16.mxu0 %v9975_v14 }
 0x13e   :  { %2235 = vmatpush1.bf16.msra.mxu1 %v6130_v10 }
 0x13f   :  { %2236 = vmatprep.subr.bf16.mxu1 %v6135_v11 }
 0x141   :  { %2061 = vmatmul.mubr.bf16.gmra.mxu1 %v7482_v33 }
 0x142   :  { %2237 = vmatpush1.bf16.msra.mxu1 %v6133_v13  ;;  %2070 = vmatprep.mubr.bf16.mxu1 %v7494_v43  ;;  %v6159_v13 = vld [vmem:[%s9964_s1 + $0x38c] ss:$40 sps:$4 sm:$0xff]  }
 0x143   :  { %2238 = vmatprep.subr.bf16.mxu1 %v6138_v15 }
 0x144   :  { %5414 = vmatmul.mubr.msk.bf16.gmra.mxu0 %vm1521_vm0, %v7609_v56 }
 0x145   :  { %2369 = vmatprep.mubr.bf16.mxu0 %v9975_v14  ;;  %v1693_v23 = vpop.f32.mrf.mxu1 }
 0x146   :  { %2239 = vmatpush1.bf16.msra.mxu1 %v6136_v17 }
 0x147   :  { %2240 = vmatprep.subr.bf16.mxu1 %v6144_v20  ;;  %v1695_v30 = vpop.f32.mrf.mxu1 }
 0x149   :  { %2071 = vmatmul.mubr.bf16.gmra.mxu1 %v7502_v48  ;;  %v1697_v39 = vpop.f32.mrf.mxu1 }
 0x14a   :  { %2241 = vmatpush2.bf16.msra.mxu1 %v6142_v22  ;;  %2080 = vmatprep.mubr.bf16.mxu1 %v7515_v59  ;;  %v6205_v22 = vld [vmem:[%s9964_s1 + $0x520] ss:$40 sps:$4 sm:$0xff]  }
 0x14b   :  { %2242 = vmatprep.subr.bf16.mxu1 %v6150_v27  ;;  %v1699_v47 = vpop.f32.mrf.mxu1  ;;  %v7925_v27 = vrot.slane %v7857_v29, %v9969_v4 }
 0x14c   :  { %v1580_v42 = vpop.f32.mrf.mxu0  ;;  %5415 = vmatmul.mubr.msk.bf16.vlgmr.msra.gmra.mxu0 %vm1521_vm0, %v7378_v36 }
 0x14d   :  { %v1694_v46 = vadd.f32 %v1693_v23, %v1580_v42  ;;  %2379 = vmatprep.mubr.bf16.mxu0 %v9975_v14  ;;  %2572 = vmatpush1.bf16.msra.mxu0 %v6172_v32  ;;  %v1703_v55 = vpop.f32.mrf.mxu1 }
 0x14e   :  { %2243 = vmatpush2.bf16.msra.mxu1 %v6148_v35  ;;  %v1582_v50 = vpop.f32.mrf.mxu0  ;;  %2573 = vmatprep.subr.bf16.mxu0 %v6189_v37  ;;  %v6157_v35 = vld [vmem:[%s9964_s1 + $0x388] ss:$40 sps:$4 sm:$0xff]  }
 0x14f   :  { %v7888_v53 = vadd.f32 %v7873_v38, %v1694_v46  ;;  %2244 = vmatprep.subr.bf16.mxu1 %v6153_v40  ;;  %v1705_v2 = vpop.f32.mrf.mxu1  ;;  %v1696_v23 = vadd.f32 %v1695_v30, %v1582_v50  ;;  %v6162_v30 = vld [vmem:[%s9964_s1 + $0x33c] ss:$40 sps:$4 sm:$0xff]  }
 0x150   :  { %v1584_v60 = vpop.f32.mrf.mxu0 }
 0x151   :  { %v5431_v62 = vmul.f32 -1.442695, %v7888_v53  ;;  %v1698_v1 = vadd.f32 %v1697_v39, %v1584_v60  ;;  %2081 = vmatmul.mubr.bf16.gmra.mxu1 %v7520_v61  ;;  %2574 = vmatpush1.bf16.msra.mxu0 %v6187_v49  ;;  %v1707_v11 = vpop.f32.mrf.mxu1 }
 0x152   :  { %2245 = vmatpush2.bf16.msra.mxu1 %v6151_v51  ;;  %v1586_v5 = vpop.f32.mrf.mxu0  ;;  %2090 = vmatprep.mubr.bf16.mxu1 %v7530_v8  ;;  %v7939_v51 = vadd.f32 %v7925_v27, %v1696_v23 }
 0x153   :  { %6309 = vpow2.f32 %v5431_v62  ;;  %v7910_v10 = vadd.f32 %v7873_v38, %v1698_v1  ;;  %2246 = vmatprep.subr.bf16.mxu1 %v6156_v57  ;;  %2575 = vmatprep.subr.bf16.mxu0 %v6201_v58  ;;  %v1709_v20 = vpop.f32.mrf.mxu1  ;;  %v1700_v37 = vadd.f32 %v1699_v47, %v1586_v5  ;;  %v6160_v57 = vld [vmem:[%s9964_s1 + $0x338] ss:$40 sps:$4 sm:$0xff]   ;;  %v6165_v62 = vld [vmem:[%s9964_s1 + $0x2ec] ss:$40 sps:$4 sm:$0xff]  }
 0x154   :  { %v1590_v15 = vpop.f32.mrf.mxu0  ;;  %5416 = vmatmul.mubr.msk.bf16.gmra.mxu0 %vm1521_vm0, %v7410_v54 }
 0x155   :  { %v5441_v16 = vmul.f32 -1.442695, %v7910_v10  ;;  %v1704_v17 = vadd.f32 %v1703_v55, %v1590_v15  ;;  %2389 = vmatprep.mubr.bf16.mxu0 %v9975_v14  ;;  %2576 = vmatpush1.bf16.msra.mxu0 %v6199_v3  ;;  %v1713_v40 = vpop.f32.mrf.mxu1  ;;  %v7946_v58 = vadd.f32 %v7925_v27, %v1700_v37 }
 0x156   :  { %2247 = vmatpush2.bf16.msra.mxu1 %v6154_v6  ;;  %v1592_v32 = vpop.f32.mrf.mxu0  ;;  %2577 = vmatprep.subr.bf16.mxu0 %v6207_v7  ;;  %v5432_v6 = vmul.f32 -1.442695, %v7939_v51 }
 0x157   :  { %6311 = vpow2.f32 %v5441_v16  ;;  %v7931_v39 = vadd.f32 %v7873_v38, %v1704_v17  ;;  %2248 = vmatprep.subr.bf16.mxu1 %v6159_v13  ;;  %v1706_v42 = vadd.f32 %v1705_v2, %v1592_v32  ;;  %v1715_v50 = vpop.f32.mrf.mxu1  ;;  %v6163_v13 = vld [vmem:[%s9964_s1 + $0x2e8] ss:$40 sps:$4 sm:$0xff]   ;;  %v5442_v15 = vmul.f32 -1.442695, %v7946_v58  ;;  %v6168_v17 = vld [vmem:[%s9964_s1 + $0x29c] ss:$40 sps:$4 sm:$0xff]  }
 0x158   :  { %v1594_v46 = vpop.f32.mrf.mxu0 }
 0x159   :  { %v5451_v49 = vmul.f32 -1.442695, %v7931_v39  ;;  %2091 = vmatmul.mubr.bf16.gmra.mxu1 %v7538_v12  ;;  %2578 = vmatpush1.bf16.msra.mxu0 %v6205_v22  ;;  %v1708_v47 = vadd.f32 %v1707_v11, %v1594_v46  ;;  %v1717_v60 = vpop.f32.mrf.mxu1  ;;  %v7952_v1 = vadd.f32 %v7925_v27, %v1706_v42 }
 0x15a   :  { %2249 = vmatpush2.bf16.msra.mxu1 %v6157_v35  ;;  %v1596_v55 = vpop.f32.mrf.mxu0  ;;  %2100 = vmatprep.mubr.bf16.mxu1 %v7551_v25 }
 0x15b   :  { %6313 = vpow2.f32 %v5451_v49  ;;  %2250 = vmatprep.subr.bf16.mxu1 %v6162_v30  ;;  %v1719_v5 = vpop.f32.mrf.mxu1  ;;  %v7959_v7 = vadd.f32 %v7873_v38, %v1708_v47  ;;  %v5452_v23 = vmul.f32 -1.442695, %v7952_v1  ;;  %v1710_v32 = vadd.f32 %v1709_v20, %v1596_v55  ;;  %v6166_v20 = vld [vmem:[%s9964_s1 + $0x298] ss:$40 sps:$4 sm:$0xff]   ;;  %v6171_v55 = vld [vmem:[%s9964_s1 + $0x254] ss:$40 sps:$4 sm:$0xff]  }
 0x15c   :  { %v1600_v2 = vpop.f32.mrf.mxu0  ;;  %5417 = vmatmul.mubr.msk.bf16.gmra.mxu0 %vm1521_vm0, %v7445_v9  ;;  %6315 = vpow2.f32 %v5432_v6 }
 0x15d   :  { %v1714_v3 = vadd.f32 %v1713_v40, %v1600_v2  ;;  %2399 = vmatprep.mubr.bf16.mxu0 %v9975_v14  ;;  %v1723_v16 = vpop.f32.mrf.mxu1  ;;  %v5461_v42 = vmul.f32 -1.442695, %v7959_v7  ;;  %6317 = vpow2.f32 %v5442_v15 }
 0x15e   :  { %2251 = vmatpush2.bf16.msra.mxu1 %v6160_v57  ;;  %v1602_v11 = vpop.f32.mrf.mxu0  ;;  %6319 = vpow2.f32 %v5452_v23  ;;  %v6169_v23 = vld [vmem:[%s9964_s1 + $0x250] ss:$40 sps:$4 sm:$0xff]  }
 0x15f   :  { %2252 = vmatprep.subr.bf16.mxu1 %v6165_v62  ;;  %v7970_v35 = vadd.f32 %v7873_v38, %v1714_v3  ;;  %v1725_v30 = vpop.f32.mrf.mxu1  ;;  %v1716_v46 = vadd.f32 %v1715_v50, %v1602_v11  ;;  %v7982_v62 = vadd.f32 %v7925_v27, %v1710_v32 }
 0x160   :  { %v6310_v22 = vpop.eup %6309  ;;  %v1604_v37 = vpop.f32.mrf.mxu0 }
 0x161   :  { %v3048_v40 = vadd.f32 1.0, %v6310_v22  ;;  %2101 = vmatmul.mubr.bf16.gmra.mxu1 %v7556_v28  ;;  %v1718_v49 = vadd.f32 %v1717_v60, %v1604_v37  ;;  %v5471_v50 = vmul.f32 -1.442695, %v7970_v35  ;;  %v1727_v3 = vpop.f32.mrf.mxu1  ;;  %v7992_v15 = vadd.f32 %v7925_v27, %v1716_v46 }
 0x162   :  { %2253 = vmatpush2.bf16.msra.mxu1 %v6163_v13  ;;  %v1606_v47 = vpop.f32.mrf.mxu0  ;;  %2256 = vmatprep.mubr.bf16.mxu1 %v7394_v45  ;;  %v5462_v37 = vmul.f32 -1.442695, %v7982_v62 }
 0x163   :  { %2254 = vmatprep.subr.bf16.mxu1 %v6168_v17  ;;  %v7986_v60 = vadd.f32 %v7873_v38, %v1718_v49  ;;  %6321 = vrcp.f32 %v3048_v40  ;;  %v1720_v11 = vadd.f32 %v1719_v5, %v1606_v47  ;;  %v6177_v5 = vld [vmem:[%s9964_s1 + $0x204] ss:$40 sps:$4 sm:$0xff]   ;;  %v1729_v46 = vpop.f32.mrf.mxu1 }
 0x164   :  { %v6312_v57 = vpop.eup %6311  ;;  %v1610_v2 = vpop.f32.mrf.mxu0  ;;  %5418 = vmatmul.mubr.msk.bf16.gmra.mxu0 %vm1521_vm0, %v7471_v26  ;;  %6323 = vpow2.f32 %v5461_v42 }
 0x165   :  { %v3058_v6 = vadd.f32 1.0, %v6312_v57  ;;  %v1724_v13 = vadd.f32 %v1723_v16, %v1610_v2  ;;  %2409 = vmatprep.mubr.bf16.mxu0 %v9975_v14  ;;  %v5481_v17 = vmul.f32 -1.442695, %v7986_v60  ;;  %v8006_v47 = vadd.f32 %v7925_v27, %v1720_v11  ;;  %v6180_v11 = vld [vmem:[%s9964_s1 + $0x1b4] ss:$40 sps:$4 sm:$0xff]  }
 0x166   :  { %2255 = vmatpush2.bf16.msra.mxu1 %v6166_v20  ;;  %v1612_v22 = vpop.f32.mrf.mxu0 }
 0x167   :  { %6325 = vrcp.f32 %v3058_v6  ;;  %v7999_v32 = vadd.f32 %v7873_v38, %v1724_v13  ;;  %2450 = vmatprep.subr.bf16.mxu1 %v6171_v55  ;;  %v1726_v40 = vadd.f32 %v1725_v30, %v1612_v22  ;;  %v5472_v55 = vmul.f32 -1.442695, %v7992_v15  ;;  %v6175_v30 = vld [vmem:[%s9964_s1 + $0x200] ss:$40 sps:$4 sm:$0xff]  }
 0x168   :  { %v6314_v16 = vpop.eup %6313  ;;  %6327 = vpow2.f32 %v5471_v50  ;;  %v1614_v42 = vpop.f32.mrf.mxu0 }
 0x169   :  { %v3068_v49 = vadd.f32 1.0, %v6314_v16  ;;  %v5491_v20 = vmul.f32 -1.442695, %v7999_v32  ;;  %v1728_v57 = vadd.f32 %v1727_v3, %v1614_v42  ;;  %2257 = vmatmul.mubr.bf16.vlgmr.msra.gmra.mxu1 %v7392_v44  ;;  %6329 = vpow2.f32 %v5481_v17  ;;  %v6178_v16 = vld [vmem:[%s9964_s1 + $0x1b0] ss:$40 sps:$4 sm:$0xff]  }
 0x16a   :  { %2451 = vmatpush1.bf16.msra.mxu1 %v6169_v23  ;;  %v1616_v2 = vpop.f32.mrf.mxu0  ;;  %2266 = vmatprep.mubr.bf16.mxu1 %v7429_v0  ;;  %v8016_v50 = vadd.f32 %v7925_v27, %v1726_v40  ;;  %v5482_v17 = vmul.f32 -1.442695, %v8006_v47  ;;  %v6183_v42 = vld [vmem:[%s9964_s1 + $0x164] ss:$40 sps:$4 sm:$0xff]  }
 0x16b   :  { %6331 = vrcp.f32 %v3068_v49  ;;  %v8019_v6 = vadd.f32 %v7873_v38, %v1728_v57  ;;  %v1730_v3 = vadd.f32 %v1729_v46, %v1616_v2  ;;  %2452 = vmatprep.subr.bf16.mxu1 %v6177_v5 }
 0x16c   :  { %6333 = vpow2.f32 %v5462_v37  ;;  %v8024_v13 = vpop.f32.mrf.mxu0  ;;  %5419 = vmatmul.mubr.msk.bf16.gmra.mxu0 %vm1521_vm0, %v7561_v31  ;;  %v6316_v37 = vpop.eup %6315  ;;  %v5492_v40 = vmul.f32 -1.442695, %v8016_v50 }
 0x16d   :  { %6335 = vpow2.f32 %v5491_v20  ;;  %v5501_v22 = vmul.f32 -1.442695, %v8019_v6  ;;  %v8031_v23 = vadd.f32 %v7925_v27, %v1730_v3  ;;  %2419 = vmatprep.mubr.bf16.mxu0 %v9975_v14  ;;  %v6318_v46 = vpop.eup %6317 }
 0x16e   :  { %6337 = vpow2.f32 %v5472_v55  ;;  %2453 = vmatpush1.bf16.msra.mxu1 %v6175_v30  ;;  %v8034_v5 = vpop.f32.mrf.mxu0  ;;  %v6320_v20 = vpop.eup %6319  ;;  %v6181_v30 = vld [vmem:[%s9964_s1 + $0x160] ss:$40 sps:$4 sm:$0xff]  }
 0x16f   :  { %2454 = vmatprep.subr.bf16.mxu1 %v6180_v11  ;;  %6339 = vpow2.f32 %v5501_v22  ;;  %v5502_v57 = vmul.f32 -1.442695, %v8031_v23  ;;  %v6186_v11 = vld [vmem:[%s9964_s1 + $0x114] ss:$40 sps:$4 sm:$0xff]  }
 0x170   :  { %v8043_v49 = vpop.f32.mrf.mxu0  ;;  %6341 = vpow2.f32 %v5482_v17  ;;  %v6322_v55 = vpop.eup %6321 }
 0x171   :  { %2267 = vmatmul.mubr.bf16.gmra.mxu1 %v7427_v63  ;;  %v6324_v3 = vpop.eup %6323  ;;  %6343 = vpow2.f32 %v5492_v40  ;;  %v3288_v4 = vmul.f32 %v6322_v55, %v7888_v53  ;;  %v3049_v40 = vadd.f32 1.0, %v6316_v37  ;;  %v6192_v53 = vld [vmem:[%s9964_s1 + $0xc4] ss:$40 sps:$4 sm:$0xff]  }
 0x172   :  { %2455 = vmatpush1.bf16.msra.mxu1 %v6178_v16  ;;  %v8047_v2 = vpop.f32.mrf.mxu0  ;;  %2276 = vmatprep.mubr.bf16.mxu1 %v7461_v19  ;;  %6345 = vpow2.f32 %v5502_v57  ;;  %v6184_v19 = vld [vmem:[%s9964_s1 + $0x110] ss:$40 sps:$4 sm:$0xff]   ;;  %v3078_v0 = vadd.f32 1.0, %v6324_v3  ;;  %v3059_v57 = vadd.f32 1.0, %v6318_v46 }
 0x173   :  { %2456 = vmatprep.subr.bf16.mxu1 %v6183_v42  ;;  %6347 = vrcp.f32 %v3049_v40 }
 0x174   :  { %v6326_v17 = vpop.eup %6325  ;;  %v8056_v22 = vpop.f32.mrf.mxu0  ;;  %5420 = vmatmul.mubr.msk.bf16.gmra.mxu0 %vm1521_vm0, %v7581_v41  ;;  %v3069_v41 = vadd.f32 1.0, %v6320_v20  ;;  %6349 = vrcp.f32 %v3078_v0 }
 0x175   :  { %v6328_v16 = vpop.eup %6327  ;;  %v3298_v24 = vmul.f32 %v6326_v17, %v7910_v10  ;;  %2429 = vmatprep.mubr.bf16.mxu0 %v9975_v14  ;;  %6351 = vrcp.f32 %v3059_v57 }
 0x176   :  { %2457 = vmatpush1.bf16.msra.mxu1 %v6181_v30  ;;  %v8063_v42 = vpop.f32.mrf.mxu0  ;;  %v6330_v63 = vpop.eup %6329  ;;  %v3088_v17 = vadd.f32 1.0, %v6328_v16 }
 0x177   :  { %v3368_v31 = vadd.f32 %v3298_v24, %v3288_v4  ;;  %2458 = vmatprep.subr.bf16.mxu1 %v6186_v11  ;;  %v6190_v4 = vld [vmem:[%s9964_s1 + $0xc0] ss:$40 sps:$4 sm:$0xff]   ;;  %v6195_v11 = vld [vmem:[%s9964_s1 + $0x74] ss:$40 sps:$4 sm:$0xff]  }
 0x178   :  { %v6332_v10 = vpop.eup %6331  ;;  %v8071_v55 = vpop.f32.mrf.mxu0  ;;  %6353 = vrcp.f32 %v3088_v17 }
 0x179   :  { %v6334_v37 = vpop.eup %6333  ;;  %v3308_v30 = vmul.f32 %v6332_v10, %v7931_v39  ;;  %2277 = vmatmul.mubr.bf16.gmra.mxu1 %v7459_v18  ;;  %v3098_v39 = vadd.f32 1.0, %v6330_v63  ;;  %v10015_v10 = vmov 0   ;;  %6355 = vrcp.f32 %v3069_v41 }
 0x17a   :  { %v6336_v14 = vpop.eup %6335  ;;  %2459 = vmatpush1.bf16.msra.mxu1 %v6184_v19  ;;  %v8075_v24 = vpop.f32.mrf.mxu0  ;;  %2286 = vmatprep.mubr.bf16.mxu1 %v7484_v34  ;;  %v3079_v19 = vadd.f32 1.0, %v6334_v37  ;;  %v6198_v37 = vld [vmem:[%s9964_s1 + $0x24] ss:$40 sps:$4 sm:$0xff]  }
 0x17b   :  { %v6338_v46 = vpop.eup %6337  ;;  %v8081_v3 = vadd.f32 %v3368_v31, %v3308_v30  ;;  %2460 = vmatprep.subr.bf16.mxu1 %v6192_v53  ;;  %v3108_v40 = vadd.f32 1.0, %v6336_v14  ;;  %v6193_v53 = vld [vmem:[%s9964_s1 + $0x70] ss:$40 sps:$4 sm:$0xff]   ;;  %6357 = vrcp.f32 %v3098_v39 }
 0x17c   :  { %v8086_v20 = vpop.f32.mrf.mxu0  ;;  %5421 = vmatmul.mubr.msk.bf16.gmra.mxu0 %vm1521_vm0, %v7601_v52  ;;  %v6340_v16 = vpop.eup %6339  ;;  %v3089_v63 = vadd.f32 1.0, %v6338_v46  ;;  %6359 = vrcp.f32 %v3079_v19  ;;  %v6196_v46 = vld [vmem:[%s9964_s1 + $0x20] ss:$40 sps:$4 sm:$0xff]  }
 0x17d   :  { %2439 = vmatprep.mubr.bf16.mxu0 %v10015_v10  ;;  %v6342_v31 = vpop.eup %6341  ;;  %v3118_v57 = vadd.f32 1.0, %v6340_v16  ;;  %6361 = vrcp.f32 %v3108_v40 }
 0x17e   :  { %2461 = vmatpush1.bf16.msra.mxu1 %v6190_v4  ;;  %v8091_v0 = vpop.f32.mrf.mxu0  ;;  %v6344_v14 = vpop.eup %6343  ;;  %v3099_v41 = vadd.f32 1.0, %v6342_v31  ;;  %6363 = vrcp.f32 %v3089_v63  ;;  %v6202_v31 = vld [vmem:[%s9964_s1 + $0x4d0] ss:$40 sps:$4 sm:$0xff]  }
 0x17f   :  { %2462 = vmatprep.subr.bf16.mxu1 %v6195_v11  ;;  %v6346_v17 = vpop.eup %6345  ;;  %v3109_v39 = vadd.f32 1.0, %v6344_v14  ;;  %6365 = vrcp.f32 %v3118_v57  ;;  %v6204_v11 = vld [vmem:[%s9964_s1 + $0x4d4] ss:$40 sps:$4 sm:$0xff]  }
 0x180   :  { %v8099_v30 = vpop.f32.mrf.mxu0  ;;  %6367 = vrcp.f32 %v3099_v41  ;;  %v3119_v16 = vadd.f32 1.0, %v6346_v17  ;;  %v6348_v63 = vpop.eup %6347 }
 0x181   :  { %2287 = vmatmul.mubr.bf16.gmra.mxu1 %v7482_v33  ;;  %6369 = vrcp.f32 %v3109_v39  ;;  %v6350_v57 = vpop.eup %6349  ;;  %v6208_v39 = vld [vmem:[%s9964_s1 + $0x480] ss:$40 sps:$4 sm:$0xff]   ;;  %v3289_v34 = vmul.f32 %v6348_v63, %v7939_v51  ;;  %v6216_v63 = vld [vmem:[%s9964_s1 + $0x3e4] ss:$40 sps:$4 sm:$0xff]  }
 0x182   :  { %2463 = vmatpush1.bf16.msra.mxu1 %v6193_v53  ;;  %v8102_v4 = vpop.f32.mrf.mxu0  ;;  %2296 = vmatprep.mubr.bf16.mxu1 %v7494_v43  ;;  %v6210_v53 = vld [vmem:[%s9964_s1 + $0x484] ss:$40 sps:$4 sm:$0xff]   ;;  %v6352_v14 = vpop.eup %6351  ;;  %6371 = vrcp.f32 %v3119_v16  ;;  %v3318_v43 = vmul.f32 %v6350_v57, %v7959_v7  ;;  %v6213_v16 = vld [vmem:[%s9964_s1 + $0x434] ss:$40 sps:$4 sm:$0xff]  }
 0x183   :  { %2464 = vmatprep.subr.bf16.mxu1 %v6198_v37 }
 0x184   :  { %v8111_v19 = vpop.f32.mrf.mxu0  ;;  %5422 = vmatmul.mubr.msk.bf16.gmra.mxu0 %vm1521_vm0, %v7609_v56 }
 0x185   :  { %2595 = vmatprep.mubr.bf16.mxu0 %v10015_v10  ;;  %v6354_v17 = vpop.eup %6353 }
 0x186   :  { %2465 = vmatpush1.bf16.msra.mxu1 %v6196_v46  ;;  %v8116_v40 = vpop.f32.mrf.mxu0 }
 0x187   :  { %2466 = vmatprep.subr.bf16.mxu1 %v6204_v11  ;;  %v6356_v11 = vpop.eup %6355 }
 0x188   :  { %v8124_v37 = vpop.f32.mrf.mxu0 }
 0x189   :  { %v1733_v41 = vpop.f32.mrf.mxu1  ;;  %2297 = vmatmul.mubr.bf16.gmra.mxu1 %v7502_v48  ;;  %v6358_v48 = vpop.eup %6357 }
 0x18a   :  { %v1734_v46 = vadd.f32 %v1733_v41, %v8024_v13  ;;  %2467 = vmatpush2.bf16.msra.mxu1 %v6202_v31  ;;  %v8128_v56 = vpop.f32.mrf.mxu0  ;;  %2306 = vmatprep.mubr.bf16.mxu1 %v7515_v59  ;;  %v3299_v13 = vmul.f32 %v6352_v14, %v7946_v58  ;;  %v6360_v7 = vpop.eup %6359  ;;  %v3309_v58 = vmul.f32 %v6356_v11, %v7952_v1 }
 0x18b   :  { %v1735_v33 = vpop.f32.mrf.mxu1  ;;  %2468 = vmatprep.subr.bf16.mxu1 %v6210_v53  ;;  %v3328_v53 = vmul.f32 %v6354_v17, %v7970_v35  ;;  %v6362_v52 = vpop.eup %6361  ;;  %v3370_v17 = vadd.f32 %v8081_v3, %v3318_v43 }
 0x18c   :  { %v8140_v31 = vadd.f32 %v7873_v38, %v1734_v46  ;;  %v1736_v41 = vadd.f32 %v1735_v33, %v8034_v5  ;;  %v8143_v59 = vpop.f32.mrf.mxu0  ;;  %5423 = vmatmul.mubr.msk.bf16.vlgmr.msra.gmra.mxu0 %vm1521_vm0, %v7378_v36  ;;  %v6211_v36 = vld [vmem:[%s9964_s1 + $0x430] ss:$40 sps:$4 sm:$0xff]   ;;  %v6364_v35 = vpop.eup %6363  ;;  %v3338_v46 = vmul.f32 %v6358_v48, %v7986_v60  ;;  %v3381_v11 = vadd.f32 %v3299_v13, %v3289_v34 }
 0x18d   :  { %v1737_v57 = vpop.f32.mrf.mxu1  ;;  %2605 = vmatprep.mubr.bf16.mxu0 %v10015_v10  ;;  %v3371_v43 = vadd.f32 %v3370_v17, %v3328_v53  ;;  %v3348_v48 = vmul.f32 %v6362_v52, %v7999_v32  ;;  %v6214_v52 = vld [vmem:[%s9964_s1 + $0x3e0] ss:$40 sps:$4 sm:$0xff]  }
 0x18e   :  { %10016 = vst [vmem:[#allocation20_spill] sm:$0xff] %v8140_v31  ;;  %v5511_v14 = vmul.f32 -1.442695, %v8140_v31  ;;  %v8153_v33 = vadd.f32 %v7925_v27, %v1736_v41  ;;  %2469 = vmatpush2.bf16.msra.mxu1 %v6208_v39  ;;  %v8155_v5 = vpop.f32.mrf.mxu0  ;;  %v1738_v51 = vadd.f32 %v1737_v57, %v8043_v49  ;;  %v6366_v39 = vpop.eup %6365  ;;  %v3319_v41 = vmul.f32 %v6360_v7, %v7982_v62 }
 0x18f   :  { %v1739_v1 = vpop.f32.mrf.mxu1  ;;  %2470 = vmatprep.subr.bf16.mxu1 %v6213_v16  ;;  %v6368_v16 = vpop.eup %6367  ;;  %v3382_v34 = vadd.f32 %v3381_v11, %v3309_v58  ;;  %v3329_v62 = vmul.f32 %v6364_v35, %v7992_v15  ;;  %v3372_v32 = vadd.f32 %v3371_v43, %v3338_v46  ;;  %v6219_v15 = vld [vmem:[%s9964_s1 + $0x394] ss:$40 sps:$4 sm:$0xff]  }
 0x190   :  { %6373 = vpow2.f32 %v5511_v14  ;;  %v5512_v18 = vmul.f32 -1.442695, %v8153_v33  ;;  %v8168_v31 = vpop.f32.mrf.mxu0  ;;  %v8172_v60 = vadd.f32 %v7873_v38, %v1738_v51  ;;  %v1740_v49 = vadd.f32 %v1739_v1, %v8047_v2 }
 0x191   :  { %v1743_v3 = vpop.f32.mrf.mxu1  ;;  %2307 = vmatmul.mubr.bf16.gmra.mxu1 %v7520_v61  ;;  %v3358_v2 = vmul.f32 %v6366_v39, %v8019_v6  ;;  %v3383_v58 = vadd.f32 %v3382_v34, %v3319_v41  ;;  %v3339_v6 = vmul.f32 %v6368_v16, %v8006_v47  ;;  %v3373_v17 = vadd.f32 %v3372_v32, %v3348_v48 }
 0x192   :  { %6375 = vpow2.f32 %v5512_v18  ;;  %v1744_v13 = vadd.f32 %v1743_v3, %v8056_v22  ;;  %2471 = vmatpush2.bf16.msra.mxu1 %v6211_v36  ;;  %v8178_v7 = vpop.f32.mrf.mxu0  ;;  %2316 = vmatprep.mubr.bf16.mxu1 %v7530_v8  ;;  %v5521_v53 = vmul.f32 -1.442695, %v8172_v60  ;;  %v8187_v57 = vadd.f32 %v7925_v27, %v1740_v49  ;;  %v6370_v22 = vpop.eup %6369  ;;  %v6222_v49 = vld [vmem:[%s9964_s1 + $0x344] ss:$40 sps:$4 sm:$0xff]  }
 0x193   :  { %v1745_v18 = vpop.f32.mrf.mxu1  ;;  %2472 = vmatprep.subr.bf16.mxu1 %v6216_v63  ;;  %v6372_v1 = vpop.eup %6371  ;;  %v3384_v63 = vadd.f32 %v3383_v58, %v3329_v62  ;;  %v3349_v47 = vmul.f32 %v6370_v22, %v8016_v50  ;;  %v3374_v41 = vadd.f32 %v3373_v17, %v3358_v2 }
 0x194   :  { %v8193_v14 = vadd.f32 %v7873_v38, %v1744_v13  ;;  %v1746_v36 = vadd.f32 %v1745_v18, %v8063_v42  ;;  %v8196_v35 = vpop.f32.mrf.mxu0  ;;  %5424 = vmatmul.mubr.msk.bf16.gmra.mxu0 %vm1521_vm0, %v7410_v54  ;;  %6377 = vpow2.f32 %v5521_v53  ;;  %v5522_v46 = vmul.f32 -1.442695, %v8187_v57  ;;  %v6217_v54 = vld [vmem:[%s9964_s1 + $0x390] ss:$40 sps:$4 sm:$0xff]  }
 0x195   :  { %v1747_v51 = vpop.f32.mrf.mxu1  ;;  %2615 = vmatprep.mubr.bf16.mxu0 %v10015_v10  ;;  %v3385_v34 = vadd.f32 %v3384_v63, %v3339_v6  ;;  %v3359_v62 = vmul.f32 %v6372_v1, %v8031_v23  ;;  %v6220_v23 = vld [vmem:[%s9964_s1 + $0x340] ss:$40 sps:$4 sm:$0xff]   ;;  %v3375_v53 = vrot.slane %v3374_v41, 4 }
 0x196   :  { %v5531_v39 = vmul.f32 -1.442695, %v8193_v14  ;;  %v8205_v42 = vadd.f32 %v7925_v27, %v1746_v36  ;;  %2473 = vmatpush2.bf16.msra.mxu1 %v6214_v52  ;;  %v8207_v11 = vpop.f32.mrf.mxu0  ;;  %6379 = vpow2.f32 %v5522_v46  ;;  %v1748_v43 = vadd.f32 %v1747_v51, %v8071_v55 }
 0x197   :  { %v1749_v48 = vpop.f32.mrf.mxu1  ;;  %2474 = vmatprep.subr.bf16.mxu1 %v6219_v15  ;;  %v3386_v2 = vadd.f32 %v3385_v34, %v3349_v47 }
 0x198   :  { %6381 = vpow2.f32 %v5531_v39  ;;  %v5532_v3 = vmul.f32 -1.442695, %v8205_v42  ;;  %v8218_v16 = vpop.f32.mrf.mxu0  ;;  %v8222_v50 = vadd.f32 %v7873_v38, %v1748_v43  ;;  %v1750_v13 = vadd.f32 %v1749_v48, %v8075_v24 }
 0x199   :  { %v1753_v55 = vpop.f32.mrf.mxu1  ;;  %2317 = vmatmul.mubr.bf16.gmra.mxu1 %v7538_v12  ;;  %v8248_v17 = vadd.f32 %v3386_v2, %v3359_v62  ;;  %v3376_v43 = vadd.f32 %v3375_v53, %v3374_v41 }
 0x19a   :  { %6383 = vpow2.f32 %v5532_v3  ;;  %v1754_v52 = vadd.f32 %v1753_v55, %v8086_v20  ;;  %2475 = vmatpush2.bf16.msra.mxu1 %v6217_v54  ;;  %v8227_v32 = vpop.f32.mrf.mxu0  ;;  %2326 = vmatprep.mubr.bf16.mxu1 %v7551_v25  ;;  %v5541_v18 = vmul.f32 -1.442695, %v8222_v50  ;;  %v8235_v24 = vadd.f32 %v7925_v27, %v1750_v13  ;;  %v6225_v20 = vld [vmem:[%s9964_s1 + $0x2f4] ss:$40 sps:$4 sm:$0xff]  }
 0x19b   :  { %v1755_v15 = vpop.f32.mrf.mxu1  ;;  %2476 = vmatprep.subr.bf16.mxu1 %v6222_v49  ;;  %v6228_v49 = vld [vmem:[%s9964_s1 + $0x2a4] ss:$40 sps:$4 sm:$0xff]   ;;  %v2688_v55 = vsub.s32 2, %v7842_v21 }
 0x19c   :  { %v8241_v22 = vadd.f32 %v7873_v38, %v1754_v52  ;;  %v1756_v58 = vadd.f32 %v1755_v15, %v8091_v0  ;;  %v8244_v36 = vpop.f32.mrf.mxu0  ;;  %5425 = vmatmul.mubr.msk.bf16.gmra.mxu0 %vm1521_vm0, %v7445_v9  ;;  %6385 = vpow2.f32 %v5541_v18  ;;  %v5542_v46 = vmul.f32 -1.442695, %v8235_v24  ;;  %v6223_v9 = vld [vmem:[%s9964_s1 + $0x2f0] ss:$40 sps:$4 sm:$0xff]  }
 0x19d   :  { %v6374_v6 = vpop.eup %6373  ;;  %v1757_v51 = vpop.f32.mrf.mxu1  ;;  %2625 = vmatprep.mubr.bf16.mxu0 %v10015_v10  ;;  %v3377_v15 = vrot.slane %v3376_v43, 2 }
 0x19e   :  { %v3818_v1 = vadd.f32 1.0, %v6374_v6  ;;  %v5551_v63 = vmul.f32 -1.442695, %v8241_v22  ;;  %v8254_v39 = vadd.f32 %v7925_v27, %v1756_v58  ;;  %v1758_v0 = vadd.f32 %v1757_v51, %v8099_v30  ;;  %2477 = vmatpush2.bf16.msra.mxu1 %v6220_v23  ;;  %v8257_v54 = vpop.f32.mrf.mxu0 }
 0x19f   :  { %v6376_v47 = vpop.eup %6375  ;;  %6387 = vpow2.f32 %v5542_v46  ;;  %v1759_v48 = vpop.f32.mrf.mxu1  ;;  %2478 = vmatprep.subr.bf16.mxu1 %v6225_v20  ;;  %v3388_v23 = vrot.slane %v8248_v17, 4 }
 0x1a0   :  { %6389 = vrcp.f32 %v3818_v1  ;;  %v3819_v3 = vadd.f32 1.0, %v6376_v47  ;;  %v5552_v30 = vmul.f32 -1.442695, %v8254_v39  ;;  %v8267_v34 = vadd.f32 %v7873_v38, %v1758_v0  ;;  %v8269_v62 = vpop.f32.mrf.mxu0 }
 0x1a1   :  { %6391 = vpow2.f32 %v5551_v63  ;;  %v1760_v13 = vadd.f32 %v1759_v48, %v8102_v4  ;;  %v1763_v41 = vpop.f32.mrf.mxu1  ;;  %2327 = vmatmul.mubr.bf16.gmra.mxu1 %v7556_v28  ;;  %v6378_v52 = vpop.eup %6377  ;;  %v6226_v4 = vld [vmem:[%s9964_s1 + $0x2a0] ss:$40 sps:$4 sm:$0xff]   ;;  %v2692_v48 = vsub.s32 3, %v7842_v21 }
 0x1a2   :  { %6393 = vrcp.f32 %v3819_v3  ;;  %v5561_v2 = vmul.f32 -1.442695, %v8267_v34  ;;  %v1764_v53 = vadd.f32 %v1763_v41, %v8111_v19  ;;  %2479 = vmatpush2.bf16.msra.mxu1 %v6223_v9  ;;  %v8277_v18 = vpop.f32.mrf.mxu0  ;;  %2482 = vmatprep.mubr.bf16.mxu1 %v7394_v45  ;;  %v3828_v20 = vadd.f32 1.0, %v6378_v52  ;;  %v6229_v19 = vld [vmem:[%s9966_s3 + $0x78] sm:$0xff]  }
 0x1a3   :  { %6395 = vpow2.f32 %v5552_v30  ;;  %v8284_v58 = vadd.f32 %v7925_v27, %v1760_v13  ;;  %v1765_v6 = vpop.f32.mrf.mxu1  ;;  %2480 = vmatprep.subr.bf16.mxu1 %v6228_v49  ;;  %v6380_v46 = vpop.eup %6379  ;;  %v6230_v13 = vld [vmem:[%s9966_s3 + $0x38] sm:$0xff]   ;;  %v8312_v52 = vadd.f32 %v3377_v15, %v3376_v43  ;;  %v8328_v15 = vrot.slane %v7857_v29, %v2692_v48 }
 0x1a4   :  { %6397 = vpow2.f32 %v5561_v2  ;;  %v8290_v45 = vadd.f32 %v7873_v38, %v1764_v53  ;;  %v1766_v51 = vadd.f32 %v1765_v6, %v8116_v40  ;;  %v8293_v1 = vpop.f32.mrf.mxu0  ;;  %5426 = vmatmul.mubr.msk.bf16.gmra.mxu0 %vm1521_vm0, %v7471_v26  ;;  %v3829_v0 = vadd.f32 1.0, %v6380_v46 }
 0x1a5   :  { %v6382_v63 = vpop.eup %6381  ;;  %6399 = vrcp.f32 %v3828_v20  ;;  %v5562_v9 = vmul.f32 -1.442695, %v8284_v58  ;;  %v1767_v47 = vpop.f32.mrf.mxu1  ;;  %2635 = vmatprep.mubr.bf16.mxu0 %v10015_v10  ;;  %v8307_v26 = vrot.slane %v7857_v29, %v2688_v55  ;;  %v3389_v2 = vadd.f32 %v3388_v23, %v8248_v17 }
 0x1a6   :  { %v3838_v49 = vadd.f32 1.0, %v6382_v63  ;;  %v8301_v3 = vadd.f32 %v7925_v27, %v1766_v51  ;;  %v1768_v40 = vadd.f32 %v1767_v47, %v8124_v37  ;;  %2481 = vmatpush2.bf16.msra.mxu1 %v6226_v4  ;;  %v8304_v30 = vpop.f32.mrf.mxu0  ;;  %6401 = vrcp.f32 %v3829_v0  ;;  %v6231_v37 = vld [vmem:[%s9966_s3 + $0x70] sm:$0xff]  }
 0x1a7   :  { %v6384_v41 = vpop.eup %6383  ;;  %v5571_v53 = vmul.f32 -1.442695, %v8290_v45  ;;  %v1769_v20 = vpop.f32.mrf.mxu1  ;;  %5672 = vmatprep.subr.bf16.mxu1 %v6229_v19  ;;  %v2696_v19 = vsub.s32 4, %v7842_v21  ;;  %v10017_v0 = vld [vmem:[#allocation6_spill] sm:$0xff]  ;;  %v3390_v29 = vrot.slane %v3389_v2, 2 }
 0x1a8   :  { %6403 = vrcp.f32 %v3838_v49  ;;  %v3839_v55 = vadd.f32 1.0, %v6384_v41  ;;  %v5572_v4 = vmul.f32 -1.442695, %v8301_v3  ;;  %v8321_v6 = vadd.f32 %v7873_v38, %v1768_v40  ;;  %v8323_v43 = vpop.f32.mrf.mxu0 }
 0x1a9   :  { %6405 = vpow2.f32 %v5562_v9  ;;  %v1770_v17 = vadd.f32 %v1769_v20, %v8128_v56  ;;  %v1806_v23 = vpop.f32.mrf.mxu1  ;;  %2483 = vmatmul.mubr.bf16.vlgmr.msra.gmra.mxu1 %v7392_v44  ;;  %v6386_v46 = vpop.eup %6385  ;;  %v6232_v44 = vld [vmem:[%s9966_s3 + $0x30] sm:$0xff]   ;;  %v2700_v56 = vsub.s32 5, %v7842_v21  ;;  %v3379_v40 = vrot.slane %v8312_v52, 1 }
 0x1aa   :  { %6407 = vrcp.f32 %v3839_v55  ;;  %v5581_v51 = vmul.f32 -1.442695, %v8321_v6  ;;  %v1920_v38 = vadd.f32 %v8143_v59, %v1806_v23  ;;  %v8333_v63 = vpop.f32.mrf.mxu0  ;;  %2492 = vmatprep.mubr.bf16.mxu1 %v10017_v0  ;;  %5673 = vmatpush3.bf16.msra.mxu1 %v6230_v13  ;;  %v3848_v9 = vadd.f32 1.0, %v6386_v46  ;;  %v6233_v59 = vld [vmem:[%s9966_s3 + $0x68] sm:$0xff]   ;;  %v6949_v0 = vld [vmem:[%s9965_s2] sm:$0xff] }
 0x1ab   :  { %6409 = vpow2.f32 %v5571_v53  ;;  %v8341_v47 = vadd.f32 %v7925_v27, %v1770_v17  ;;  %v1808_v48 = vpop.f32.mrf.mxu1  ;;  %5674 = vmatprep.subr.bf16.mxu1 %v6231_v37  ;;  %v10018_v53 = vld [vmem:[#allocation15_spill] sm:$0xff]  ;;  %v8378_v28 = vadd.f32 %v3379_v40, %v8312_v52 }
 0x1ac   :  { %v6388_v49 = vpop.eup %6387  ;;  %6411 = vpow2.f32 %v5572_v4  ;;  %v8348_v13 = vadd.f32 %v8307_v26, %v1920_v38  ;;  %v1922_v41 = vadd.f32 %v8155_v5, %v1808_v48  ;;  %v8351_v20 = vpop.f32.mrf.mxu0  ;;  %5427 = vmatmul.mubr.msk.bf16.gmra.mxu0 %vm1521_vm0, %v10018_v53  ;;  %v6234_v38 = vld [vmem:[%s9966_s3 + $0x28] sm:$0xff]   ;;  %v8375_v53 = vadd.f32 %v3390_v29, %v3389_v2 }
 0x1ad   :  { %v6390_v27 = vpop.eup %6389  ;;  %6413 = vrcp.f32 %v3848_v9  ;;  %v3849_v37 = vadd.f32 1.0, %v6388_v49  ;;  %v5582_v55 = vmul.f32 -1.442695, %v8341_v47  ;;  %v1810_v17 = vpop.f32.mrf.mxu1  ;;  %2645 = vmatprep.mubr.bf16.mxu0 %v10015_v10  ;;  %v8369_v9 = vrot.slane %v6949_v0, %v2696_v19  ;;  %v10021_v29 = vld [vmem:[#allocation5_spill] sm:$0xff] }
 0x1ae   :  { %v6392_v23 = vpop.eup %6391  ;;  %6415 = vpow2.f32 %v5581_v51  ;;  %v5433_v4 = vmul.f32 -1.442695, %v8348_v13  ;;  %v8359_v46 = vadd.f32 %v8328_v15, %v1922_v41  ;;  %v8361_v5 = vpop.f32.mrf.mxu0  ;;  %5675 = vmatpush3.bf16.msra.mxu1 %v6232_v44  ;;  %v1924_v49 = vadd.f32 %v8168_v31, %v1810_v17  ;;  %v6235_v44 = vld [vmem:[%s9966_s3 + $0x60] sm:$0xff]  }
 0x1af   :  { %10019 = vst [vmem:[#allocation6_spill] sm:$0xff] %v8369_v9  ;;  %v6394_v48 = vpop.eup %6393  ;;  %6417 = vrcp.f32 %v3849_v37  ;;  %v3858_v51 = vadd.f32 1.0, %v6392_v23  ;;  %v1812_v41 = vpop.f32.mrf.mxu1  ;;  %5676 = vmatprep.subr.bf16.mxu1 %v6233_v59  ;;  %v8383_v37 = vrot.slane %v6949_v0, %v2700_v56  ;;  %v10022_v0 = vld [vmem:[#allocation8_spill] sm:$0xff] }
 0x1b0   :  { %v6396_v21 = vpop.eup %6395  ;;  %6419 = vpow2.f32 %v5582_v55  ;;  %v1926_v19 = vadd.f32 %v8178_v7, %v1812_v41  ;;  %v8381_v9 = vpop.f32.mrf.mxu0  ;;  %v5434_v17 = vmul.f32 -1.442695, %v8359_v46  ;;  %v8387_v23 = vadd.f32 %v8307_v26, %v1924_v49 }
 0x1b1   :  { %10020 = vst [vmem:[#allocation15_spill] sm:$0xff] %v8383_v37  ;;  %v6398_v31 = vpop.eup %6397  ;;  %6421 = vrcp.f32 %v3858_v51  ;;  %v3859_v59 = vadd.f32 1.0, %v6396_v21  ;;  %v1816_v2 = vpop.f32.mrf.mxu1  ;;  %2493 = vmatmul.mubr.bf16.gmra.mxu1 %v10021_v29  ;;  %v6236_v21 = vld [vmem:[%s9966_s3 + $0x20] sm:$0xff]  }
 0x1b2   :  { %v6400_v52 = vpop.eup %6399  ;;  %v3868_v40 = vadd.f32 1.0, %v6398_v31  ;;  %6423 = vpow2.f32 %v5433_v4  ;;  %v8391_v7 = vadd.f32 %v8328_v15, %v1926_v19  ;;  %v1930_v56 = vadd.f32 %v8196_v35, %v1816_v2  ;;  %v8394_v55 = vpop.f32.mrf.mxu0  ;;  %2502 = vmatprep.mubr.bf16.mxu1 %v10022_v0  ;;  %5677 = vmatpush3.bf16.msra.mxu1 %v6234_v38  ;;  %v6237_v35 = vld [vmem:[%s9966_s3 + $0x58] sm:$0xff]  }
 0x1b3   :  { %v4068_v51 = vmul.f32 %v6400_v52, %v8172_v60  ;;  %6425 = vrcp.f32 %v3859_v59  ;;  %v5443_v49 = vmul.f32 -1.442695, %v8387_v23  ;;  %v1818_v4 = vpop.f32.mrf.mxu1  ;;  %5678 = vmatprep.subr.bf16.mxu1 %v6235_v44  ;;  %v6402_v19 = vpop.eup %6401  ;;  %v10023_v2 = vld [vmem:[#allocation16_spill] sm:$0xff]  ;;  %v4059_v0 = vmul.f32 %v6394_v48, %v8153_v33 }
 0x1b4   :  { %6427 = vrcp.f32 %v3868_v40  ;;  %v5444_v38 = vmul.f32 -1.442695, %v8391_v7  ;;  %v8408_v31 = vadd.f32 %v8307_v26, %v1930_v56  ;;  %v1932_v60 = vadd.f32 %v8207_v11, %v1818_v4  ;;  %v8411_v59 = vpop.f32.mrf.mxu0  ;;  %5428 = vmatmul.mubr.msk.bf16.gmra.mxu0 %vm1521_vm0, %v10023_v2  ;;  %v10024_v29 = vld [vmem:[#allocation20_spill] sm:$0xff] }
 0x1b5   :  { %v6404_v44 = vpop.eup %6403  ;;  %v4058_v52 = vmul.f32 %v6390_v27, %v10024_v29  ;;  %v4069_v41 = vmul.f32 %v6402_v19, %v8187_v57  ;;  %6429 = vpow2.f32 %v5434_v17  ;;  %v1820_v40 = vpop.f32.mrf.mxu1  ;;  %2655 = vmatprep.mubr.bf16.mxu0 %v10015_v10  ;;  %v6238_v33 = vld [vmem:[%s9966_s3 + $0x18] sm:$0xff]  }
 0x1b6   :  { %v6406_v56 = vpop.eup %6405  ;;  %v4078_v37 = vmul.f32 %v6404_v44, %v8193_v14  ;;  %6431 = vpow2.f32 %v5443_v49  ;;  %v5453_v11 = vmul.f32 -1.442695, %v8408_v31  ;;  %v8422_v4 = vadd.f32 %v8328_v15, %v1932_v60  ;;  %v8424_v2 = vpop.f32.mrf.mxu0  ;;  %5679 = vmatpush3.bf16.msra.mxu1 %v6236_v21  ;;  %v6239_v49 = vld [vmem:[%s9966_s3 + $0x50] sm:$0xff]  }
 0x1b7   :  { %v6408_v57 = vpop.eup %6407  ;;  %v4138_v27 = vadd.f32 %v4068_v51, %v4058_v52  ;;  %v3869_v48 = vadd.f32 1.0, %v6406_v56  ;;  %6433 = vpow2.f32 %v5444_v38  ;;  %v1934_v17 = vadd.f32 %v8218_v16, %v1820_v40  ;;  %v1822_v14 = vpop.f32.mrf.mxu1  ;;  %5680 = vmatprep.subr.bf16.mxu1 %v6237_v35  ;;  %v10025_v40 = vld [vmem:[#allocation7_spill] sm:$0xff] }
 0x1b8   :  { %v6410_v19 = vpop.eup %6409  ;;  %v4151_v60 = vadd.f32 %v4069_v41, %v4059_v0  ;;  %v4079_v21 = vmul.f32 %v6408_v57, %v8205_v42  ;;  %6435 = vpow2.f32 %v5453_v11  ;;  %v5454_v44 = vmul.f32 -1.442695, %v8422_v4  ;;  %v8435_v29 = vpop.f32.mrf.mxu0  ;;  %v10026_v57 = vld [vmem:[#allocation10_spill] sm:$0xff] }
 0x1b9   :  { %v6412_v51 = vpop.eup %6411  ;;  %6437 = vrcp.f32 %v3869_v48  ;;  %v3878_v38 = vadd.f32 1.0, %v6410_v19  ;;  %v8438_v16 = vadd.f32 %v8307_v26, %v1934_v17  ;;  %v1936_v35 = vadd.f32 %v8227_v32, %v1822_v14  ;;  %v1826_v52 = vpop.f32.mrf.mxu1  ;;  %2503 = vmatmul.mubr.bf16.gmra.mxu1 %v10025_v40  ;;  %v6240_v48 = vld [vmem:[%s9966_s3 + $0x10] sm:$0xff]  }
 0x1ba   :  { %v6414_v56 = vpop.eup %6413  ;;  %v4139_v41 = vadd.f32 %v4138_v27, %v4078_v37  ;;  %v3879_v0 = vadd.f32 1.0, %v6412_v51  ;;  %6439 = vpow2.f32 %v5454_v44  ;;  %v1940_v42 = vadd.f32 %v8244_v36, %v1826_v52  ;;  %v8443_v11 = vpop.f32.mrf.mxu0  ;;  %2512 = vmatprep.mubr.bf16.mxu1 %v10026_v57  ;;  %5681 = vmatpush3.bf16.msra.mxu1 %v6238_v33  ;;  %v6241_v36 = vld [vmem:[%s9966_s3 + $0x48] sm:$0xff]  }
 0x1bb   :  { %v6416_v17 = vpop.eup %6415  ;;  %v4088_v32 = vmul.f32 %v6414_v56, %v8222_v50  ;;  %6441 = vrcp.f32 %v3878_v38  ;;  %v5463_v14 = vmul.f32 -1.442695, %v8438_v16  ;;  %v8452_v37 = vadd.f32 %v8328_v15, %v1936_v35  ;;  %v1828_v27 = vpop.f32.mrf.mxu1  ;;  %5682 = vmatprep.subr.bf16.mxu1 %v6239_v49  ;;  %v10027_v38 = vld [vmem:[#allocation17_spill] sm:$0xff] }
 0x1bc   :  { %v6418_v33 = vpop.eup %6417  ;;  %6443 = vrcp.f32 %v3879_v0  ;;  %v3888_v19 = vadd.f32 1.0, %v6416_v17  ;;  %v8458_v44 = vadd.f32 %v8307_v26, %v1940_v42  ;;  %v1942_v50 = vadd.f32 %v8257_v54, %v1828_v27  ;;  %v8461_v51 = vpop.f32.mrf.mxu0  ;;  %5429 = vmatmul.mubr.msk.bf16.gmra.mxu0 %vm1521_vm0, %v10027_v38 }
 0x1bd   :  { %v6420_v35 = vpop.eup %6419  ;;  %v4152_v52 = vadd.f32 %v4151_v60, %v4079_v21  ;;  %v4089_v49 = vmul.f32 %v6418_v33, %v8235_v24  ;;  %6445 = vpow2.f32 %v5463_v14  ;;  %v5464_v40 = vmul.f32 -1.442695, %v8452_v37  ;;  %v1830_v56 = vpop.f32.mrf.mxu1  ;;  %2665 = vmatprep.mubr.bf16.mxu0 %v10015_v10  ;;  %v6242_v24 = vld [vmem:[%s9966_s3 + $0x8] sm:$0xff]   ;;  %v6243_v33 = vld [vmem:[%s9966_s3 + $0x40] sm:$0xff]  }
 0x1be   :  { %v6422_v0 = vpop.eup %6421  ;;  %6447 = vrcp.f32 %v3888_v19  ;;  %v3889_v42 = vadd.f32 1.0, %v6420_v35  ;;  %v5473_v54 = vmul.f32 -1.442695, %v8458_v44  ;;  %v8470_v57 = vadd.f32 %v8328_v15, %v1942_v50  ;;  %v8472_v17 = vpop.f32.mrf.mxu0  ;;  %5683 = vmatpush3.bf16.msra.mxu1 %v6240_v48 }
 0x1bf   :  { %v6424_v60 = vpop.eup %6423  ;;  %v4140_v21 = vadd.f32 %v4139_v41, %v4088_v32  ;;  %v4098_v14 = vmul.f32 %v6422_v0, %v8241_v22  ;;  %6449 = vpow2.f32 %v5464_v40  ;;  %v1944_v10 = vadd.f32 %v8269_v62, %v1830_v56  ;;  %v1832_v27 = vpop.f32.mrf.mxu1  ;;  %5684 = vmatprep.subr.bf16.mxu1 %v6241_v36  ;;  %v10028_v40 = vld [vmem:[#allocation9_spill] sm:$0xff] }
 0x1c0   :  { %v6426_v19 = vpop.eup %6425  ;;  %6451 = vrcp.f32 %v3889_v42  ;;  %v3050_v48 = vadd.f32 1.0, %v6424_v60  ;;  %v5474_v50 = vmul.f32 -1.442695, %v8470_v57  ;;  %v1946_v38 = vadd.f32 %v8277_v18, %v1832_v27  ;;  %v8484_v35 = vpop.f32.mrf.mxu0 }
 0x1c1   :  { %v6428_v41 = vpop.eup %6427  ;;  %v4153_v22 = vadd.f32 %v4152_v52, %v4089_v49  ;;  %v4099_v32 = vmul.f32 %v6426_v19, %v8254_v39  ;;  %6453 = vpow2.f32 %v5473_v54  ;;  %v8488_v62 = vadd.f32 %v8307_v26, %v1944_v10  ;;  %v1836_v36 = vpop.f32.mrf.mxu1  ;;  %2513 = vmatmul.mubr.bf16.gmra.mxu1 %v10028_v40  ;;  %v10029_v52 = vld [vmem:[#allocation11_spill] sm:$0xff]  ;;  %v6244_v39 = vld [vmem:[%s9966_s3] sm:$0xff]  }
 0x1c2   :  { %v6430_v56 = vpop.eup %6429  ;;  %v4108_v0 = vmul.f32 %v6428_v41, %v8267_v34  ;;  %6455 = vrcp.f32 %v3050_v48  ;;  %v8493_v42 = vadd.f32 %v8328_v15, %v1946_v38  ;;  %v1950_v18 = vadd.f32 %v8293_v1, %v1836_v36  ;;  %v8496_v60 = vpop.f32.mrf.mxu0  ;;  %2522 = vmatprep.mubr.bf16.mxu1 %v10029_v52  ;;  %5685 = vmatpush3.bf16.msra.mxu1 %v6242_v24  ;;  %v6245_v1 = vld [vmem:[%s9966_s3 + $0xf8] sm:$0xff]  }
 0x1c3   :  { %v6432_v49 = vpop.eup %6431  ;;  %v4141_v54 = vadd.f32 %v4140_v21, %v4098_v14  ;;  %v3051_v10 = vadd.f32 1.0, %v6430_v56  ;;  %6457 = vpow2.f32 %v5474_v50  ;;  %v1838_v34 = vpop.f32.mrf.mxu1  ;;  %v10030_v27 = vrot.slane %v8375_v53, 1  ;;  %5686 = vmatprep.subr.bf16.mxu1 %v6243_v33  ;;  %v10031_v50 = vld [vmem:[#allocation18_spill] sm:$0xff] }
 0x1c4   :  { %v6434_v24 = vpop.eup %6433  ;;  %v4154_v48 = vadd.f32 %v4153_v22, %v4099_v32  ;;  %v3060_v38 = vadd.f32 1.0, %v6432_v49  ;;  %v5483_v41 = vmul.f32 -1.442695, %v8488_v62  ;;  %v8512_v21 = vadd.f32 %v8307_v26, %v1950_v18  ;;  %v8514_v14 = vpop.f32.mrf.mxu0  ;;  %5430 = vmatmul.mubr.msk.bf16.gmra.mxu0 %vm1521_vm0, %v10031_v50 }
 0x1c5   :  { %v8505_v19 = vadd.f32 %v10030_v27, %v8375_v53  ;;  %v6436_v53 = vpop.eup %6435  ;;  %v4142_v36 = vadd.f32 %v4141_v54, %v4108_v0  ;;  %6459 = vrcp.f32 %v3051_v10  ;;  %v3061_v33 = vadd.f32 1.0, %v6434_v24  ;;  %v1840_v56 = vpop.f32.mrf.mxu1 }
 0x1c6   :  { %v1952_v40 = vadd.f32 %v8304_v30, %v1838_v34  ;;  %v6438_v52 = vpop.eup %6437  ;;  %6461 = vrcp.f32 %v3060_v38  ;;  %v3070_v22 = vadd.f32 1.0, %v6436_v53  ;;  %v5484_v32 = vmul.f32 -1.442695, %v8493_v42  ;;  %v8521_v49 = vpop.f32.mrf.mxu0  ;;  %5687 = vmatpush3.bf16.msra.mxu1 %v6244_v39 }
 0x1c7   :  { %v1954_v18 = vadd.f32 %v8323_v43, %v1840_v56  ;;  %v6440_v27 = vpop.eup %6439  ;;  %v4109_v50 = vmul.f32 %v6438_v52, %v8284_v58  ;;  %6463 = vrcp.f32 %v3061_v33  ;;  %v5493_v0 = vmul.f32 -1.442695, %v8512_v21  ;;  %v1842_v30 = vpop.f32.mrf.mxu1  ;;  %5694 = vmatprep.subr.bf16.mxu1 %v6245_v1  ;;  %v10032_v56 = vld [vmem:[#allocation12_spill] sm:$0xff] }
 0x1c8   :  { %v8526_v54 = vadd.f32 %v8328_v15, %v1952_v40  ;;  %v6442_v10 = vpop.eup %6441  ;;  %6465 = vrcp.f32 %v3070_v22  ;;  %v3071_v34 = vadd.f32 1.0, %v6440_v27  ;;  %v1956_v43 = vadd.f32 %v8333_v63, %v1842_v30  ;;  %v8532_v39 = vpop.f32.mrf.mxu0 }
 0x1c9   :  { %v8529_v24 = vadd.f32 %v8307_v26, %v1954_v18  ;;  %v6444_v38 = vpop.eup %6443  ;;  %v4155_v58 = vadd.f32 %v4154_v48, %v4109_v50  ;;  %v4118_v53 = vmul.f32 %v6442_v10, %v8290_v45  ;;  %6467 = vpow2.f32 %v5483_v41  ;;  %v1846_v40 = vpop.f32.mrf.mxu1  ;;  %2523 = vmatmul.mubr.bf16.gmra.mxu1 %v10032_v56  ;;  %v10034_v48 = vld [vmem:[#allocation13_spill] sm:$0xff] }
 0x1ca   :  { %v5494_v33 = vmul.f32 -1.442695, %v8526_v54  ;;  %v6446_v1 = vpop.eup %6445  ;;  %v4119_v52 = vmul.f32 %v6444_v38, %v8301_v3  ;;  %6469 = vrcp.f32 %v3071_v34  ;;  %v8540_v63 = vadd.f32 %v8328_v15, %v1956_v43  ;;  %v8542_v18 = vpop.f32.mrf.mxu0  ;;  %2532 = vmatprep.mubr.bf16.mxu1 %v10034_v48 }
 0x1cb   :  { %v5503_v22 = vmul.f32 -1.442695, %v8529_v24  ;;  %10033 = vst [vmem:[#allocation5_spill] sm:$0xff] %v8542_v18  ;;  %v6448_v45 = vpop.eup %6447  ;;  %v4143_v41 = vadd.f32 %v4142_v36, %v4118_v53  ;;  %v3080_v27 = vadd.f32 1.0, %v6446_v1  ;;  %6471 = vpow2.f32 %v5484_v32  ;;  %v1848_v30 = vpop.f32.mrf.mxu1 }
 0x1cc   :  { %v1960_v50 = vadd.f32 %v8351_v20, %v1846_v40  ;;  %v6450_v10 = vpop.eup %6449  ;;  %v4156_v56 = vadd.f32 %v4155_v58, %v4119_v52  ;;  %v4128_v3 = vmul.f32 %v6448_v45, %v8321_v6  ;;  %6473 = vpow2.f32 %v5493_v0  ;;  %v8548_v43 = vpop.f32.mrf.mxu0 }
 0x1cd   :  { %v5504_v34 = vmul.f32 -1.442695, %v8540_v63  ;;  %v6452_v38 = vpop.eup %6451  ;;  %6475 = vrcp.f32 %v3080_v27  ;;  %v3081_v18 = vadd.f32 1.0, %v6450_v10  ;;  %v1962_v36 = vadd.f32 %v8361_v5, %v1848_v30  ;;  %v1850_v32 = vpop.f32.mrf.mxu1 }
 0x1ce   :  { %v8551_v48 = vadd.f32 %v8307_v26, %v1960_v50  ;;  %v6454_v20 = vpop.eup %6453  ;;  %v4144_v53 = vadd.f32 %v4143_v41, %v4128_v3  ;;  %v4129_v58 = vmul.f32 %v6452_v38, %v8341_v47  ;;  %6477 = vpow2.f32 %v5494_v33  ;;  %v8556_v0 = vpop.f32.mrf.mxu0 }
 0x1cf   :  { %v1964_v6 = vadd.f32 %v8381_v9, %v1850_v32  ;;  %v6456_v40 = vpop.eup %6455  ;;  %6479 = vrcp.f32 %v3081_v18  ;;  %v3090_v1 = vadd.f32 1.0, %v6454_v20  ;;  %v8560_v45 = vadd.f32 %v8328_v15, %v1962_v36  ;;  %v1852_v27 = vpop.f32.mrf.mxu1 }
 0x1d0   :  { %v5513_v52 = vmul.f32 -1.442695, %v8551_v48  ;;  %v6458_v5 = vpop.eup %6457  ;;  %v4145_v50 = vrot.slane %v4144_v53, 4  ;;  %v4157_v30 = vadd.f32 %v4156_v56, %v4129_v58  ;;  %v3290_v41 = vmul.f32 %v6456_v40, %v8348_v13  ;;  %v8563_v47 = vpop.f32.mrf.mxu0 }
 0x1d1   :  { %6481 = vpow2.f32 %v5503_v22  ;;  %v3091_v9 = vadd.f32 1.0, %v6458_v5  ;;  %v5514_v33 = vmul.f32 -1.442695, %v8560_v45  ;;  %v8567_v18 = vadd.f32 %v8307_v26, %v1964_v6  ;;  %v1856_v10 = vpop.f32.mrf.mxu1  ;;  %2533 = vmatmul.mubr.bf16.gmra.mxu1 %v7520_v61 }
 0x1d2   :  { %6483 = vrcp.f32 %v3090_v1  ;;  %v6460_v3 = vpop.eup %6459  ;;  %v4146_v38 = vadd.f32 %v4145_v50, %v4144_v53  ;;  %v4158_v36 = vrot.slane %v4157_v30, 4  ;;  %v1966_v13 = vadd.f32 %v8394_v55, %v1852_v27  ;;  %v8571_v22 = vpop.f32.mrf.mxu0  ;;  %2542 = vmatprep.mubr.bf16.mxu1 %v7530_v8 }
 0x1d3   :  { %6485 = vpow2.f32 %v5504_v34  ;;  %v6462_v56 = vpop.eup %6461  ;;  %v3291_v32 = vmul.f32 %v6460_v3, %v8359_v46  ;;  %v5523_v20 = vmul.f32 -1.442695, %v8567_v18  ;;  %v1970_v58 = vadd.f32 %v8411_v59, %v1856_v10  ;;  %v1858_v6 = vpop.f32.mrf.mxu1 }
 0x1d4   :  { %6487 = vrcp.f32 %v3091_v9  ;;  %v6464_v61 = vpop.eup %6463  ;;  %v4147_v40 = vrot.slane %v4146_v38, 2  ;;  %v8577_v53 = vadd.f32 %v4158_v36, %v4157_v30  ;;  %v3300_v34 = vmul.f32 %v6462_v56, %v8387_v23  ;;  %v8580_v55 = vpop.f32.mrf.mxu0 }
 0x1d5   :  { %6489 = vpow2.f32 %v5513_v52  ;;  %v6466_v1 = vpop.eup %6465  ;;  %v3301_v8 = vmul.f32 %v6464_v61, %v8391_v7  ;;  %v8584_v46 = vadd.f32 %v8328_v15, %v1966_v13  ;;  %v8587_v27 = vadd.f32 %v8307_v26, %v1970_v58  ;;  %v1860_v59 = vpop.f32.mrf.mxu1 }
 0x1d6   :  { %6491 = vpow2.f32 %v5514_v33  ;;  %v6468_v5 = vpop.eup %6467  ;;  %v4148_v50 = vadd.f32 %v4147_v40, %v4146_v38  ;;  %v4160_v30 = vrot.slane %v8577_v53, 2  ;;  %v3394_v9 = vadd.f32 %v3300_v34, %v3290_v41  ;;  %v8591_v52 = vpop.f32.mrf.mxu0 }
 0x1d7   :  { %v3310_v23 = vmul.f32 %v6466_v1, %v8408_v31  ;;  %v6470_v10 = vpop.eup %6469  ;;  %v3407_v3 = vadd.f32 %v3301_v8, %v3291_v32  ;;  %v3100_v7 = vadd.f32 1.0, %v6468_v5  ;;  %6493 = vpow2.f32 %v5523_v20  ;;  %v1862_v36 = vpop.f32.mrf.mxu1 }
 0x1d8   :  { %v5524_v33 = vmul.f32 -1.442695, %v8584_v46  ;;  %v6472_v13 = vpop.eup %6471  ;;  %v4149_v56 = vrot.slane %v4148_v50, 1  ;;  %v3311_v61 = vmul.f32 %v6470_v10, %v8422_v4  ;;  %v5533_v38 = vmul.f32 -1.442695, %v8587_v27  ;;  %v8596_v40 = vpop.f32.mrf.mxu0 }
 0x1d9   :  { %v3395_v58 = vadd.f32 %v3394_v9, %v3310_v23  ;;  %v6474_v41 = vpop.eup %6473  ;;  %6495 = vrcp.f32 %v3100_v7  ;;  %v3101_v31 = vadd.f32 1.0, %v6472_v13  ;;  %v1972_v34 = vadd.f32 %v8424_v2, %v1858_v6  ;;  %v1866_v20 = vpop.f32.mrf.mxu1  ;;  %2543 = vmatmul.mubr.bf16.gmra.mxu1 %v7538_v12 }
 0x1da   :  { %v1974_v32 = vadd.f32 %v8435_v29, %v1860_v59  ;;  %v6476_v1 = vpop.eup %6475  ;;  %v4150_v8 = vadd.f32 %v4149_v56, %v4148_v50  ;;  %v3408_v5 = vadd.f32 %v3407_v3, %v3311_v61  ;;  %v3110_v9 = vadd.f32 1.0, %v6474_v41  ;;  %v8601_v4 = vpop.f32.mrf.mxu0  ;;  %2552 = vmatprep.mubr.bf16.mxu1 %v7551_v25 }
 0x1db   :  { %6497 = vpow2.f32 %v5524_v33  ;;  %v6478_v23 = vpop.eup %6477  ;;  %v3320_v10 = vmul.f32 %v6476_v1, %v8438_v16  ;;  %v8606_v2 = vadd.f32 %v8328_v15, %v1972_v34  ;;  %v1868_v12 = vpop.f32.mrf.mxu1  ;;  %v1976_v25 = vadd.f32 %v8443_v11, %v1862_v36 }
 0x1dc   :  { %6499 = vrcp.f32 %v3101_v31  ;;  %v8609_v29 = vadd.f32 %v8307_v26, %v1974_v32  ;;  %v6480_v6 = vpop.eup %6479  ;;  %v8613_v59 = vsel %vm4268_vm1, %v8378_v28, %v4150_v8  ;;  %v3111_v50 = vadd.f32 1.0, %v6478_v23  ;;  %v8616_v3 = vpop.f32.mrf.mxu0 }
 0x1dd   :  { %6501 = vrcp.f32 %v3110_v9  ;;  %v4279_v7 = vpack.c.bf16 %v8613_v59, %v8613_v59  ;;  %v3396_v33 = vadd.f32 %v3395_v58, %v3320_v10  ;;  %v3321_v13 = vmul.f32 %v6480_v6, %v8452_v37  ;;  %v1870_v56 = vpop.f32.mrf.mxu1 }
 0x1de   :  { %v6482_v16 = vpop.eup %6481  ;;  %6503 = vpow2.f32 %v5533_v38  ;;  %v5534_v28 = vmul.f32 -1.442695, %v8606_v2  ;;  %v5543_v31 = vmul.f32 -1.442695, %v8609_v29  ;;  %v8623_v34 = vpop.f32.mrf.mxu0  ;;  %v8627_v1 = vadd.f32 %v8328_v15, %v1976_v25 }
 0x1df   :  { %v6484_v61 = vpop.eup %6483  ;;  %6505 = vrcp.f32 %v3111_v50  ;;  %v3120_v41 = vadd.f32 1.0, %v6482_v16  ;;  %v3409_v36 = vadd.f32 %v3408_v5, %v3321_v13  ;;  %v1980_v37 = vadd.f32 %v8461_v51, %v1866_v20  ;;  %v1872_v58 = vpop.f32.mrf.mxu1  ;;  %v10035_v16 = vld [vmem:[#allocation14_spill] sm:$0xff] }
 0x1e0   :  { %v6486_v11 = vpop.eup %6485  ;;  %v3330_v32 = vmul.f32 %v6484_v61, %v8458_v44  ;;  %v1982_v9 = vadd.f32 %v8472_v17, %v1868_v12  ;;  %v1984_v23 = vadd.f32 %v8484_v35, %v1870_v56  ;;  %v8632_v10 = vpop.f32.mrf.mxu0  ;;  %v5544_v44 = vmul.f32 -1.442695, %v8627_v1 }
 0x1e1   :  { %v6488_v38 = vpop.eup %6487  ;;  %6507 = vrcp.f32 %v3120_v41  ;;  %v3121_v8 = vadd.f32 1.0, %v6486_v11  ;;  %v1876_v25 = vpop.f32.mrf.mxu1  ;;  %2553 = vmatmul.mubr.bf16.gmra.mxu1 %v10035_v16  ;;  %v8638_v13 = vadd.f32 %v8307_v26, %v1980_v37  ;;  %v1986_v11 = vadd.f32 %v8496_v60, %v1872_v58 }
 0x1e2   :  { %v6490_v6 = vpop.eup %6489  ;;  %v3397_v50 = vadd.f32 %v3396_v33, %v3330_v32  ;;  %v3331_v5 = vmul.f32 %v6488_v38, %v8470_v57  ;;  %6509 = vpow2.f32 %v5534_v28  ;;  %v8641_v17 = vadd.f32 %v8328_v15, %v1982_v9  ;;  %v8643_v35 = vpop.f32.mrf.mxu0 }
 0x1e3   :  { %v6492_v51 = vpop.eup %6491  ;;  %6511 = vrcp.f32 %v3121_v8  ;;  %v3820_v20 = vadd.f32 1.0, %v6490_v6  ;;  %v8646_v57 = vadd.f32 %v8307_v26, %v1984_v23  ;;  %v1878_v56 = vpop.f32.mrf.mxu1  ;;  %v5553_v41 = vmul.f32 -1.442695, %v8638_v13 }
 0x1e4   :  { %v3410_v12 = vadd.f32 %v3409_v36, %v3331_v5  ;;  %v3821_v33 = vadd.f32 1.0, %v6492_v51  ;;  %6513 = vpow2.f32 %v5543_v31  ;;  %v6494_v61 = vpop.eup %6493  ;;  %v5554_v28 = vmul.f32 -1.442695, %v8641_v17  ;;  %v8651_v32 = vpop.f32.mrf.mxu0 }
 0x1e5   :  { %6515 = vrcp.f32 %v3820_v20  ;;  %v3830_v37 = vadd.f32 1.0, %v6494_v61  ;;  %v5563_v36 = vmul.f32 -1.442695, %v8646_v57  ;;  %v1990_v31 = vadd.f32 %v8514_v14, %v1876_v25  ;;  %v1880_v38 = vpop.f32.mrf.mxu1 }
 0x1e6   :  { %6517 = vrcp.f32 %v3821_v33  ;;  %v6496_v8 = vpop.eup %6495  ;;  %v8656_v9 = vadd.f32 %v8328_v15, %v1986_v11  ;;  %v4161_v23 = vadd.f32 %v4160_v30, %v8577_v53  ;;  %v1992_v60 = vadd.f32 %v8521_v49, %v1878_v56  ;;  %v8662_v58 = vpop.f32.mrf.mxu0 }
 0x1e7   :  { %6519 = vpow2.f32 %v5544_v44  ;;  %v3340_v5 = vmul.f32 %v6496_v8, %v8488_v62  ;;  %v8666_v14 = vadd.f32 %v8307_v26, %v1990_v31  ;;  %v1994_v44 = vadd.f32 %v8532_v39, %v1880_v38  ;;  %v1882_v25 = vpop.f32.mrf.mxu1 }
 0x1e8   :  { %v6498_v6 = vpop.eup %6497  ;;  %6521 = vrcp.f32 %v3830_v37  ;;  %v5564_v20 = vmul.f32 -1.442695, %v8656_v9  ;;  %v4162_v53 = vrot.slane %v4161_v23, 1  ;;  %v8670_v30 = vpop.f32.mrf.mxu0 }
 0x1e9   :  { %v6500_v16 = vpop.eup %6499  ;;  %v3831_v51 = vadd.f32 1.0, %v6498_v6  ;;  %6523 = vpow2.f32 %v5553_v41  ;;  %v3398_v33 = vadd.f32 %v3397_v50, %v3340_v5  ;;  %v5573_v62 = vmul.f32 -1.442695, %v8666_v14  ;;  %v2032_v61 = vpop.f32.mrf.mxu1 }
 0x1ea   :  { %v6502_v49 = vpop.eup %6501  ;;  %v3341_v56 = vmul.f32 %v6500_v16, %v8493_v42  ;;  %6525 = vpow2.f32 %v5554_v28  ;;  %v4163_v37 = vadd.f32 %v4162_v53, %v4161_v23  ;;  %v8676_v41 = vadd.f32 %v8328_v15, %v1992_v60  ;;  %v8678_v31 = vpop.f32.mrf.mxu0 }
 0x1eb   :  { %v6504_v11 = vpop.eup %6503  ;;  %v3350_v39 = vmul.f32 %v6502_v49, %v8512_v21  ;;  %6527 = vrcp.f32 %v3831_v51  ;;  %v8681_v42 = vadd.f32 %v8307_v26, %v1994_v44  ;;  %v2034_v50 = vpop.f32.mrf.mxu1  ;;  %v6246_v26 = vld [vmem:[%s9966_s3 + $0xb8] sm:$0xff]  }
 0x1ec   :  { %v6506_v38 = vpop.eup %6505  ;;  %v3411_v8 = vadd.f32 %v3410_v12, %v3341_v56  ;;  %v3840_v6 = vadd.f32 1.0, %v6504_v11  ;;  %6529 = vpow2.f32 %v5563_v36  ;;  %v4270_v21 = vsel %vm4268_vm1, %v8505_v19, %v4163_v37  ;;  %v8686_v23 = vpop.f32.mrf.mxu0  ;;  %v10036_v19 = vld [vmem:[#allocation5_spill] sm:$0xff] }
 0x1ed   :  { %v3399_v28 = vadd.f32 %v3398_v33, %v3350_v39  ;;  %v3351_v5 = vmul.f32 %v6506_v38, %v8526_v54  ;;  %6531 = vpow2.f32 %v5564_v20  ;;  %v4280_v16 = vpack.c.bf16 %v4270_v21, %v4270_v21  ;;  %v2036_v51 = vpop.f32.mrf.mxu1  ;;  %v6247_v33 = vld [vmem:[%s9966_s3 + $0xf0] sm:$0xff]  }
 0x1ee   :  { %v6508_v60 = vpop.eup %6507  ;;  %6533 = vrcp.f32 %v3840_v6  ;;  %v5574_v12 = vmul.f32 -1.442695, %v8676_v41  ;;  %v5583_v36 = vmul.f32 -1.442695, %v8681_v42  ;;  %v1996_v53 = vadd.f32 %v10036_v19, %v1882_v25  ;;  %v8695_v49 = vpop.f32.mrf.mxu0 }
 0x1ef   :  { %v6510_v44 = vpop.eup %6509  ;;  %v3412_v54 = vadd.f32 %v3411_v8, %v3351_v5  ;;  %v3360_v20 = vmul.f32 %v6508_v60, %v8529_v24  ;;  %6535 = vpow2.f32 %v5573_v62  ;;  %4968 = vmatprep.mubr.bf16.mxu1 %v4280_v16  ;;  %v2146_v39 = vadd.f32 %v8548_v43, %v2032_v61  ;;  %v2038_v38 = vpop.f32.mrf.mxu1  ;;  %v10037_v61 = vld [vmem:[#allocation6_spill] sm:$0xff] }
 0x1f0   :  { %v6512_v56 = vpop.eup %6511  ;;  %v3841_v11 = vadd.f32 1.0, %v6510_v44  ;;  %6537 = vpow2.f32 %v5574_v12  ;;  %v2148_v37 = vadd.f32 %v8556_v0, %v2034_v50  ;;  %v8704_v25 = vadd.f32 %v8328_v15, %v1996_v53  ;;  %4969 = vmatmul.mubr.bf16.vlgmr.msra.gmra.mxu1 %v4279_v7  ;;  %v8709_v6 = vpop.f32.mrf.mxu0  ;;  %v10038_v50 = vld [vmem:[#allocation15_spill] sm:$0xff]  ;;  %v6249_v12 = vld [vmem:[%s9966_s3 + $0xe8] sm:$0xff]  }
 0x1f1   :  { %v6514_v8 = vpop.eup %6513  ;;  %v3400_v24 = vadd.f32 %v3399_v28, %v3360_v20  ;;  %v3361_v62 = vmul.f32 %v6512_v56, %v8540_v63  ;;  %6539 = vpow2.f32 %v5583_v36  ;;  %v8712_v0 = vadd.f32 %v10037_v61, %v2146_v39  ;;  %v8717_v63 = vpop.f32.mrf.mxu1  ;;  %5695 = vmatpush3.bf16.msra.mxu1 %v6246_v26  ;;  %v6248_v15 = vld [vmem:[%s9966_s3 + $0xb0] sm:$0xff]  }
 0x1f2   :  { %v6516_v5 = vpop.eup %6515  ;;  %6541 = vrcp.f32 %v3841_v11  ;;  %v3850_v43 = vadd.f32 1.0, %v6514_v8  ;;  %v8715_v28 = vadd.f32 %v10038_v50, %v2148_v37  ;;  %v5584_v60 = vmul.f32 -1.442695, %v8704_v25  ;;  %v8723_v16 = vpop.f32.mrf.mxu0  ;;  %5696 = vmatprep.subr.bf16.mxu1 %v6247_v33  ;;  %v6261_v33 = vld [vmem:[%s9966_s3 + $0x178] sm:$0xff]  }
 0x1f3   :  { %v6518_v59 = vpop.eup %6517  ;;  %v3401_v7 = vrot.slane %v3400_v24, 4  ;;  %v3413_v21 = vadd.f32 %v3412_v54, %v3361_v62  ;;  %v4060_v44 = vmul.f32 %v6516_v5, %v8551_v48  ;;  %v5435_v26 = vmul.f32 -1.442695, %v8712_v0  ;;  %v2044_v19 = vpop.f32.mrf.mxu1  ;;  %5716 = vmatprep.subr.bf16.mxu0 %v6261_v33 }
 0x1f4   :  { %v6520_v36 = vpop.eup %6519  ;;  %6543 = vrcp.f32 %v3850_v43  ;;  %v5436_v20 = vmul.f32 -1.442695, %v8715_v28  ;;  %v8731_v39 = vpop.f32.mrf.mxu0  ;;  %v2150_v8 = vadd.f32 %v8563_v47, %v2036_v51  ;;  %v2152_v62 = vadd.f32 %v8571_v22, %v2038_v38  ;;  %v6262_v43 = vld [vmem:[%s9966_s3 + $0x138] sm:$0xff]   ;;  %v6251_v22 = vld [vmem:[%s9966_s3 + $0xe0] sm:$0xff]  }
 0x1f5   :  { %v6522_v53 = vpop.eup %6521  ;;  %v3402_v54 = vadd.f32 %v3401_v7, %v3400_v24  ;;  %v3414_v56 = vrot.slane %v3413_v21, 4  ;;  %v3851_v11 = vadd.f32 1.0, %v6520_v36  ;;  %6545 = vpow2.f32 %v5584_v60  ;;  %v8739_v5 = vpop.f32.mrf.mxu1  ;;  %5697 = vmatpush3.bf16.msra.mxu1 %v6248_v15  ;;  %v6250_v24 = vld [vmem:[%s9966_s3 + $0xa8] sm:$0xff]   ;;  %5717 = vmatpush3.bf16.msra.mxu0 %v6262_v43 }
 0x1f6   :  { %v6524_v37 = vpop.eup %6523  ;;  %v4070_v48 = vmul.f32 %v6522_v53, %v8567_v18  ;;  %6547 = vpow2.f32 %v5435_v26  ;;  %v8749_v47 = vpop.f32.mrf.mxu0  ;;  %5698 = vmatprep.subr.bf16.mxu1 %v6249_v12  ;;  %v4061_v38 = vmul.f32 %v6518_v59, %v8560_v45  ;;  %v8756_v26 = vadd.f32 %v10037_v61, %v2150_v8  ;;  %v6263_v45 = vld [vmem:[%s9966_s3 + $0x170] sm:$0xff]  }
 0x1f7   :  { %v6526_v7 = vpop.eup %6525  ;;  %v3403_v60 = vrot.slane %v3402_v54, 2  ;;  %v8747_v36 = vadd.f32 %v3414_v56, %v3413_v21  ;;  %6549 = vrcp.f32 %v3851_v11  ;;  %v3860_v18 = vadd.f32 1.0, %v6524_v37  ;;  %v2048_v21 = vpop.f32.mrf.mxu1  ;;  %5718 = vmatprep.subr.bf16.mxu0 %v6263_v45 }
 0x1f8   :  { %v6528_v51 = vpop.eup %6527  ;;  %v3861_v15 = vadd.f32 1.0, %v6526_v7  ;;  %6551 = vpow2.f32 %v5436_v20  ;;  %v4164_v11 = vadd.f32 %v4070_v48, %v4060_v44  ;;  %v8761_v37 = vpop.f32.mrf.mxu0  ;;  %v5445_v33 = vmul.f32 -1.442695, %v8756_v26  ;;  %v6264_v44 = vld [vmem:[%s9966_s3 + $0x130] sm:$0xff]  }
 0x1f9   :  { %10039 = vst [vmem:[#allocation8_spill] sm:$0xff] %v8747_v36  ;;  %v6530_v53 = vpop.eup %6529  ;;  %v8758_v56 = vadd.f32 %v3403_v60, %v3402_v54  ;;  %v4071_v12 = vmul.f32 %v6528_v51, %v8584_v46  ;;  %6553 = vrcp.f32 %v3860_v18  ;;  %v8768_v8 = vadd.f32 %v10038_v50, %v2152_v62  ;;  %v2052_v54 = vpop.f32.mrf.mxu1  ;;  %5699 = vmatpush3.bf16.msra.mxu1 %v6250_v24  ;;  %v6252_v46 = vld [vmem:[%s9966_s3 + $0xa0] sm:$0xff]   ;;  %v6253_v24 = vld [vmem:[%s9966_s3 + $0xd8] sm:$0xff]  }
 0x1fa   :  { %v6532_v59 = vpop.eup %6531  ;;  %6555 = vrcp.f32 %v3861_v15  ;;  %v3870_v20 = vadd.f32 1.0, %v6530_v53  ;;  %v2156_v62 = vadd.f32 %v8580_v55, %v8717_v63  ;;  %v8780_v18 = vpop.f32.mrf.mxu0  ;;  %5700 = vmatprep.subr.bf16.mxu1 %v6251_v22  ;;  %v2158_v43 = vadd.f32 %v8591_v52, %v2044_v19  ;;  %5719 = vmatpush3.bf16.msra.mxu0 %v6264_v44  ;;  %v6266_v44 = vld [vmem:[%s9966_s3 + $0x128] sm:$0xff]  }
 0x1fb   :  { %v6534_v48 = vpop.eup %6533  ;;  %v3871_v60 = vadd.f32 1.0, %v6532_v59  ;;  %v4177_v15 = vadd.f32 %v4071_v12, %v4061_v38  ;;  %v2054_v7 = vpop.f32.mrf.mxu1  ;;  %v5446_v63 = vmul.f32 -1.442695, %v8768_v8  ;;  %v6265_v38 = vld [vmem:[%s9966_s3 + $0x168] sm:$0xff]  }
 0x1fc   :  { %v6536_v51 = vpop.eup %6535  ;;  %v4080_v53 = vmul.f32 %v6534_v48, %v8587_v27  ;;  %6557 = vrcp.f32 %v3870_v20  ;;  %v8789_v22 = vadd.f32 %v10037_v61, %v2156_v62  ;;  %v8791_v36 = vpop.f32.mrf.mxu0  ;;  %v8797_v52 = vadd.f32 %v10038_v50, %v2158_v43  ;;  %v6254_v20 = vld [vmem:[%s9966_s3 + $0x98] sm:$0xff]   ;;  %5720 = vmatprep.subr.bf16.mxu0 %v6265_v38 }
 0x1fd   :  { %v6538_v59 = vpop.eup %6537  ;;  %6559 = vrcp.f32 %v3871_v60  ;;  %v3880_v55 = vadd.f32 1.0, %v6536_v51  ;;  %v2056_v19 = vpop.f32.mrf.mxu1  ;;  %5701 = vmatpush3.bf16.msra.mxu1 %v6252_v46  ;;  %v6255_v46 = vld [vmem:[%s9966_s3 + $0xd0] sm:$0xff]  }
 0x1fe   :  { %v6540_v27 = vpop.eup %6539  ;;  %v4165_v12 = vadd.f32 %v4164_v11, %v4080_v53  ;;  %v3881_v45 = vadd.f32 1.0, %v6538_v59  ;;  %6561 = vpow2.f32 %v5445_v33  ;;  %v5455_v11 = vmul.f32 -1.442695, %v8789_v22  ;;  %v8808_v43 = vpop.f32.mrf.mxu0  ;;  %5702 = vmatprep.subr.bf16.mxu1 %v6253_v24  ;;  %5721 = vmatpush3.bf16.msra.mxu0 %v6266_v44 }
 0x1ff   :  { %v6542_v48 = vpop.eup %6541  ;;  %6563 = vrcp.f32 %v3880_v55  ;;  %v3890_v60 = vadd.f32 1.0, %v6540_v27  ;;  %v2160_v33 = vadd.f32 %v8596_v40, %v8739_v5  ;;  %v5456_v51 = vmul.f32 -1.442695, %v8797_v52  ;;  %v2058_v59 = vpop.f32.mrf.mxu1 }
 0x200   :  { %v4081_v62 = vmul.f32 %v6542_v48, %v8606_v2  ;;  %6565 = vrcp.f32 %v3881_v45  ;;  %v2162_v53 = vadd.f32 %v8601_v4, %v2048_v21  ;;  %v2166_v5 = vadd.f32 %v8616_v3, %v2052_v54  ;;  %v8821_v27 = vpop.f32.mrf.mxu0  ;;  %v6267_v2 = vld [vmem:[%s9966_s3 + $0x160] sm:$0xff]   ;;  %v6256_v3 = vld [vmem:[%s9966_s3 + $0x90] sm:$0xff]  }
 0x201   :  { %v6544_v55 = vpop.eup %6543  ;;  %6567 = vrcp.f32 %v3890_v60  ;;  %v8817_v40 = vadd.f32 %v10037_v61, %v2160_v33  ;;  %v2168_v24 = vadd.f32 %v8623_v34, %v2054_v7  ;;  %v2062_v44 = vpop.f32.mrf.mxu1  ;;  %5703 = vmatpush3.bf16.msra.mxu1 %v6254_v20  ;;  %v6268_v34 = vld [vmem:[%s9966_s3 + $0x120] sm:$0xff]   ;;  %v6257_v20 = vld [vmem:[%s9966_s3 + $0xc8] sm:$0xff]   ;;  %5722 = vmatprep.subr.bf16.mxu0 %v6267_v2 }
 0x202   :  { %v6546_v38 = vpop.eup %6545  ;;  %v4178_v45 = vadd.f32 %v4177_v15, %v4081_v62  ;;  %v4090_v4 = vmul.f32 %v6544_v55, %v8609_v29  ;;  %6569 = vpow2.f32 %v5446_v63  ;;  %v8828_v21 = vadd.f32 %v10038_v50, %v2162_v53  ;;  %v8840_v63 = vpop.f32.mrf.mxu0  ;;  %5704 = vmatprep.subr.bf16.mxu1 %v6255_v46  ;;  %5723 = vmatpush3.bf16.msra.mxu0 %v6268_v34 }
 0x203   :  { %v6548_v54 = vpop.eup %6547  ;;  %v3891_v7 = vadd.f32 1.0, %v6546_v38  ;;  %6571 = vpow2.f32 %v5455_v11  ;;  %v5465_v15 = vmul.f32 -1.442695, %v8817_v40  ;;  %v8838_v29 = vadd.f32 %v10037_v61, %v2166_v5  ;;  %v2064_v11 = vpop.f32.mrf.mxu1 }
 0x204   :  { %v6550_v48 = vpop.eup %6549  ;;  %v4166_v60 = vadd.f32 %v4165_v12, %v4090_v4  ;;  %v3052_v33 = vadd.f32 1.0, %v6548_v54  ;;  %6573 = vpow2.f32 %v5456_v51  ;;  %v5466_v62 = vmul.f32 -1.442695, %v8828_v21  ;;  %v8851_v38 = vpop.f32.mrf.mxu0  ;;  %v6269_v12 = vld [vmem:[%s9966_s3 + $0x158] sm:$0xff]  }
 0x205   :  { %v6552_v53 = vpop.eup %6551  ;;  %v4091_v55 = vmul.f32 %v6550_v48, %v8627_v1  ;;  %6575 = vrcp.f32 %v3891_v7  ;;  %v5475_v5 = vmul.f32 -1.442695, %v8838_v29  ;;  %v8849_v46 = vadd.f32 %v10038_v50, %v2168_v24  ;;  %10040 = vst [vmem:[#allocation16_spill] sm:$0xff] %v8851_v38  ;;  %v2066_v1 = vpop.f32.mrf.mxu1  ;;  %5705 = vmatpush3.bf16.msra.mxu1 %v6256_v3  ;;  %v6258_v24 = vld [vmem:[%s9966_s3 + $0x88] sm:$0xff]   ;;  %v6270_v54 = vld [vmem:[%s9966_s3 + $0x118] sm:$0xff]   ;;  %5724 = vmatprep.subr.bf16.mxu0 %v6269_v12 }
 0x206   :  { %v6554_v51 = vpop.eup %6553  ;;  %6577 = vrcp.f32 %v3052_v33  ;;  %v3053_v2 = vadd.f32 1.0, %v6552_v53  ;;  %v2170_v4 = vadd.f32 %v8632_v10, %v2056_v19  ;;  %v2172_v34 = vadd.f32 %v8643_v35, %v2058_v59  ;;  %v8866_v10 = vpop.f32.mrf.mxu0  ;;  %5706 = vmatprep.subr.bf16.mxu1 %v6257_v20  ;;  %v6259_v35 = vld [vmem:[%s9966_s3 + $0xc0] sm:$0xff]   ;;  %5725 = vmatpush3.bf16.msra.mxu0 %v6270_v54 }
 0x207   :  { %v6556_v7 = vpop.eup %6555  ;;  %v4179_v48 = vadd.f32 %v4178_v45, %v4091_v55  ;;  %v4100_v38 = vmul.f32 %v6554_v51, %v8638_v13  ;;  %6579 = vpow2.f32 %v5465_v15  ;;  %v5476_v33 = vmul.f32 -1.442695, %v8849_v46  ;;  %v2068_v13 = vpop.f32.mrf.mxu1 }
 0x208   :  { %v4101_v19 = vmul.f32 %v6556_v7, %v8641_v17  ;;  %6581 = vrcp.f32 %v3053_v2  ;;  %v8873_v59 = vadd.f32 %v10037_v61, %v2170_v4  ;;  %v8876_v45 = vadd.f32 %v10038_v50, %v2172_v34  ;;  %v8880_v55 = vpop.f32.mrf.mxu0  ;;  %v6271_v17 = vld [vmem:[%s9966_s3 + $0x150] sm:$0xff]  }
 0x209   :  { %v6558_v3 = vpop.eup %6557  ;;  %v4167_v15 = vadd.f32 %v4166_v60, %v4100_v38  ;;  %6583 = vpow2.f32 %v5466_v62  ;;  %v2176_v20 = vadd.f32 %v8651_v32, %v2062_v44  ;;  %v2178_v53 = vadd.f32 %v8662_v58, %v2064_v11  ;;  %v2072_v34 = vpop.f32.mrf.mxu1  ;;  %5707 = vmatpush3.bf16.msra.mxu1 %v6258_v24  ;;  %v6260_v32 = vld [vmem:[%s9966_s3 + $0x80] sm:$0xff]   ;;  %v6272_v58 = vld [vmem:[%s9966_s3 + $0x110] sm:$0xff]   ;;  %5726 = vmatprep.subr.bf16.mxu0 %v6271_v17 }
 0x20a   :  { %v6560_v12 = vpop.eup %6559  ;;  %v4180_v51 = vadd.f32 %v4179_v48, %v4101_v19  ;;  %v4110_v2 = vmul.f32 %v6558_v3, %v8646_v57  ;;  %6585 = vpow2.f32 %v5475_v5  ;;  %v5485_v4 = vmul.f32 -1.442695, %v8873_v59  ;;  %v8898_v11 = vpop.f32.mrf.mxu0  ;;  %5708 = vmatprep.subr.bf16.mxu1 %v6259_v35  ;;  %5727 = vmatpush3.bf16.msra.mxu0 %v6272_v58  ;;  %v6273_v35 = vld [vmem:[%s9966_s3 + $0x148] sm:$0xff]  }
 0x20b   :  { %v6562_v44 = vpop.eup %6561  ;;  %v4111_v60 = vmul.f32 %v6560_v12, %v8656_v9  ;;  %6587 = vpow2.f32 %v5476_v33  ;;  %v5486_v62 = vmul.f32 -1.442695, %v8876_v45  ;;  %v8896_v57 = vadd.f32 %v10037_v61, %v2176_v20  ;;  %v2074_v7 = vpop.f32.mrf.mxu1  ;;  %5728 = vmatprep.subr.bf16.mxu0 %v6273_v35 }
 0x20c   :  { %v6564_v5 = vpop.eup %6563  ;;  %v4168_v38 = vadd.f32 %v4167_v15, %v4110_v2  ;;  %v3062_v24 = vadd.f32 1.0, %v6562_v44  ;;  %6589 = vpow2.f32 %v5485_v4  ;;  %v8901_v54 = vadd.f32 %v10038_v50, %v2178_v53  ;;  %v8905_v3 = vpop.f32.mrf.mxu0 }
 0x20d   :  { %v6566_v9 = vpop.eup %6565  ;;  %v4181_v48 = vadd.f32 %v4180_v51, %v4111_v60  ;;  %v4120_v33 = vmul.f32 %v6564_v5, %v8666_v14  ;;  %6591 = vpow2.f32 %v5486_v62  ;;  %v5495_v19 = vmul.f32 -1.442695, %v8896_v57  ;;  %v8913_v12 = vpop.f32.mrf.mxu1  ;;  %5709 = vmatpush3.bf16.msra.mxu1 %v6260_v32  ;;  %v6274_v14 = vld [vmem:[%s9966_s3 + $0x108] sm:$0xff]  }
 0x20e   :  { %v6568_v15 = vpop.eup %6567  ;;  %v4121_v20 = vmul.f32 %v6566_v9, %v8676_v41  ;;  %6593 = vrcp.f32 %v3062_v24  ;;  %v5496_v53 = vmul.f32 -1.442695, %v8901_v54  ;;  %v2180_v17 = vadd.f32 %v8670_v30, %v2066_v1  ;;  %v8920_v41 = vpop.f32.mrf.mxu0  ;;  %5729 = vmatpush3.bf16.msra.mxu0 %v6274_v14  ;;  %v6275_v24 = vld [vmem:[%s9966_s3 + $0x140] sm:$0xff]  }
 0x20f   :  { %v6570_v51 = vpop.eup %6569  ;;  %v4169_v2 = vadd.f32 %v4168_v38, %v4120_v33  ;;  %v4130_v4 = vmul.f32 %v6568_v15, %v8681_v42  ;;  %6595 = vpow2.f32 %v5495_v19  ;;  %v2182_v58 = vadd.f32 %v8678_v31, %v2068_v13  ;;  %v2078_v32 = vpop.f32.mrf.mxu1  ;;  %v6276_v15 = vld [vmem:[%s9966_s3 + $0x100] sm:$0xff]   ;;  %5730 = vmatprep.subr.bf16.mxu0 %v6275_v24 }
 0x210   :  { %v6572_v44 = vpop.eup %6571  ;;  %v4182_v60 = vadd.f32 %v4181_v48, %v4121_v20  ;;  %v3063_v30 = vadd.f32 1.0, %v6570_v51  ;;  %6597 = vpow2.f32 %v5496_v53  ;;  %v8923_v1 = vadd.f32 %v10037_v61, %v2180_v17  ;;  %v8929_v13 = vpop.f32.mrf.mxu0 }
 0x211   :  { %v6574_v62 = vpop.eup %6573  ;;  %v4170_v5 = vadd.f32 %v4169_v2, %v4130_v4  ;;  %v3072_v38 = vadd.f32 1.0, %v6572_v44  ;;  %v8926_v42 = vadd.f32 %v10038_v50, %v2182_v58  ;;  %v2186_v31 = vadd.f32 %v8686_v23, %v2072_v34  ;;  %v8936_v35 = vpop.f32.mrf.mxu1 }
 0x212   :  { %v6576_v9 = vpop.eup %6575  ;;  %6599 = vrcp.f32 %v3063_v30  ;;  %v3073_v48 = vadd.f32 1.0, %v6574_v62  ;;  %v5505_v33 = vmul.f32 -1.442695, %v8923_v1  ;;  %v2188_v19 = vadd.f32 %v8695_v49, %v2074_v7  ;;  %v8943_v17 = vpop.f32.mrf.mxu0  ;;  %5731 = vmatpush3.bf16.msra.mxu0 %v6276_v15 }
 0x213   :  { %v6578_v23 = vpop.eup %6577  ;;  %v4171_v34 = vrot.slane %v4170_v5, 4  ;;  %v4131_v20 = vmul.f32 %v6576_v9, %v8704_v25  ;;  %6601 = vrcp.f32 %v3072_v38  ;;  %v5506_v53 = vmul.f32 -1.442695, %v8926_v42  ;;  %10041 = vst [vmem:[#allocation20_spill] sm:$0xff] %v8943_v17  ;;  %v8956_v25 = vpop.f32.mrf.mxu1 }
 0x214   :  { %v6580_v14 = vpop.eup %6579  ;;  %v10042_v49 = vrot.slane %v8758_v56, 1  ;;  %6603 = vrcp.f32 %v3073_v48  ;;  %v8951_v51 = vadd.f32 %v10037_v61, %v2186_v31  ;;  %v8954_v2 = vadd.f32 %v10038_v50, %v2188_v19  ;;  %v8958_v62 = vpop.f32.mrf.mxu0 }
 0x215   :  { %v6582_v4 = vpop.eup %6581  ;;  %v4172_v58 = vadd.f32 %v4171_v34, %v4170_v5  ;;  %v4183_v44 = vadd.f32 %v4182_v60, %v4131_v20  ;;  %v3082_v30 = vadd.f32 1.0, %v6580_v14  ;;  %6605 = vpow2.f32 %v5505_v33  ;;  %10043 = vst [vmem:[#allocation7_spill] sm:$0xff] %v8958_v62  ;;  %v2086_v9 = vpop.f32.mrf.mxu1 }
 0x216   :  { %v8948_v7 = vadd.f32 %v10042_v49, %v8758_v56  ;;  %v6584_v38 = vpop.eup %6583  ;;  %v3292_v56 = vmul.f32 %v6578_v23, %v8712_v0  ;;  %6607 = vpow2.f32 %v5506_v53  ;;  %v5515_v31 = vmul.f32 -1.442695, %v8951_v51  ;;  %v8963_v5 = vpop.f32.mrf.mxu0 }
 0x217   :  { %v5516_v24 = vmul.f32 -1.442695, %v8954_v2  ;;  %v6586_v48 = vpop.eup %6585  ;;  %v4173_v19 = vrot.slane %v4172_v58, 2  ;;  %v4184_v49 = vrot.slane %v4183_v44, 4  ;;  %6609 = vrcp.f32 %v3082_v30  ;;  %v2088_v23 = vpop.f32.mrf.mxu1 }
 0x218   :  { %v3083_v15 = vadd.f32 1.0, %v6584_v38  ;;  %v6588_v60 = vpop.eup %6587  ;;  %v3092_v33 = vadd.f32 1.0, %v6586_v48  ;;  %6611 = vpow2.f32 %v5515_v31  ;;  %v2190_v34 = vadd.f32 %v8709_v6, %v8913_v12  ;;  %v8970_v17 = vpop.f32.mrf.mxu0 }
 0x219   :  { %v2192_v0 = vadd.f32 %v8723_v16, %v2078_v32  ;;  %v6590_v20 = vpop.eup %6589  ;;  %v4174_v53 = vadd.f32 %v4173_v19, %v4172_v58  ;;  %v8968_v14 = vadd.f32 %v4184_v49, %v4183_v44  ;;  %v3093_v62 = vadd.f32 1.0, %v6588_v60  ;;  %v2092_v6 = vpop.f32.mrf.mxu1 }
 0x21a   :  { %6613 = vrcp.f32 %v3083_v15  ;;  %v6592_v30 = vpop.eup %6591  ;;  %v3102_v38 = vadd.f32 1.0, %v6590_v20  ;;  %v8973_v48 = vadd.f32 %v10037_v61, %v2190_v34  ;;  %v3293_v32 = vmul.f32 %v6582_v4, %v8715_v28  ;;  %v8979_v44 = vpop.f32.mrf.mxu0 }
 0x21b   :  { %6615 = vrcp.f32 %v3092_v33  ;;  %v8976_v31 = vadd.f32 %v10038_v50, %v2192_v0  ;;  %v6594_v16 = vpop.eup %6593  ;;  %v4175_v12 = vrot.slane %v4174_v53, 1  ;;  %v3103_v58 = vadd.f32 1.0, %v6592_v30  ;;  %v2094_v33 = vpop.f32.mrf.mxu1 }
 0x21c   :  { %6617 = vrcp.f32 %v3093_v62  ;;  %v6596_v19 = vpop.eup %6595  ;;  %v3302_v15 = vmul.f32 %v6594_v16, %v8756_v26  ;;  %v5525_v60 = vmul.f32 -1.442695, %v8973_v48  ;;  %v8987_v4 = vpop.f32.mrf.mxu0  ;;  %v2196_v49 = vadd.f32 %v8731_v39, %v8936_v35 }
 0x21d   :  { %6619 = vrcp.f32 %v3102_v38  ;;  %v6598_v34 = vpop.eup %6597  ;;  %v8984_v0 = vadd.f32 %v4175_v12, %v4174_v53  ;;  %v3112_v20 = vadd.f32 1.0, %v6596_v19  ;;  %v5526_v28 = vmul.f32 -1.442695, %v8976_v31  ;;  %v2096_v26 = vpop.f32.mrf.mxu1 }
 0x21e   :  { %6621 = vrcp.f32 %v3103_v58  ;;  %v3420_v62 = vadd.f32 %v3302_v15, %v3292_v56  ;;  %v3113_v30 = vadd.f32 1.0, %v6598_v34  ;;  %v2198_v16 = vadd.f32 %v8749_v47, %v8956_v25  ;;  %v8995_v58 = vpop.f32.mrf.mxu0 }
 0x21f   :  { %6623 = vpow2.f32 %v5516_v24  ;;  %v6600_v38 = vpop.eup %6599  ;;  %v2200_v53 = vadd.f32 %v8761_v37, %v2086_v9  ;;  %v2202_v12 = vadd.f32 %v8780_v18, %v2088_v23  ;;  %v8999_v24 = vadd.f32 %v10037_v61, %v2196_v49  ;;  %v2098_v35 = vpop.f32.mrf.mxu1 }
 0x220   :  { %6625 = vrcp.f32 %v3112_v20  ;;  %v6602_v19 = vpop.eup %6601  ;;  %v3303_v56 = vmul.f32 %v6600_v38, %v8768_v8  ;;  %v2206_v39 = vadd.f32 %v8791_v36, %v2092_v6  ;;  %v9004_v47 = vadd.f32 %v10038_v50, %v2198_v16  ;;  %v9009_v18 = vpop.f32.mrf.mxu0 }
 0x221   :  { %6627 = vrcp.f32 %v3113_v30  ;;  %v6604_v15 = vpop.eup %6603  ;;  %v3312_v34 = vmul.f32 %v6602_v19, %v8789_v22  ;;  %v9007_v37 = vadd.f32 %v10037_v61, %v2200_v53  ;;  %v5535_v36 = vmul.f32 -1.442695, %v8999_v24  ;;  %v9013_v23 = vpop.f32.mrf.mxu1 }
 0x222   :  { %6629 = vpow2.f32 %v5525_v60  ;;  %v6606_v8 = vpop.eup %6605  ;;  %v3433_v25 = vadd.f32 %v3303_v56, %v3293_v32  ;;  %v3313_v9 = vmul.f32 %v6604_v15, %v8797_v52  ;;  %v5536_v60 = vmul.f32 -1.442695, %v9004_v47  ;;  %v9017_v30 = vpop.f32.mrf.mxu0 }
 0x223   :  { %6631 = vpow2.f32 %v5526_v28  ;;  %v6608_v6 = vpop.eup %6607  ;;  %v3421_v22 = vadd.f32 %v3420_v62, %v3312_v34  ;;  %v3122_v49 = vadd.f32 1.0, %v6606_v8  ;;  %v5545_v20 = vmul.f32 -1.442695, %v9007_v37  ;;  %v9022_v32 = vpop.f32.mrf.mxu1 }
 0x224   :  { %v6610_v38 = vpop.eup %6609  ;;  %v3434_v16 = vadd.f32 %v3433_v25, %v3313_v9  ;;  %v3123_v53 = vadd.f32 1.0, %v6608_v6  ;;  %6633 = vpow2.f32 %v5535_v36  ;;  %v9020_v52 = vadd.f32 %v10038_v50, %v2202_v12  ;;  %v9029_v15 = vpop.f32.mrf.mxu0 }
 0x225   :  { %v6612_v28 = vpop.eup %6611  ;;  %v3322_v19 = vmul.f32 %v6610_v38, %v8817_v40  ;;  %6635 = vrcp.f32 %v3122_v49  ;;  %v9026_v62 = vadd.f32 %v10037_v61, %v2206_v39  ;;  %v2208_v56 = vadd.f32 %v8808_v43, %v2094_v33  ;;  %v9033_v9 = vpop.f32.mrf.mxu1 }
 0x226   :  { %6637 = vrcp.f32 %v3123_v53  ;;  %v3822_v8 = vadd.f32 1.0, %v6612_v28  ;;  %v5546_v25 = vmul.f32 -1.442695, %v9020_v52  ;;  %v2210_v12 = vadd.f32 %v8821_v27, %v2096_v26  ;;  %v9037_v49 = vpop.f32.mrf.mxu0 }
 0x227   :  { %v6614_v34 = vpop.eup %6613  ;;  %v3422_v6 = vadd.f32 %v3421_v22, %v3322_v19  ;;  %6639 = vpow2.f32 %v5536_v60  ;;  %v5555_v39 = vmul.f32 -1.442695, %v9026_v62  ;;  %10044 = vst [vmem:[#allocation10_spill] sm:$0xff] %v9037_v49  ;;  %v9041_v38 = vadd.f32 %v10038_v50, %v2208_v56  ;;  %v9046_v26 = vpop.f32.mrf.mxu1 }
 0x228   :  { %v6616_v36 = vpop.eup %6615  ;;  %v3323_v40 = vmul.f32 %v6614_v34, %v8828_v21  ;;  %6641 = vrcp.f32 %v3822_v8  ;;  %v9044_v27 = vadd.f32 %v10037_v61, %v2210_v12  ;;  %v10045_v21 = vrot.slane %v8968_v14, 2 }
 0x229   :  { %v6618_v43 = vpop.eup %6617  ;;  %v3332_v33 = vmul.f32 %v6616_v36, %v8838_v29  ;;  %6643 = vpow2.f32 %v5545_v20  ;;  %v2212_v28 = vadd.f32 %v8840_v63, %v2098_v35  ;;  %v9053_v29 = vpop.f32.mrf.mxu0  ;;  %v5556_v8 = vmul.f32 -1.442695, %v9041_v38 }
 0x22a   :  { %v6620_v22 = vpop.eup %6619  ;;  %v4187_v60 = vadd.f32 %v10045_v21, %v8968_v14  ;;  %v3333_v53 = vmul.f32 %v6618_v43, %v8849_v46  ;;  %v3435_v56 = vadd.f32 %v3434_v16, %v3323_v40  ;;  %6645 = vpow2.f32 %v5546_v25  ;;  %v9057_v12 = vpop.f32.mrf.mxu1 }
 0x22b   :  { %v6622_v19 = vpop.eup %6621  ;;  %v3342_v34 = vmul.f32 %v6620_v22, %v8873_v59  ;;  %v3423_v49 = vadd.f32 %v3422_v6, %v3332_v33  ;;  %6647 = vpow2.f32 %v5555_v39  ;;  %v5565_v46 = vmul.f32 -1.442695, %v9044_v27  ;;  %v9061_v20 = vpop.f32.mrf.mxu0 }
 0x22c   :  { %v6624_v36 = vpop.eup %6623  ;;  %v3343_v14 = vmul.f32 %v6622_v19, %v8876_v45  ;;  %10046 = vst [vmem:[#allocation17_spill] sm:$0xff] %v9061_v20  ;;  %v3436_v35 = vadd.f32 %v3435_v56, %v3333_v53  ;;  %6649 = vpow2.f32 %v5556_v8  ;;  %v9064_v59 = vadd.f32 %v10038_v50, %v2212_v28  ;;  %v9066_v16 = vpop.f32.mrf.mxu1  ;;  %v10047_v45 = vld [vmem:[#allocation8_spill] sm:$0xff] }
 0x22d   :  { %v6626_v63 = vpop.eup %6625  ;;  %v3823_v43 = vadd.f32 1.0, %v6624_v36  ;;  %v3424_v40 = vadd.f32 %v3423_v49, %v3342_v34  ;;  %6651 = vpow2.f32 %v5565_v46  ;;  %v10048_v39 = vrot.slane %v10047_v45, 2  ;;  %v9072_v22 = vpop.f32.mrf.mxu0 }
 0x22e   :  { %v6628_v25 = vpop.eup %6627  ;;  %v3352_v6 = vmul.f32 %v6626_v63, %v8896_v57  ;;  %10049 = vst [vmem:[#allocation9_spill] sm:$0xff] %v9072_v22  ;;  %v3437_v53 = vadd.f32 %v3436_v35, %v3343_v14  ;;  %v5566_v28 = vmul.f32 -1.442695, %v9064_v59  ;;  %v4188_v56 = vrot.slane %v4187_v60, 1  ;;  %v9076_v8 = vpop.f32.mrf.mxu1 }
 0x22f   :  { %v3417_v33 = vadd.f32 %v10048_v39, %v10047_v45  ;;  %v6630_v21 = vpop.eup %6629  ;;  %v3353_v19 = vmul.f32 %v6628_v25, %v8901_v54  ;;  %6653 = vrcp.f32 %v3823_v43  ;;  %v4271_v34 = vsel %vm4268_vm1, %v8948_v7, %v8984_v0  ;;  %v9081_v46 = vpop.f32.mrf.mxu0  ;;  %v10050_v43 = vld [vmem:[#allocation16_spill] sm:$0xff] }
 0x230   :  { %v6632_v36 = vpop.eup %6631  ;;  %v3832_v49 = vadd.f32 1.0, %v6630_v21  ;;  %v3425_v63 = vadd.f32 %v3424_v40, %v3352_v6  ;;  %6655 = vpow2.f32 %v5566_v28  ;;  %v4189_v14 = vadd.f32 %v4188_v56, %v4187_v60  ;;  %v9083_v54 = vpop.f32.mrf.mxu1 }
 0x231   :  { %v3418_v57 = vrot.slane %v3417_v33, 1  ;;  %v3833_v45 = vadd.f32 1.0, %v6632_v36  ;;  %v6634_v35 = vpop.eup %6633  ;;  %v3438_v25 = vadd.f32 %v3437_v53, %v3353_v19  ;;  %v2216_v21 = vadd.f32 %v10050_v43, %v9013_v23  ;;  %v9087_v22 = vpop.f32.mrf.mxu0 }
 0x232   :  { %6657 = vrcp.f32 %v3832_v49  ;;  %v6636_v20 = vpop.eup %6635  ;;  %v3842_v7 = vadd.f32 1.0, %v6634_v35  ;;  %v4281_v0 = vpack.c.bf16 %v4271_v34, %v4271_v34  ;;  %v2218_v40 = vadd.f32 %v8866_v10, %v9022_v32  ;;  %v9091_v6 = vpop.f32.mrf.mxu1 }
 0x233   :  { %v3419_v39 = vadd.f32 %v3418_v57, %v3417_v33  ;;  %6659 = vrcp.f32 %v3833_v45  ;;  %v6638_v60 = vpop.eup %6637  ;;  %v3362_v28 = vmul.f32 %v6636_v20, %v8923_v1  ;;  %v9096_v33 = vadd.f32 %v10037_v61, %v2216_v21  ;;  %v9100_v19 = vpop.f32.mrf.mxu0 }
 0x234   :  { %v2220_v23 = vadd.f32 %v8880_v55, %v9033_v9  ;;  %v6640_v56 = vpop.eup %6639  ;;  %v3363_v36 = vmul.f32 %v6638_v60, %v8926_v42  ;;  %6661 = vrcp.f32 %v3842_v7  ;;  %v2222_v32 = vadd.f32 %v8898_v11, %v9046_v26  ;;  %v9105_v49 = vpop.f32.mrf.mxu1 }
 0x235   :  { %v4272_v53 = vsel %vm4268_vm1, %v3419_v39, %v4189_v14  ;;  %v6642_v1 = vpop.eup %6641  ;;  %v3426_v20 = vadd.f32 %v3425_v63, %v3362_v28  ;;  %v3843_v57 = vadd.f32 1.0, %v6640_v56  ;;  %v5575_v34 = vmul.f32 -1.442695, %v9096_v33  ;;  %v9111_v55 = vpop.f32.mrf.mxu0 }
 0x236   :  { %v4282_v10 = vpack.c.bf16 %v4272_v53, %v4272_v53  ;;  %v9109_v45 = vadd.f32 %v10038_v50, %v2218_v40  ;;  %v6644_v9 = vpop.eup %6643  ;;  %v3439_v14 = vadd.f32 %v3438_v25, %v3363_v36  ;;  %v9113_v42 = vpop.f32.mrf.mxu1  ;;  %v9116_v26 = vadd.f32 %v10037_v61, %v2220_v23  ;;  %v6277_v61 = vld [vmem:[%s9966_s3 + $0x1f8] sm:$0xff]  }
 0x237   :  { %v6646_v35 = vpop.eup %6645  ;;  %v3427_v39 = vrot.slane %v3426_v20, 4  ;;  %6663 = vrcp.f32 %v3843_v57  ;;  %v3852_v11 = vadd.f32 1.0, %v6644_v9  ;;  %v9118_v63 = vpop.f32.mrf.mxu0  ;;  %v9121_v40 = vadd.f32 %v10038_v50, %v2222_v32  ;;  %v10051_v36 = vld [vmem:[#allocation19_spill] sm:$0xff]  ;;  %5738 = vmatprep.subr.bf16.mxu1 %v6277_v61 }
 0x238   :  { %5008 = vmatprep.mubr.bf16.mxu1 %v4282_v10  ;;  %v6648_v43 = vpop.eup %6647  ;;  %v3440_v21 = vrot.slane %v3439_v14, 4  ;;  %v3853_v7 = vadd.f32 1.0, %v6646_v35  ;;  %6665 = vpow2.f32 %v5575_v34  ;;  %v9123_v25 = vpop.f32.mrf.mxu1  ;;  %v5576_v53 = vmul.f32 -1.442695, %v9109_v45  ;;  %v6278_v57 = vld [vmem:[%s9966_s3 + $0x1b8] sm:$0xff]  }
 0x239   :  { %5009 = vmatmul.mubr.bf16.vlgmr.msra.gmra.mxu1 %v4281_v0  ;;  %v6650_v60 = vpop.eup %6649  ;;  %6667 = vrcp.f32 %v3852_v11  ;;  %v3862_v28 = vadd.f32 1.0, %v6648_v43  ;;  %v9126_v0 = vpop.f32.mrf.mxu0  ;;  %v2372_v50 = vadd.f32 %v8905_v3, %v9057_v12  ;;  %v2704_v10 = vsub.s32 6, %v10051_v36  ;;  %v6950_v12 = vld [vmem:[%s9965_s2] sm:$0xff] }
 0x23a   :  { %v6652_v23 = vpop.eup %6651  ;;  %6669 = vrcp.f32 %v3853_v7  ;;  %v3863_v56 = vadd.f32 1.0, %v6650_v60  ;;  %v9134_v32 = vpop.f32.mrf.mxu1  ;;  %v9139_v34 = vadd.f32 %v3427_v39, %v3426_v20  ;;  %v5585_v35 = vmul.f32 -1.442695, %v9116_v26  ;;  %5739 = vmatpush3.bf16.msra.mxu1 %v6278_v57 }
 0x23b   :  { %6671 = vrcp.f32 %v3862_v28  ;;  %v3872_v9 = vadd.f32 1.0, %v6652_v23  ;;  %v9142_v11 = vpop.f32.mrf.mxu0  ;;  %v9144_v7 = vadd.f32 %v3440_v21, %v3439_v14  ;;  %v5586_v3 = vmul.f32 -1.442695, %v9121_v40  ;;  %v6279_v23 = vld [vmem:[%s9966_s3 + $0x1f0] sm:$0xff]  }
 0x23c   :  { %v6654_v43 = vpop.eup %6653  ;;  %6673 = vrcp.f32 %v3863_v56  ;;  %v9150_v60 = vrot.slane %v6950_v12, %v2704_v10  ;;  %v9152_v20 = vpop.f32.mrf.mxu1  ;;  %v2374_v28 = vadd.f32 %v8920_v41, %v9066_v16  ;;  %v2708_v14 = vsub.s32 7, %v10051_v36  ;;  %5740 = vmatprep.subr.bf16.mxu1 %v6279_v23 }
 0x23d   :  { %v6656_v39 = vpop.eup %6655  ;;  %6675 = vrcp.f32 %v3872_v9  ;;  %v2376_v21 = vadd.f32 %v8929_v13, %v9076_v8  ;;  %v9159_v61 = vpop.f32.mrf.mxu0  ;;  %v4062_v10 = vmul.f32 %v6642_v1, %v8951_v51  ;;  %v6280_v13 = vld [vmem:[%s9966_s3 + $0x1b0] sm:$0xff]  }
 0x23e   :  { %10052 = vst [vmem:[#allocation11_spill] sm:$0xff] %v9159_v61  ;;  %v3873_v57 = vadd.f32 1.0, %v6656_v39  ;;  %6677 = vpow2.f32 %v5576_v53  ;;  %v9166_v9 = vadd.f32 %v9150_v60, %v2372_v50  ;;  %v9168_v41 = vpop.f32.mrf.mxu1  ;;  %v9175_v61 = vrot.slane %v6950_v12, %v2708_v14  ;;  %5741 = vmatpush3.bf16.msra.mxu1 %v6280_v13  ;;  %v10056_v13 = vld [vmem:[#allocation7_spill] sm:$0xff] }
 0x23f   :  { %v6658_v56 = vpop.eup %6657  ;;  %6679 = vpow2.f32 %v5585_v35  ;;  %v9177_v51 = vpop.f32.mrf.mxu0  ;;  %v9182_v50 = vadd.f32 %v9150_v60, %v2376_v21  ;;  %v4063_v35 = vmul.f32 %v6654_v43, %v8954_v2  ;;  %v6282_v2 = vld [vmem:[%s9966_s3 + $0x1a8] sm:$0xff]  }
 0x240   :  { %v6660_v16 = vpop.eup %6659  ;;  %v4072_v36 = vmul.f32 %v6658_v56, %v8973_v48  ;;  %10053 = vst [vmem:[#allocation18_spill] sm:$0xff] %v9177_v51  ;;  %6681 = vrcp.f32 %v3873_v57  ;;  %v5437_v53 = vmul.f32 -1.442695, %v9166_v9  ;;  %v9184_v39 = vpop.f32.mrf.mxu1  ;;  %v3442_v48 = vrot.slane %v9144_v7, 2 }
 0x241   :  { %v4073_v1 = vmul.f32 %v6660_v16, %v8976_v31  ;;  %v6662_v8 = vpop.eup %6661  ;;  %6683 = vpow2.f32 %v5586_v3  ;;  %v9189_v12 = vadd.f32 %v9175_v61, %v2374_v28  ;;  %v9191_v14 = vpop.f32.mrf.mxu0  ;;  %v6281_v31 = vld [vmem:[%s9966_s3 + $0x1e8] sm:$0xff]   ;;  %v5447_v56 = vmul.f32 -1.442695, %v9182_v50  ;;  %v10055_v3 = vld [vmem:[#allocation20_spill] sm:$0xff] }
 0x242   :  { %10054 = vst [vmem:[#allocation12_spill] sm:$0xff] %v9191_v14  ;;  %v4190_v21 = vadd.f32 %v4072_v36, %v4062_v10  ;;  %v4082_v23 = vmul.f32 %v6662_v8, %v8999_v24  ;;  %6685 = vpow2.f32 %v5437_v53  ;;  %v9198_v57 = vpop.f32.mrf.mxu1  ;;  %v2378_v28 = vadd.f32 %v10055_v3, %v9083_v54  ;;  %5742 = vmatprep.subr.bf16.mxu1 %v6281_v31 }
 0x243   :  { %v5438_v43 = vmul.f32 -1.442695, %v9189_v12  ;;  %v2382_v16 = vadd.f32 %v10056_v13, %v9091_v6  ;;  %v2384_v24 = vadd.f32 %v8963_v5, %v9105_v49  ;;  %v9210_v36 = vpop.f32.mrf.mxu0  ;;  %v4203_v8 = vadd.f32 %v4073_v1, %v4063_v35  ;;  %5743 = vmatpush3.bf16.msra.mxu1 %v6282_v2 }
 0x244   :  { %v6664_v10 = vpop.eup %6663  ;;  %6687 = vpow2.f32 %v5447_v56  ;;  %v2386_v53 = vadd.f32 %v8970_v17, %v9113_v42  ;;  %v2388_v14 = vadd.f32 %v8979_v44, %v9123_v25  ;;  %v9216_v51 = vpop.f32.mrf.mxu1  ;;  %v9220_v5 = vadd.f32 %v9175_v61, %v2378_v28  ;;  %v6283_v17 = vld [vmem:[%s9966_s3 + $0x1e0] sm:$0xff]  }
 0x245   :  { %v6666_v54 = vpop.eup %6665  ;;  %v4083_v6 = vmul.f32 %v6664_v10, %v9004_v47  ;;  %6689 = vpow2.f32 %v5438_v43  ;;  %v9223_v49 = vadd.f32 %v9150_v60, %v2382_v16  ;;  %v9225_v1 = vpop.f32.mrf.mxu0  ;;  %v9231_v25 = vadd.f32 %v9175_v61, %v2384_v24  ;;  %v6284_v56 = vld [vmem:[%s9966_s3 + $0x1a0] sm:$0xff]   ;;  %5744 = vmatprep.subr.bf16.mxu1 %v6283_v17 }
 0x246   :  { %v6668_v44 = vpop.eup %6667  ;;  %v3882_v42 = vadd.f32 1.0, %v6666_v54  ;;  %v9234_v47 = vadd.f32 %v9150_v60, %v2386_v53  ;;  %v9237_v35 = vadd.f32 %v9175_v61, %v2388_v14  ;;  %v9239_v31 = vpop.f32.mrf.mxu1  ;;  %v4191_v43 = vadd.f32 %v4190_v21, %v4082_v23 }
 0x247   :  { %v6670_v2 = vpop.eup %6669  ;;  %v4092_v3 = vmul.f32 %v6668_v44, %v9007_v37  ;;  %v5448_v28 = vmul.f32 -1.442695, %v9220_v5  ;;  %v5457_v13 = vmul.f32 -1.442695, %v9223_v49  ;;  %v9247_v16 = vpop.f32.mrf.mxu0  ;;  %v5458_v10 = vmul.f32 -1.442695, %v9231_v25  ;;  %5745 = vmatpush3.bf16.msra.mxu1 %v6284_v56 }
 0x248   :  { %10057 = vst [vmem:[#allocation13_spill] sm:$0xff] %v9247_v16  ;;  %v6672_v24 = vpop.eup %6671  ;;  %v4093_v14 = vmul.f32 %v6670_v2, %v9020_v52  ;;  %6691 = vrcp.f32 %v3882_v42  ;;  %v5467_v53 = vmul.f32 -1.442695, %v9234_v47  ;;  %v9252_v54 = vpop.f32.mrf.mxu1  ;;  %v4204_v37 = vadd.f32 %v4203_v8, %v4083_v6  ;;  %v6285_v52 = vld [vmem:[%s9966_s3 + $0x1d8] sm:$0xff]  }
 0x249   :  { %v6674_v21 = vpop.eup %6673  ;;  %v4102_v23 = vmul.f32 %v6672_v24, %v9026_v62  ;;  %6693 = vpow2.f32 %v5448_v28  ;;  %v5468_v44 = vmul.f32 -1.442695, %v9237_v35  ;;  %v9256_v16 = vpop.f32.mrf.mxu0  ;;  %v10059_v42 = vrot.slane %v9139_v34, 2  ;;  %v6286_v6 = vld [vmem:[%s9966_s3 + $0x198] sm:$0xff]   ;;  %5746 = vmatprep.subr.bf16.mxu1 %v6285_v52 }
 0x24a   :  { %10058 = vst [vmem:[#allocation14_spill] sm:$0xff] %v9256_v16  ;;  %v6676_v17 = vpop.eup %6675  ;;  %v9267_v56 = vadd.f32 %v3442_v48, %v9144_v7  ;;  %6695 = vpow2.f32 %v5457_v13  ;;  %v2392_v62 = vadd.f32 %v8987_v4, %v9134_v32  ;;  %v9271_v8 = vpop.f32.mrf.mxu1  ;;  %v4192_v24 = vadd.f32 %v4191_v43, %v4092_v3 }
 0x24b   :  { %v9264_v2 = vadd.f32 %v10059_v42, %v9139_v34  ;;  %v6678_v28 = vpop.eup %6677  ;;  %v9276_v16 = vadd.f32 %v4204_v37, %v4093_v14  ;;  %6697 = vpow2.f32 %v5458_v10  ;;  %v2394_v34 = vadd.f32 %v8995_v58, %v9152_v20  ;;  %v9280_v7 = vpop.f32.mrf.mxu0  ;;  %5747 = vmatpush3.bf16.msra.mxu1 %v6286_v6 }
 0x24c   :  { %v6680_v48 = vpop.eup %6679  ;;  %v4103_v4 = vmul.f32 %v6674_v21, %v9041_v38  ;;  %v3883_v32 = vadd.f32 1.0, %v6678_v28  ;;  %6699 = vpow2.f32 %v5467_v53  ;;  %v9284_v13 = vadd.f32 %v9150_v60, %v2392_v62  ;;  %v9286_v42 = vpop.f32.mrf.mxu1  ;;  %v6287_v38 = vld [vmem:[%s9966_s3 + $0x1d0] sm:$0xff]  }
 0x24d   :  { %v6682_v43 = vpop.eup %6681  ;;  %v4193_v3 = vadd.f32 %v4192_v24, %v4102_v23  ;;  %v3892_v14 = vadd.f32 1.0, %v6680_v48  ;;  %6701 = vpow2.f32 %v5468_v44  ;;  %v9289_v58 = vadd.f32 %v9175_v61, %v2394_v34  ;;  %v9291_v20 = vpop.f32.mrf.mxu0  ;;  %v6288_v44 = vld [vmem:[%s9966_s3 + $0x190] sm:$0xff]   ;;  %5748 = vmatprep.subr.bf16.mxu1 %v6287_v38 }
 0x24e   :  { %v6684_v10 = vpop.eup %6683  ;;  %v4112_v53 = vmul.f32 %v6676_v17, %v9044_v27  ;;  %6703 = vrcp.f32 %v3883_v32  ;;  %v5477_v21 = vmul.f32 -1.442695, %v9284_v13  ;;  %v2396_v37 = vadd.f32 %v9009_v18, %v9168_v41  ;;  %v9300_v23 = vpop.f32.mrf.mxu1 }
 0x24f   :  { %v6686_v52 = vpop.eup %6685  ;;  %6705 = vrcp.f32 %v3892_v14  ;;  %v3893_v62 = vadd.f32 1.0, %v6684_v10  ;;  %v5478_v6 = vmul.f32 -1.442695, %v9289_v58  ;;  %v2398_v27 = vadd.f32 %v9017_v30, %v9184_v39  ;;  %v9308_v17 = vpop.f32.mrf.mxu0  ;;  %5749 = vmatpush3.bf16.msra.mxu1 %v6288_v44  ;;  %v10060_v39 = vld [vmem:[#allocation10_spill] sm:$0xff] }
 0x250   :  { %v4113_v28 = vmul.f32 %v6682_v43, %v9064_v59  ;;  %v3054_v18 = vadd.f32 1.0, %v6686_v52  ;;  %6707 = vpow2.f32 %v5477_v21  ;;  %v9312_v41 = vadd.f32 %v9150_v60, %v2396_v37  ;;  %v9314_v24 = vpop.f32.mrf.mxu1  ;;  %v6289_v43 = vld [vmem:[%s9966_s3 + $0x1c8] sm:$0xff]  }
 0x251   :  { %v6688_v34 = vpop.eup %6687  ;;  %6709 = vrcp.f32 %v3893_v62  ;;  %v9317_v48 = vadd.f32 %v9175_v61, %v2398_v27  ;;  %v2402_v30 = vadd.f32 %v9029_v15, %v9198_v57  ;;  %v2404_v32 = vadd.f32 %v10060_v39, %v9216_v51  ;;  %v9323_v59 = vpop.f32.mrf.mxu0  ;;  %v6290_v15 = vld [vmem:[%s9966_s3 + $0x188] sm:$0xff]   ;;  %5750 = vmatprep.subr.bf16.mxu1 %v6289_v43 }
 0x252   :  { %v6690_v14 = vpop.eup %6689  ;;  %6711 = vrcp.f32 %v3054_v18  ;;  %v3064_v38 = vadd.f32 1.0, %v6688_v34  ;;  %v5487_v10 = vmul.f32 -1.442695, %v9312_v41  ;;  %v2406_v21 = vadd.f32 %v9053_v29, %v9239_v31  ;;  %v2308_v37 = vpop.f32.mrf.mxu1  ;;  %v10061_v31 = vld [vmem:[#allocation17_spill] sm:$0xff] }
 0x253   :  { %v3055_v51 = vadd.f32 1.0, %v6690_v14  ;;  %6713 = vpow2.f32 %v5478_v6  ;;  %v5488_v57 = vmul.f32 -1.442695, %v9317_v48  ;;  %v9336_v44 = vadd.f32 %v9150_v60, %v2402_v30  ;;  %v9338_v52 = vpop.f32.mrf.mxu0  ;;  %5751 = vmatpush3.bf16.msra.mxu1 %v6290_v15  ;;  %v10062_v39 = vld [vmem:[#allocation9_spill] sm:$0xff] }
 0x254   :  { %6715 = vrcp.f32 %v3064_v38  ;;  %v9341_v62 = vadd.f32 %v9175_v61, %v2404_v32  ;;  %v9344_v29 = vadd.f32 %v9150_v60, %v2406_v21  ;;  %v2408_v27 = vadd.f32 %v10061_v31, %v9252_v54  ;;  %v2310_v18 = vpop.f32.mrf.mxu1  ;;  %v6291_v32 = vld [vmem:[%s9966_s3 + $0x1c0] sm:$0xff]  }
 0x255   :  { %v6692_v6 = vpop.eup %6691  ;;  %v4206_v34 = vadd.f32 %v9276_v16, %v4103_v4  ;;  %6717 = vrcp.f32 %v3055_v51  ;;  %v5497_v30 = vmul.f32 -1.442695, %v9336_v44  ;;  %v2412_v43 = vadd.f32 %v10062_v39, %v9271_v8  ;;  %v9352_v14 = vpop.f32.mrf.mxu0  ;;  %v6292_v8 = vld [vmem:[%s9966_s3 + $0x180] sm:$0xff]   ;;  %5752 = vmatprep.subr.bf16.mxu1 %v6291_v32 }
 0x256   :  { %v6694_v38 = vpop.eup %6693  ;;  %v4194_v21 = vadd.f32 %v4193_v3, %v4112_v53  ;;  %v4122_v54 = vmul.f32 %v6692_v6, %v9096_v33  ;;  %6719 = vpow2.f32 %v5487_v10  ;;  %v2414_v16 = vadd.f32 %v9081_v46, %v9286_v42  ;;  %v9360_v4 = vpop.f32.mrf.mxu1 }
 0x257   :  { %v6696_v15 = vpop.eup %6695  ;;  %v4207_v51 = vadd.f32 %v4206_v34, %v4113_v28  ;;  %v3065_v31 = vadd.f32 1.0, %v6694_v38  ;;  %6721 = vpow2.f32 %v5488_v57  ;;  %v9366_v39 = vadd.f32 %v9175_v61, %v2408_v27  ;;  %5753 = vmatpush3.bf16.msra.mxu1 %v6292_v8  ;;  %v9375_v27 = vpop.f32.mrf.mxu0 }
 0x258   :  { %v6698_v3 = vpop.eup %6697  ;;  %v3074_v33 = vadd.f32 1.0, %v6696_v15  ;;  %6723 = vpow2.f32 %v5497_v30  ;;  %v5498_v53 = vmul.f32 -1.442695, %v9341_v62  ;;  %v5507_v46 = vmul.f32 -1.442695, %v9344_v29  ;;  %v9370_v42 = vpop.f32.mrf.mxu1  ;;  %10063 = vst [vmem:[#allocation5_spill] sm:$0xff] %v9375_v27 }
 0x259   :  { %v6700_v10 = vpop.eup %6699  ;;  %v4195_v6 = vadd.f32 %v4194_v21, %v4122_v54  ;;  %6725 = vrcp.f32 %v3065_v31  ;;  %v3075_v28 = vadd.f32 1.0, %v6698_v3  ;;  %v9373_v57 = vadd.f32 %v9150_v60, %v2412_v43 }
 0x25a   :  { %v6702_v34 = vpop.eup %6701  ;;  %6727 = vrcp.f32 %v3074_v33  ;;  %v3084_v32 = vadd.f32 1.0, %v6700_v10  ;;  %v9378_v30 = vadd.f32 %v9175_v61, %v2414_v16  ;;  %v2416_v38 = vadd.f32 %v9087_v22, %v9300_v23  ;;  %v9382_v15 = vpop.f32.mrf.mxu1 }
 0x25b   :  { %v6704_v8 = vpop.eup %6703  ;;  %6729 = vrcp.f32 %v3075_v28  ;;  %v3085_v21 = vadd.f32 1.0, %v6702_v34  ;;  %v5508_v54 = vmul.f32 -1.442695, %v9366_v39  ;;  %v2418_v43 = vadd.f32 %v9100_v19, %v9314_v24  ;;  %v9399_v19 = vpop.f32.mrf.mxu0 }
 0x25c   :  { %10064 = vst [vmem:[#allocation6_spill] sm:$0xff] %v9378_v30  ;;  %v6706_v31 = vpop.eup %6705  ;;  %v4123_v3 = vmul.f32 %v6704_v8, %v9109_v45  ;;  %6731 = vrcp.f32 %v3084_v32  ;;  %v9389_v16 = vadd.f32 %v9150_v60, %v2416_v38  ;;  %v2422_v33 = vadd.f32 %v9111_v55, %v2308_v37  ;;  %v9392_v22 = vpop.f32.mrf.mxu1  ;;  %10065 = vst [vmem:[#allocation15_spill] sm:$0xff] %v9399_v19 }
 0x25d   :  { %v6708_v23 = vpop.eup %6707  ;;  %v4132_v10 = vmul.f32 %v6706_v31, %v9116_v26  ;;  %6733 = vrcp.f32 %v3085_v21  ;;  %v5517_v28 = vmul.f32 -1.442695, %v9373_v57  ;;  %v9397_v34 = vadd.f32 %v9175_v61, %v2418_v43 }
 0x25e   :  { %v6710_v45 = vpop.eup %6709  ;;  %v3094_v24 = vadd.f32 1.0, %v6708_v23  ;;  %6735 = vpow2.f32 %v5498_v53  ;;  %v5518_v32 = vmul.f32 -1.442695, %v9378_v30  ;;  %v2424_v55 = vadd.f32 %v9118_v63, %v2310_v18  ;;  %v9403_v37 = vpop.f32.mrf.mxu1 }
 0x25f   :  { %v6712_v38 = vpop.eup %6711  ;;  %v4208_v8 = vadd.f32 %v4207_v51, %v4123_v3  ;;  %v4196_v26 = vadd.f32 %v4195_v6, %v4132_v10  ;;  %v4133_v21 = vmul.f32 %v6710_v45, %v9121_v40  ;;  %6737 = vpow2.f32 %v5507_v46  ;;  %v9413_v51 = vpop.f32.mrf.mxu0 }
 0x260   :  { %v6714_v31 = vpop.eup %6713  ;;  %6739 = vrcp.f32 %v3094_v24  ;;  %v5527_v43 = vmul.f32 -1.442695, %v9389_v16  ;;  %v5528_v19 = vmul.f32 -1.442695, %v9397_v34  ;;  %v9409_v53 = vadd.f32 %v9150_v60, %v2422_v33  ;;  %v9411_v23 = vpop.f32.mrf.mxu1 }
 0x261   :  { %v6716_v63 = vpop.eup %6715  ;;  %v4197_v18 = vrot.slane %v4196_v26, 4  ;;  %v4209_v27 = vadd.f32 %v4208_v8, %v4133_v21  ;;  %v3095_v30 = vadd.f32 1.0, %v6714_v31  ;;  %6741 = vpow2.f32 %v5508_v54 }
 0x262   :  { %v6718_v40 = vpop.eup %6717  ;;  %v3294_v46 = vmul.f32 %v6712_v38, %v9166_v9  ;;  %v3304_v6 = vmul.f32 %v6716_v63, %v9182_v50  ;;  %6743 = vpow2.f32 %v5517_v28  ;;  %v2426_v3 = vadd.f32 %v9126_v0, %v9360_v4  ;;  %v9419_v33 = vpop.f32.mrf.mxu1 }
 0x263   :  { %v6720_v10 = vpop.eup %6719  ;;  %v4198_v45 = vadd.f32 %v4197_v18, %v4196_v26  ;;  %v4210_v24 = vrot.slane %v4209_v27, 4  ;;  %6745 = vrcp.f32 %v3095_v30  ;;  %v9422_v8 = vadd.f32 %v9175_v61, %v2424_v55  ;;  %v9430_v26 = vpop.f32.mrf.mxu0 }
 0x264   :  { %v6722_v54 = vpop.eup %6721  ;;  %v3446_v21 = vadd.f32 %v3304_v6, %v3294_v46  ;;  %v3104_v31 = vadd.f32 1.0, %v6720_v10  ;;  %6747 = vpow2.f32 %v5518_v32  ;;  %v9425_v9 = vadd.f32 %v9150_v60, %v2426_v3  ;;  %v9427_v50 = vpop.f32.mrf.mxu1  ;;  %10067 = vst [vmem:[#allocation16_spill] sm:$0xff] %v9430_v26 }
 0x265   :  { %v6724_v28 = vpop.eup %6723  ;;  %v4199_v0 = vrot.slane %v4198_v45, 2  ;;  %v3105_v4 = vadd.f32 1.0, %v6722_v54  ;;  %6749 = vpow2.f32 %v5527_v43  ;;  %v5537_v38 = vmul.f32 -1.442695, %v9409_v53 }
 0x266   :  { %10066 = vst [vmem:[#allocation8_spill] sm:$0xff] %v9425_v9  ;;  %v6726_v30 = vpop.eup %6725  ;;  %v4211_v55 = vadd.f32 %v4210_v24, %v4209_v27  ;;  %6751 = vrcp.f32 %v3104_v31  ;;  %v3114_v63 = vadd.f32 1.0, %v6724_v28  ;;  %v2428_v32 = vadd.f32 %v9142_v11, %v9370_v42  ;;  %v9434_v18 = vpop.f32.mrf.mxu1  ;;  %v10068_v11 = vld [vmem:[#allocation11_spill] sm:$0xff] }
 0x267   :  { %v6728_v46 = vpop.eup %6727  ;;  %v3295_v6 = vmul.f32 %v6718_v40, %v9189_v12  ;;  %v3305_v3 = vmul.f32 %v6726_v30, %v9220_v5  ;;  %v5538_v43 = vmul.f32 -1.442695, %v9422_v8  ;;  %v5547_v10 = vmul.f32 -1.442695, %v9425_v9  ;;  %v9449_v28 = vpop.f32.mrf.mxu0 }
 0x268   :  { %v6730_v54 = vpop.eup %6729  ;;  %v3314_v26 = vmul.f32 %v6728_v46, %v9223_v49  ;;  %6753 = vrcp.f32 %v3105_v4  ;;  %v9442_v27 = vadd.f32 %v9175_v61, %v2428_v32  ;;  %v2432_v42 = vadd.f32 %v10068_v11, %v9382_v15  ;;  %v9446_v24 = vpop.f32.mrf.mxu1 }
 0x269   :  { %v6732_v31 = vpop.eup %6731  ;;  %v4200_v12 = vadd.f32 %v4199_v0, %v4198_v45  ;;  %v3459_v40 = vadd.f32 %v3305_v3, %v3295_v6  ;;  %v3315_v5 = vmul.f32 %v6730_v54, %v9231_v25  ;;  %6755 = vrcp.f32 %v3114_v63  ;;  %v9462_v54 = vpop.f32.mrf.mxu0 }
 0x26a   :  { %v6734_v30 = vpop.eup %6733  ;;  %v4212_v9 = vrot.slane %v4211_v55, 2  ;;  %v3447_v49 = vadd.f32 %v3446_v21, %v3314_v26  ;;  %v3324_v4 = vmul.f32 %v6732_v31, %v9234_v47  ;;  %6757 = vpow2.f32 %v5528_v19  ;;  %v9452_v32 = vpop.f32.mrf.mxu1 }
 0x26b   :  { %v6736_v46 = vpop.eup %6735  ;;  %v3431_v15 = vrot.slane %v9264_v2, 1  ;;  %v3460_v11 = vadd.f32 %v3459_v40, %v3315_v5  ;;  %v3325_v45 = vmul.f32 %v6734_v30, %v9237_v35  ;;  %6759 = vpow2.f32 %v5537_v38 }
 0x26c   :  { %v6738_v0 = vpop.eup %6737  ;;  %v3448_v25 = vadd.f32 %v3447_v49, %v3324_v4  ;;  %6761 = vpow2.f32 %v5538_v43  ;;  %v5548_v63 = vmul.f32 -1.442695, %v9442_v27  ;;  %v9458_v6 = vadd.f32 %v9150_v60, %v2432_v42  ;;  %v9460_v21 = vpop.f32.mrf.mxu1  ;;  %v10069_v49 = vld [vmem:[#allocation18_spill] sm:$0xff] }
 0x26d   :  { %v6740_v47 = vpop.eup %6739  ;;  %v3461_v19 = vadd.f32 %v3460_v11, %v3325_v45  ;;  %v3115_v26 = vadd.f32 1.0, %v6736_v46  ;;  %v3124_v3 = vadd.f32 1.0, %v6738_v0  ;;  %6763 = vpow2.f32 %v5547_v10  ;;  %v10070_v46 = vld [vmem:[#allocation12_spill] sm:$0xff] }
 0x26e   :  { %v6742_v31 = vpop.eup %6741  ;;  %v4201_v35 = vrot.slane %v4200_v12, 1  ;;  %v4213_v38 = vadd.f32 %v4212_v9, %v4211_v55  ;;  %v3334_v40 = vmul.f32 %v6740_v47, %v9284_v13  ;;  %v5557_v43 = vmul.f32 -1.442695, %v9458_v6  ;;  %v9466_v5 = vpop.f32.mrf.mxu1 }
 0x26f   :  { %v6744_v42 = vpop.eup %6743  ;;  %6765 = vrcp.f32 %v3124_v3  ;;  %v3125_v30 = vadd.f32 1.0, %v6742_v31  ;;  %v2434_v4 = vadd.f32 %v10069_v49, %v9392_v22  ;;  %v2436_v10 = vadd.f32 %v10070_v46, %v9403_v37  ;;  %v9483_v37 = vpop.f32.mrf.mxu0 }
 0x270   :  { %v6746_v11 = vpop.eup %6745  ;;  %v3449_v45 = vadd.f32 %v3448_v25, %v3334_v40  ;;  %v3824_v0 = vadd.f32 1.0, %v6744_v42  ;;  %6767 = vpow2.f32 %v5548_v63  ;;  %v2438_v13 = vadd.f32 %v9210_v36, %v9411_v23  ;;  %v9474_v9 = vpop.f32.mrf.mxu1 }
 0x271   :  { %v6748_v55 = vpop.eup %6747  ;;  %v3335_v47 = vmul.f32 %v6746_v11, %v9289_v58  ;;  %6769 = vrcp.f32 %v3115_v26  ;;  %v9478_v3 = vadd.f32 %v9175_v61, %v2434_v4  ;;  %v9481_v22 = vadd.f32 %v9150_v60, %v2436_v10  ;;  %v9502_v10 = vpop.f32.mrf.mxu0 }
 0x272   :  { %v6750_v25 = vpop.eup %6749  ;;  %v4202_v31 = vadd.f32 %v4201_v35, %v4200_v12  ;;  %6771 = vrcp.f32 %v3125_v30  ;;  %v9486_v63 = vadd.f32 %v9175_v61, %v2438_v13  ;;  %v3444_v36 = vrot.slane %v9267_v56, 1  ;;  %v9489_v23 = vpop.f32.mrf.mxu1  ;;  %10071 = vst [vmem:[#allocation20_spill] sm:$0xff] %v9502_v10 }
 0x273   :  { %v6752_v58 = vpop.eup %6751  ;;  %v9491_v26 = vadd.f32 %v3461_v19, %v3335_v47  ;;  %v3834_v40 = vadd.f32 1.0, %v6750_v25  ;;  %6773 = vpow2.f32 %v5557_v43  ;;  %v5558_v42 = vmul.f32 -1.442695, %v9478_v3  ;;  %v6293_v47 = vld [vmem:[%s9966_s3 + $0x278] sm:$0xff]  }
 0x274   :  { %v3344_v49 = vmul.f32 %v6752_v58, %v9312_v41  ;;  %6775 = vrcp.f32 %v3824_v0  ;;  %v5567_v12 = vmul.f32 -1.442695, %v9481_v22  ;;  %v5568_v35 = vmul.f32 -1.442695, %v9486_v63  ;;  %v9497_v30 = vpop.f32.mrf.mxu1  ;;  %v10072_v58 = vld [vmem:[#allocation13_spill] sm:$0xff]  ;;  %5760 = vmatprep.subr.bf16.mxu0 %v6293_v47 }
 0x275   :  { %v9499_v4 = vpop.eup %6753  ;;  %v3432_v46 = vadd.f32 %v3431_v15, %v9264_v2  ;;  %6777 = vrcp.f32 %v3834_v40  ;;  %v4214_v19 = vrot.slane %v4213_v38, 1  ;;  %v3825_v13 = vadd.f32 1.0, %v6748_v55 }
 0x276   :  { %v6756_v43 = vpop.eup %6755  ;;  %v9504_v11 = vadd.f32 %v3449_v45, %v3344_v49  ;;  %6779 = vpow2.f32 %v5558_v42  ;;  %v2442_v41 = vadd.f32 %v9225_v1, %v9419_v33  ;;  %v9508_v0 = vpop.f32.mrf.mxu1  ;;  %v3445_v2 = vadd.f32 %v3444_v36, %v9267_v56 }
 0x277   :  { %v6758_v25 = vpop.eup %6757  ;;  %6781 = vpow2.f32 %v5567_v12  ;;  %v4215_v15 = vadd.f32 %v4214_v19, %v4213_v38  ;;  %v2444_v45 = vadd.f32 %v10072_v58, %v9427_v50  ;;  %v4273_v55 = vsel %vm4268_vm1, %v3432_v46, %v4202_v31  ;;  %v10073_v50 = vld [vmem:[#allocation14_spill] sm:$0xff]  ;;  %v9528_v36 = vpop.f32.mrf.mxu0 }
 0x278   :  { %v6760_v40 = vpop.eup %6759  ;;  %v3835_v42 = vadd.f32 1.0, %v6758_v25  ;;  %6783 = vpow2.f32 %v5568_v35  ;;  %v9518_v1 = vadd.f32 %v9150_v60, %v2442_v41  ;;  %v9520_v33 = vpop.f32.mrf.mxu1  ;;  %v2446_v38 = vadd.f32 %v10073_v50, %v9434_v18  ;;  %v23_v41 = vld [vmem:[%s9965_s2 + $0x8] sm:$0x3]  ;;  %v6294_v25 = vld [vmem:[%s9966_s3 + $0x238] sm:$0xff]   ;;  %v6295_v58 = vld [vmem:[%s9966_s3 + $0x270] sm:$0xff]  }
 0x279   :  { %v6762_v49 = vpop.eup %6761  ;;  %v3844_v10 = vadd.f32 1.0, %v6760_v40  ;;  %v4274_v12 = vsel %vm4268_vm1, %v3445_v2, %v4215_v15  ;;  %v9524_v56 = vadd.f32 %v9175_v61, %v2444_v45  ;;  %v4283_v2 = vpack.c.bf16 %v4273_v55, %v4273_v55  ;;  %v9554_v50 = vpop.f32.mrf.mxu0 }
 0x27a   :  { %v6764_v31 = vpop.eup %6763  ;;  %6785 = vrcp.f32 %v3835_v42  ;;  %v3845_v35 = vadd.f32 1.0, %v6762_v49  ;;  %v4284_v46 = vpack.c.bf16 %v4274_v12, %v4274_v12  ;;  %v5577_v19 = vmul.f32 -1.442695, %v9518_v1  ;;  %v9534_v47 = vpop.f32.mrf.mxu1 }
 0x27b   :  { %6787 = vrcp.f32 %v3825_v13  ;;  %v5578_v18 = vmul.f32 -1.442695, %v9524_v56  ;;  %v9541_v15 = vadd.f32 %v9150_v60, %v2446_v38  ;;  %v3854_v40 = vadd.f32 1.0, %v6764_v31 }
 0x27c   :  { %v6766_v45 = vpop.eup %6765  ;;  %6789 = vrcp.f32 %v3844_v10  ;;  %5048 = vmatprep.mubr.bf16.mxu0 %v4284_v46  ;;  %v2448_v42 = vadd.f32 %v9280_v7, %v9446_v24  ;;  %v2598_v55 = vadd.f32 %v9291_v20, %v9452_v32  ;;  %v9550_v13 = vpop.f32.mrf.mxu1  ;;  %v3354_v60 = vmul.f32 %v6756_v43, %v9336_v44  ;;  %v10074_v10 = vld [vmem:[#allocation19_spill] sm:$0xff] }
 0x27d   :  { %v6768_v49 = vpop.eup %6767  ;;  %6791 = vrcp.f32 %v3845_v35  ;;  %5049 = vmatmul.mubr.bf16.vlgmr.msra.gmra.mxu0 %v4283_v2  ;;  %v5587_v12 = vmul.f32 -1.442695, %v9541_v15  ;;  %v10075_v38 = vsub.s32 0, %v10074_v10  ;;  %v6296_v44 = vld [vmem:[%s9966_s3 + $0x230] sm:$0xff]   ;;  %v3364_v32 = vmul.f32 %v6766_v45, %v9344_v29 }
 0x27e   :  { %v6770_v46 = vpop.eup %6769  ;;  %6793 = vpow2.f32 %v5577_v19  ;;  %v9561_v7 = vadd.f32 %v9175_v61, %v2448_v42  ;;  %v9563_v20 = vpop.f32.mrf.mxu1  ;;  %5761 = vmatpush3.bf16.msra.mxu0 %v6294_v25  ;;  %v3855_v43 = vadd.f32 1.0, %v6768_v49  ;;  %v6297_v61 = vld [vmem:[%s9966_s3 + $0x268] sm:$0xff]   ;;  %v2600_v2 = vadd.f32 %v9308_v17, %v9460_v21 }
 0x27f   :  { %v9558_v31 = vrot.slane %v23_v41, %v10075_v38  ;;  %v6772_v24 = vpop.eup %6771  ;;  %6795 = vpow2.f32 %v5578_v18  ;;  %5762 = vmatprep.subr.bf16.mxu0 %v6295_v58  ;;  %v3345_v18 = vmul.f32 %v9499_v4, %v9317_v48  ;;  %v3451_v45 = vadd.f32 %v9504_v11, %v3354_v60  ;;  %v6298_v48 = vld [vmem:[%s9966_s3 + $0x228] sm:$0xff]   ;;  %v6299_v11 = vld [vmem:[%s9966_s3 + $0x260] sm:$0xff]  }
 0x280   :  { %10076 = vst [vmem:[#allocation7_spill] sm:$0xff] %v9561_v7  ;;  %v6774_v19 = vpop.eup %6773  ;;  %6797 = vrcp.f32 %v3854_v40  ;;  %v5588_v25 = vmul.f32 -1.442695, %v9561_v7  ;;  %v9578_v42 = vpop.f32.mrf.mxu1  ;;  %v10077_v38 = vsub.s32 1, %v10074_v10  ;;  %v2602_v10 = vadd.f32 %v9323_v59, %v9466_v5  ;;  %v6300_v59 = vld [vmem:[%s9966_s3 + $0x220] sm:$0xff]  }
 0x281   :  { %v9570_v35 = vadd.f32 %v9558_v31, %v2598_v55  ;;  %v6776_v29 = vpop.eup %6775  ;;  %v3864_v58 = vadd.f32 1.0, %v6774_v19  ;;  %6799 = vpow2.f32 %v5587_v12  ;;  %v9583_v55 = vpop.f32.mrf.mxu0  ;;  %v3452_v4 = vadd.f32 %v3451_v45, %v3364_v32 }
 0x282   :  { %v6778_v49 = vpop.eup %6777  ;;  %6801 = vpow2.f32 %v5588_v25  ;;  %v9588_v7 = vrot.slane %v23_v41, %v10077_v38  ;;  %v9590_v17 = vpop.f32.mrf.mxu1  ;;  %5763 = vmatpush3.bf16.msra.mxu0 %v6296_v44  ;;  %v3463_v32 = vadd.f32 %v9491_v26, %v3345_v18  ;;  %v3365_v26 = vmul.f32 %v6772_v24, %v9366_v39  ;;  %v6301_v18 = vld [vmem:[%s9966_s3 + $0x258] sm:$0xff]  }
 0x283   :  { %v5439_v40 = vmul.f32 -1.442695, %v9570_v35  ;;  %v6780_v21 = vpop.eup %6779  ;;  %6803 = vrcp.f32 %v3855_v43  ;;  %5764 = vmatprep.subr.bf16.mxu0 %v6297_v61  ;;  %v3355_v43 = vmul.f32 %v6770_v46, %v9341_v62  ;;  %v9607_v25 = vpop.f32.mrf.mxu0  ;;  %v3453_v62 = vrot.slane %v3452_v4, 4 }
 0x284   :  { %v6782_v60 = vpop.eup %6781  ;;  %v3865_v12 = vadd.f32 1.0, %v6780_v21  ;;  %v9599_v41 = vadd.f32 %v9588_v7, %v2600_v2  ;;  %v9603_v44 = vpop.f32.mrf.mxu1  ;;  %v9611_v2 = vadd.f32 %v9558_v31, %v2602_v10  ;;  %v2604_v46 = vadd.f32 %v9338_v52, %v9474_v9 }
 0x285   :  { %6805 = vpow2.f32 %v5439_v40  ;;  %v6784_v19 = vpop.eup %6783  ;;  %v3874_v61 = vadd.f32 1.0, %v6782_v60  ;;  %v2608_v60 = vadd.f32 %v9352_v14, %v9489_v23  ;;  %v3464_v24 = vadd.f32 %v3463_v32, %v3355_v43  ;;  %v9631_v9 = vpop.f32.mrf.mxu0  ;;  %v6302_v14 = vld [vmem:[%s9966_s3 + $0x218] sm:$0xff]   ;;  %v10078_v32 = vld [vmem:[#allocation6_spill] sm:$0xff] }
 0x286   :  { %6807 = vrcp.f32 %v3864_v58  ;;  %v3875_v45 = vadd.f32 1.0, %v6784_v19  ;;  %v5440_v40 = vmul.f32 -1.442695, %v9599_v41  ;;  %v9613_v38 = vpop.f32.mrf.mxu1  ;;  %5765 = vmatpush3.bf16.msra.mxu0 %v6298_v48  ;;  %v4074_v48 = vmul.f32 %v6778_v49, %v9389_v16 }
 0x287   :  { %6809 = vrcp.f32 %v3865_v12  ;;  %v6786_v5 = vpop.eup %6785  ;;  %5766 = vmatprep.subr.bf16.mxu0 %v6299_v11  ;;  %v5449_v21 = vmul.f32 -1.442695, %v9611_v2  ;;  %v4064_v10 = vmul.f32 %v6776_v29, %v9373_v57  ;;  %v9635_v16 = vadd.f32 %v9588_v7, %v2604_v46  ;;  %v6303_v29 = vld [vmem:[%s9966_s3 + $0x250] sm:$0xff]  }
 0x288   :  { %6811 = vrcp.f32 %v3874_v61  ;;  %v6788_v58 = vpop.eup %6787  ;;  %v9628_v12 = vpop.f32.mrf.mxu1  ;;  %v4075_v52 = vmul.f32 %v6786_v5, %v9397_v34  ;;  %v9642_v19 = vadd.f32 %v3453_v62, %v3452_v4  ;;  %v9644_v34 = vadd.f32 %v3464_v24, %v3365_v26  ;;  %v10079_v4 = vld [vmem:[#allocation5_spill] sm:$0xff] }
 0x289   :  { %6813 = vrcp.f32 %v3875_v45  ;;  %v6790_v39 = vpop.eup %6789  ;;  %v4065_v43 = vmul.f32 %v6788_v58, %v10078_v32  ;;  %v9648_v57 = vadd.f32 %v9558_v31, %v2608_v60  ;;  %v4216_v45 = vadd.f32 %v4074_v48, %v4064_v10  ;;  %v10080_v60 = vld [vmem:[#allocation15_spill] sm:$0xff] }
 0x28a   :  { %6815 = vpow2.f32 %v5440_v40  ;;  %v6792_v11 = vpop.eup %6791  ;;  %v9637_v49 = vpop.f32.mrf.mxu1  ;;  %5767 = vmatpush3.bf16.msra.mxu0 %v6300_v59  ;;  %v5450_v59 = vmul.f32 -1.442695, %v9635_v16  ;;  %v2610_v5 = vadd.f32 %v10079_v4, %v9497_v30  ;;  %v4084_v58 = vmul.f32 %v6790_v39, %v9409_v53  ;;  %v6304_v53 = vld [vmem:[%s9966_s3 + $0x210] sm:$0xff]  }
 0x28b   :  { %6817 = vpow2.f32 %v5449_v21  ;;  %v6794_v23 = vpop.eup %6793  ;;  %5768 = vmatprep.subr.bf16.mxu0 %v6301_v18  ;;  %v4229_v46 = vadd.f32 %v4075_v52, %v4065_v43  ;;  %v9659_v18 = vpop.f32.mrf.mxu0  ;;  %v2612_v24 = vadd.f32 %v10080_v60, %v9508_v0  ;;  %v5459_v48 = vmul.f32 -1.442695, %v9648_v57  ;;  %v10082_v43 = vld [vmem:[#allocation16_spill] sm:$0xff] }
 0x28c   :  { %v6796_v61 = vpop.eup %6795  ;;  %v3884_v40 = vadd.f32 1.0, %v6794_v23  ;;  %v9656_v62 = vpop.f32.mrf.mxu1  ;;  %v9665_v10 = vadd.f32 %v9588_v7, %v2610_v5  ;;  %v2614_v30 = vadd.f32 %v9413_v51, %v9520_v33  ;;  %v6305_v51 = vld [vmem:[%s9966_s3 + $0x248] sm:$0xff]  }
 0x28d   :  { %v6798_v26 = vpop.eup %6797  ;;  %v3885_v21 = vadd.f32 1.0, %v6796_v61  ;;  %v9675_v52 = vadd.f32 %v9558_v31, %v2612_v24  ;;  %v2618_v61 = vadd.f32 %v10082_v43, %v9534_v47  ;;  %v9686_v24 = vpop.f32.mrf.mxu0 }
 0x28e   :  { %v6800_v32 = vpop.eup %6799  ;;  %6819 = vrcp.f32 %v3884_v40  ;;  %v9669_v23 = vpop.f32.mrf.mxu1  ;;  %5769 = vmatpush3.bf16.msra.mxu0 %v6302_v14  ;;  %v4085_v14 = vmul.f32 %v6792_v11, %v9422_v8  ;;  %v10083_v40 = vld [vmem:[#allocation8_spill] sm:$0xff]  ;;  %v5460_v47 = vmul.f32 -1.442695, %v9665_v10 }
 0x28f   :  { %v6802_v39 = vpop.eup %6801  ;;  %6821 = vrcp.f32 %v3885_v21  ;;  %v3894_v0 = vadd.f32 1.0, %v6800_v32  ;;  %10081 = vst [vmem:[#allocation10_spill] sm:$0xff] %v9675_v52  ;;  %5770 = vmatprep.subr.bf16.mxu0 %v6303_v29  ;;  %v4094_v4 = vmul.f32 %v6798_v26, %v10083_v40  ;;  %v5469_v29 = vmul.f32 -1.442695, %v9675_v52 }
 0x290   :  { %v6804_v33 = vpop.eup %6803  ;;  %v3895_v5 = vadd.f32 1.0, %v6802_v39  ;;  %6823 = vpow2.f32 %v5450_v59  ;;  %v9684_v21 = vpop.f32.mrf.mxu1  ;;  %v9691_v32 = vadd.f32 %v9588_v7, %v2614_v30  ;;  %v9694_v11 = vadd.f32 %v9558_v31, %v2618_v61  ;;  %v6306_v39 = vld [vmem:[%s9966_s3 + $0x208] sm:$0xff]  }
 0x291   :  { %6825 = vrcp.f32 %v3894_v0  ;;  %v2620_v59 = vadd.f32 %v9449_v28, %v9550_v13  ;;  %v4095_v30 = vmul.f32 %v6804_v33, %v9442_v27  ;;  %v2622_v61 = vadd.f32 %v9462_v54, %v9563_v20  ;;  %v6307_v28 = vld [vmem:[%s9966_s3 + $0x240] sm:$0xff]   ;;  %v9715_v54 = vpop.f32.mrf.mxu0 }
 0x292   :  { %v6806_v60 = vpop.eup %6805  ;;  %10084 = vst [vmem:[#allocation17_spill] sm:$0xff] %v9691_v32  ;;  %6827 = vrcp.f32 %v3895_v5  ;;  %v9698_v26 = vpop.f32.mrf.mxu1  ;;  %5771 = vmatpush3.bf16.msra.mxu0 %v6304_v53  ;;  %v5470_v40 = vmul.f32 -1.442695, %v9691_v32  ;;  %v3466_v53 = vrot.slane %v9644_v34, 4  ;;  %v4217_v5 = vadd.f32 %v4216_v45, %v4084_v58 }
 0x293   :  { %v6808_v43 = vpop.eup %6807  ;;  %v3056_v8 = vadd.f32 1.0, %v6806_v60  ;;  %6829 = vpow2.f32 %v5459_v48  ;;  %5772 = vmatprep.subr.bf16.mxu0 %v6305_v51  ;;  %v5479_v60 = vmul.f32 -1.442695, %v9694_v11  ;;  %v4230_v48 = vadd.f32 %v4229_v46, %v4085_v14 }
 0x294   :  { %v6810_v0 = vpop.eup %6809  ;;  %v9712_v52 = vpop.f32.mrf.mxu1  ;;  %v4104_v33 = vmul.f32 %v6808_v43, %v9458_v6  ;;  %v9718_v20 = vadd.f32 %v9588_v7, %v2620_v59  ;;  %v9722_v45 = vadd.f32 %v9558_v31, %v2622_v61  ;;  %v2624_v58 = vadd.f32 %v9483_v37, %v9578_v42  ;;  %v6308_v6 = vld [vmem:[%s9966_s3 + $0x200] sm:$0xff]  }
 0x295   :  { %v6812_v13 = vpop.eup %6811  ;;  %6831 = vrcp.f32 %v3056_v8  ;;  %v4105_v32 = vmul.f32 %v6810_v0, %v9478_v3  ;;  %v4218_v14 = vadd.f32 %v4217_v5, %v4094_v4 }
 0x296   :  { %v6814_v27 = vpop.eup %6813  ;;  %6833 = vpow2.f32 %v5460_v47  ;;  %v9726_v8 = vpop.f32.mrf.mxu1  ;;  %5773 = vmatpush3.bf16.msra.mxu0 %v6306_v39  ;;  %v4231_v47 = vadd.f32 %v4230_v48, %v4095_v30  ;;  %v4114_v43 = vmul.f32 %v6812_v13, %v9481_v22  ;;  %v5480_v0 = vmul.f32 -1.442695, %v9718_v20 }
 0x297   :  { %v6816_v51 = vpop.eup %6815  ;;  %6835 = vpow2.f32 %v5469_v29  ;;  %5774 = vmatprep.subr.bf16.mxu0 %v6307_v28  ;;  %v4115_v3 = vmul.f32 %v6814_v27, %v9486_v63  ;;  %v4219_v42 = vadd.f32 %v4218_v14, %v4104_v33  ;;  %v9735_v39 = vpop.f32.mrf.mxu0  ;;  %v5489_v4 = vmul.f32 -1.442695, %v9722_v45 }
 0x298   :  { %v6818_v46 = vpop.eup %6817  ;;  %6837 = vpow2.f32 %v5470_v40  ;;  %v3057_v29 = vadd.f32 1.0, %v6816_v51  ;;  %v9733_v37 = vpop.f32.mrf.mxu1  ;;  %v4232_v61 = vadd.f32 %v4231_v47, %v4105_v32  ;;  %v9740_v22 = vadd.f32 %v9588_v7, %v2624_v58  ;;  %v10085_v58 = vld [vmem:[#allocation20_spill] sm:$0xff] }
 0x299   :  { %v3066_v59 = vadd.f32 1.0, %v6818_v46  ;;  %6839 = vpow2.f32 %v5479_v60  ;;  %v3455_v40 = vrot.slane %v9642_v19, 2  ;;  %v9746_v28 = vadd.f32 %v3466_v53, %v9644_v34  ;;  %v9752_v51 = vpop.f32.mrf.mxu0 }
 0x29a   :  { %v9742_v30 = vpop.f32.mrf.mxu1  ;;  %5775 = vmatpush3.bf16.msra.mxu0 %v6308_v6  ;;  %v4220_v5 = vadd.f32 %v4219_v42, %v4114_v43  ;;  %v4233_v60 = vadd.f32 %v4232_v61, %v4115_v3  ;;  %v2628_v6 = vadd.f32 %v10085_v58, %v9590_v17  ;;  %v2630_v34 = vadd.f32 %v9528_v36, %v9603_v44 }
 0x29b   :  { %6841 = vrcp.f32 %v3066_v59  ;;  %v6820_v63 = vpop.eup %6819  ;;  %v2632_v14 = vadd.f32 %v9554_v50, %v9613_v38  ;;  %v9764_v43 = vadd.f32 %v3455_v40, %v9642_v19  ;;  %v2634_v36 = vadd.f32 %v9583_v55, %v9628_v12  ;;  %v10086_v59 = vld [vmem:[#allocation7_spill] sm:$0xff] }
 0x29c   :  { %v6822_v13 = vpop.eup %6821  ;;  %v4124_v32 = vmul.f32 %v6820_v63, %v9518_v1  ;;  %6843 = vrcp.f32 %v3057_v29  ;;  %v9749_v27 = vpop.f32.mrf.mxu1  ;;  %v5490_v1 = vmul.f32 -1.442695, %v9740_v22  ;;  %v2638_v50 = vadd.f32 %v9607_v25, %v9637_v49 }
 0x29d   :  { %v6824_v48 = vpop.eup %6823  ;;  %v4125_v33 = vmul.f32 %v6822_v13, %v9524_v56  ;;  %6845 = vpow2.f32 %v5480_v0  ;;  %v9780_v55 = vadd.f32 %v9588_v7, %v2630_v34  ;;  %v3468_v63 = vrot.slane %v9746_v28, 2 }
 0x29e   :  { %v6826_v53 = vpop.eup %6825  ;;  %v3067_v46 = vadd.f32 1.0, %v6824_v48  ;;  %6847 = vpow2.f32 %v5489_v4  ;;  %v9761_v47 = vpop.f32.mrf.mxu1  ;;  %v4221_v3 = vadd.f32 %v4220_v5, %v4124_v32  ;;  %v9784_v25 = vadd.f32 %v9558_v31, %v2632_v14 }
 0x29f   :  { %v6828_v56 = vpop.eup %6827  ;;  %v4134_v17 = vmul.f32 %v6826_v53, %v9541_v15  ;;  %v4234_v29 = vadd.f32 %v4233_v60, %v4125_v33  ;;  %v9774_v4 = vpop.f32.mrf.mxu0  ;;  %v9777_v15 = vadd.f32 %v9558_v31, %v2628_v6  ;;  %v9789_v32 = vadd.f32 %v9588_v7, %v2634_v36 }
 0x2a0   :  { %v6830_v44 = vpop.eup %6829  ;;  %v4135_v42 = vmul.f32 %v6828_v56, %v10086_v59  ;;  %6849 = vrcp.f32 %v3067_v46  ;;  %v9772_v38 = vpop.f32.mrf.mxu1  ;;  %v9792_v6 = vadd.f32 %v9558_v31, %v2638_v50  ;;  %v2640_v34 = vadd.f32 %v9631_v9, %v9656_v62 }
 0x2a1   :  { %v4222_v61 = vadd.f32 %v4221_v3, %v4134_v17  ;;  %v3076_v19 = vadd.f32 1.0, %v6830_v44  ;;  %6851 = vpow2.f32 %v5490_v1  ;;  %v2657_v1 = vpop.f32.mrf.mxu0  ;;  %v5499_v14 = vmul.f32 -1.442695, %v9777_v15 }
 0x2a2   :  { %v6832_v0 = vpop.eup %6831  ;;  %v4235_v40 = vadd.f32 %v4234_v29, %v4135_v42  ;;  %v9786_v49 = vpop.f32.mrf.mxu1  ;;  %v5500_v56 = vmul.f32 -1.442695, %v9780_v55  ;;  %v5509_v44 = vmul.f32 -1.442695, %v9784_v25  ;;  %v2642_v9 = vadd.f32 %v9659_v18, %v9669_v23 }
 0x2a3   :  { %v6834_v12 = vpop.eup %6833  ;;  %v4223_v5 = vrot.slane %v4222_v61, 4  ;;  %6853 = vrcp.f32 %v3076_v19  ;;  %v3296_v59 = vmul.f32 %v6832_v0, %v9570_v35  ;;  %v2644_v62 = vadd.f32 %v9686_v24, %v9684_v21 }
 0x2a4   :  { %v6836_v13 = vpop.eup %6835  ;;  %v3077_v60 = vadd.f32 1.0, %v6834_v12  ;;  %v4236_v33 = vrot.slane %v4235_v40, 4  ;;  %v9798_v3 = vpop.f32.mrf.mxu1  ;;  %v3457_v12 = vrot.slane %v9764_v43, 1  ;;  %v5510_v35 = vmul.f32 -1.442695, %v9789_v32 }
 0x2a5   :  { %v6838_v48 = vpop.eup %6837  ;;  %v3086_v58 = vadd.f32 1.0, %v6836_v13  ;;  %v4224_v17 = vadd.f32 %v4223_v5, %v4222_v61  ;;  %v9808_v61 = vadd.f32 %v9588_v7, %v2640_v34  ;;  %v2659_v13 = vpop.f32.mrf.mxu0  ;;  %v5519_v21 = vmul.f32 -1.442695, %v9792_v6 }
 0x2a6   :  { %v6840_v53 = vpop.eup %6839  ;;  %6855 = vrcp.f32 %v3077_v60  ;;  %v3087_v46 = vadd.f32 1.0, %v6838_v48  ;;  %v4237_v42 = vadd.f32 %v4236_v33, %v4235_v40  ;;  %v9812_v0 = vpop.f32.mrf.mxu1  ;;  %v9819_v40 = vadd.f32 %v9588_v7, %v2644_v62 }
 0x2a7   :  { %6857 = vrcp.f32 %v3086_v58  ;;  %v3096_v36 = vadd.f32 1.0, %v6840_v53  ;;  %v4225_v18 = vrot.slane %v4224_v17, 2  ;;  %v2648_v60 = vadd.f32 %v9715_v54, %v9698_v26 }
 0x2a8   :  { %v6842_v29 = vpop.eup %6841  ;;  %6859 = vrcp.f32 %v3087_v46  ;;  %v9824_v48 = vadd.f32 %v3468_v63, %v9746_v28  ;;  %v4238_v33 = vrot.slane %v4237_v42, 2  ;;  %v5520_v58 = vmul.f32 -1.442695, %v9808_v61 }
 0x2a9   :  { %v3306_v50 = vmul.f32 %v6842_v29, %v9611_v2  ;;  %6861 = vrcp.f32 %v3096_v36  ;;  %v6844_v19 = vpop.eup %6843  ;;  %v9816_v2 = vadd.f32 %v9558_v31, %v2642_v9  ;;  %v9830_v36 = vpop.f32.mrf.mxu1  ;;  %v4226_v29 = vadd.f32 %v4225_v18, %v4224_v17 }
 0x2aa   :  { %v6846_v5 = vpop.eup %6845  ;;  %6863 = vpow2.f32 %v5499_v14  ;;  %v3297_v53 = vmul.f32 %v6844_v19, %v9599_v41  ;;  %v2661_v14 = vpop.f32.mrf.mxu0  ;;  %v2650_v28 = vadd.f32 %v9735_v39, %v9712_v52  ;;  %v5530_v41 = vmul.f32 -1.442695, %v9819_v40 }
 0x2ab   :  { %v3472_v23 = vadd.f32 %v3306_v50, %v3296_v59  ;;  %v6848_v24 = vpop.eup %6847  ;;  %6865 = vpow2.f32 %v5500_v56  ;;  %v3097_v46 = vadd.f32 1.0, %v6846_v5  ;;  %v2652_v56 = vadd.f32 %v9752_v51, %v9726_v8 }
 0x2ac   :  { %6867 = vpow2.f32 %v5509_v44  ;;  %v3106_v54 = vadd.f32 1.0, %v6848_v24  ;;  %v5529_v44 = vmul.f32 -1.442695, %v9816_v2  ;;  %v9838_v59 = vadd.f32 %v9558_v31, %v2648_v60  ;;  %v2663_v52 = vpop.f32.mrf.mxu0 }
 0x2ad   :  { %v6850_v34 = vpop.eup %6849  ;;  %6869 = vpow2.f32 %v5510_v35  ;;  %v9840_v8 = vadd.f32 %v4238_v33, %v4237_v42  ;;  %v9845_v39 = vadd.f32 %v9558_v31, %v2652_v56  ;;  %v2654_v62 = vadd.f32 %v9774_v4, %v9733_v37  ;;  %v10087_v4 = vld [vmem:[#allocation10_spill] sm:$0xff] }
 0x2ae   :  { %v3307_v26 = vmul.f32 %v6850_v34, %v9635_v16  ;;  %v6852_v63 = vpop.eup %6851  ;;  %6871 = vpow2.f32 %v5519_v21  ;;  %v2658_v16 = vadd.f32 %v2657_v1, %v9742_v30  ;;  %v4227_v35 = vrot.slane %v4226_v29, 1 }
 0x2af   :  { %6873 = vpow2.f32 %v5520_v58  ;;  %v3107_v42 = vadd.f32 1.0, %v6852_v63  ;;  %v9852_v5 = vadd.f32 %v9588_v7, %v2650_v28  ;;  %v2660_v18 = vadd.f32 %v2659_v13, %v9749_v27 }
 0x2b0   :  { %v6854_v9 = vpop.eup %6853  ;;  %v3485_v51 = vadd.f32 %v3307_v26, %v3297_v53  ;;  %6875 = vrcp.f32 %v3097_v46  ;;  %v9849_v50 = vpop.f32.mrf.mxu1  ;;  %v2662_v21 = vadd.f32 %v2661_v14, %v9761_v47  ;;  %v5539_v33 = vmul.f32 -1.442695, %v9838_v59 }
 0x2b1   :  { %v3316_v17 = vmul.f32 %v6854_v9, %v9648_v57  ;;  %6877 = vrcp.f32 %v3106_v54  ;;  %v9862_v58 = vadd.f32 %v9558_v31, %v2658_v16  ;;  %v5549_v27 = vmul.f32 -1.442695, %v9845_v39 }
 0x2b2   :  { %v9857_v24 = vpop.f32.mrf.mxu1  ;;  %6879 = vpow2.f32 %v5529_v44  ;;  %v9867_v47 = vadd.f32 %v9588_v7, %v2654_v62  ;;  %v9871_v26 = vadd.f32 %v9558_v31, %v2662_v21  ;;  %v2664_v54 = vadd.f32 %v2663_v52, %v9772_v38 }
 0x2b3   :  { %v6856_v19 = vpop.eup %6855  ;;  %v3473_v1 = vadd.f32 %v3472_v23, %v3316_v17  ;;  %v10088_v23 = vld [vmem:[#allocation17_spill] sm:$0xff]  ;;  %6881 = vpow2.f32 %v5530_v41  ;;  %v5540_v44 = vmul.f32 -1.442695, %v9852_v5  ;;  %v9878_v9 = vadd.f32 %v9588_v7, %v2660_v18 }
 0x2b4   :  { %v6858_v30 = vpop.eup %6857  ;;  %v3317_v57 = vmul.f32 %v6856_v19, %v9665_v10  ;;  %v2667_v10 = vpop.f32.mrf.mxu0  ;;  %v4228_v17 = vadd.f32 %v4227_v35, %v4226_v29  ;;  %6883 = vpow2.f32 %v5539_v33  ;;  %v5550_v38 = vmul.f32 -1.442695, %v9867_v47 }
 0x2b5   :  { %v6860_v37 = vpop.eup %6859  ;;  %v3326_v60 = vmul.f32 %v6858_v30, %v10087_v4  ;;  %v5691_v13 = vpop.f32.mrf.mxu1  ;;  %6885 = vpow2.f32 %v5549_v27  ;;  %v3470_v41 = vrot.slane %v9824_v48, 1  ;;  %v4240_v52 = vrot.slane %v9840_v8, 1 }
 0x2b6   :  { %v6862_v34 = vpop.eup %6861  ;;  %v3486_v53 = vadd.f32 %v3485_v51, %v3317_v57  ;;  %v3327_v46 = vmul.f32 %v6860_v37, %v10088_v23  ;;  %v2669_v30 = vpop.f32.mrf.mxu0  ;;  %6887 = vrcp.f32 %v3107_v42  ;;  %v5569_v57 = vmul.f32 -1.442695, %v9871_v26 }
 0x2b7   :  { %v3474_v14 = vadd.f32 %v3473_v1, %v3326_v60  ;;  %v3336_v56 = vmul.f32 %v6862_v34, %v9694_v11  ;;  %v6864_v28 = vpop.eup %6863  ;;  %v5692_v51 = vpop.f32.mrf.mxu1  ;;  %v5559_v11 = vmul.f32 -1.442695, %v9862_v58  ;;  %v9888_v29 = vadd.f32 %v9588_v7, %v2664_v54 }
 0x2b8   :  { %v9874_v63 = vadd.f32 %v3486_v53, %v3327_v46  ;;  %v6866_v16 = vpop.eup %6865  ;;  %v3458_v35 = vadd.f32 %v3457_v12, %v9764_v43  ;;  %6889 = vpow2.f32 %v5540_v44  ;;  %v5560_v18 = vmul.f32 -1.442695, %v9878_v9  ;;  %v2671_v34 = vpop.f32.mrf.mxu0 }
 0x2b9   :  { %v9880_v62 = vadd.f32 %v3474_v14, %v3336_v56  ;;  %v6868_v19 = vpop.eup %6867  ;;  %v3116_v37 = vadd.f32 1.0, %v6864_v28  ;;  %6891 = vpow2.f32 %v5559_v11  ;;  %v3471_v4 = vadd.f32 %v3470_v41, %v9824_v48 }
 0x2ba   :  { %v6870_v1 = vpop.eup %6869  ;;  %v4241_v60 = vadd.f32 %v4240_v52, %v9840_v8  ;;  %v3117_v33 = vadd.f32 1.0, %v6866_v16  ;;  %6893 = vpow2.f32 %v5550_v38  ;;  %v4275_v53 = vsel %vm4268_vm1, %v3458_v35, %v4228_v17  ;;  %v2673_v16 = vpop.f32.mrf.mxu0 }
 0x2bb   :  { %v6872_v21 = vpop.eup %6871  ;;  %6895 = vpow2.f32 %v5569_v57  ;;  %v5570_v43 = vmul.f32 -1.442695, %v9888_v29  ;;  %v2668_v46 = vadd.f32 %v2667_v10, %v9786_v49  ;;  %v3126_v48 = vadd.f32 1.0, %v6868_v19 }
 0x2bc   :  { %v6874_v42 = vpop.eup %6873  ;;  %v4276_v12 = vsel %vm4268_vm1, %v3471_v4, %v4241_v60  ;;  %6897 = vpow2.f32 %v5560_v18  ;;  %v2670_v13 = vadd.f32 %v2669_v30, %v9798_v3  ;;  %v4285_v14 = vpack.c.bf16 %v4275_v53, %v4275_v53 }
 0x2bd   :  { %v9897_v23 = vpop.eup %6875  ;;  %v4286_v8 = vpack.c.bf16 %v4276_v12, %v4276_v12  ;;  %6899 = vrcp.f32 %v3116_v37  ;;  %v9906_v56 = vadd.f32 %v9558_v31, %v2668_v46  ;;  %v2672_v54 = vadd.f32 %v2671_v34, %v9812_v0 }
 0x2be   :  { %v9902_v27 = vpop.eup %6877  ;;  %6901 = vrcp.f32 %v3117_v33  ;;  %v3127_v44 = vadd.f32 1.0, %v6870_v1  ;;  %v3826_v51 = vadd.f32 1.0, %v6872_v21  ;;  %v9910_v49 = vadd.f32 %v9588_v7, %v2670_v13 }
 0x2bf   :  { %v6880_v28 = vpop.eup %6879  ;;  %5088 = vmatprep.mubr.bf16.mxu1 %v4286_v8  ;;  %6903 = vpow2.f32 %v5570_v43  ;;  %v5579_v3 = vmul.f32 -1.442695, %v9906_v56  ;;  %v9914_v10 = vadd.f32 %v9558_v31, %v2672_v54  ;;  %v2674_v17 = vadd.f32 %v2673_v16, %v9830_v36 }
 0x2c0   :  { %5089 = vmatmul.mubr.bf16.vlgmr.msra.gmra.mxu1 %v4285_v14  ;;  %6905 = vrcp.f32 %v3126_v48  ;;  %v3827_v0 = vadd.f32 1.0, %v6874_v42  ;;  %v6882_v11 = vpop.eup %6881  ;;  %v3836_v19 = vadd.f32 1.0, %v6880_v28  ;;  %v5580_v38 = vmul.f32 -1.442695, %v9910_v49 }
 0x2c1   :  { %6907 = vpow2.f32 %v5579_v3  ;;  %v6884_v30 = vpop.eup %6883  ;;  %v5589_v52 = vmul.f32 -1.442695, %v9914_v10  ;;  %v9920_v1 = vadd.f32 %v9588_v7, %v2674_v17  ;;  %v3837_v57 = vadd.f32 1.0, %v6882_v11 }
 0x2c2   :  { %6909 = vrcp.f32 %v3127_v44  ;;  %v6886_v41 = vpop.eup %6885  ;;  %v9924_v36 = vadd.f32 %v9857_v24, %v9849_v50  ;;  %v3846_v18 = vadd.f32 1.0, %v6884_v30  ;;  %v3337_v17 = vmul.f32 %v9897_v23, %v9718_v20 }
 0x2c3   :  { %6911 = vrcp.f32 %v3826_v51  ;;  %v6888_v31 = vpop.eup %6887  ;;  %v3856_v37 = vadd.f32 1.0, %v6886_v41  ;;  %v5590_v60 = vmul.f32 -1.442695, %v9920_v1 }
 0x2c4   :  { %6913 = vrcp.f32 %v3827_v0  ;;  %v3347_v41 = vmul.f32 %v6888_v31, %v9740_v22 }
 0x2c5   :  { %v6890_v35 = vpop.eup %6889  ;;  %6915 = vrcp.f32 %v3836_v19 }
 0x2c6   :  { %v6892_v21 = vpop.eup %6891  ;;  %6917 = vpow2.f32 %v5580_v38  ;;  %v3847_v7 = vadd.f32 1.0, %v6890_v35  ;;  %v3346_v38 = vmul.f32 %v9902_v27, %v9722_v45 }
 0x2c7   :  { %v6894_v4 = vpop.eup %6893  ;;  %6919 = vpow2.f32 %v5589_v52  ;;  %v3866_v34 = vadd.f32 1.0, %v6892_v21 }
 0x2c8   :  { %v6896_v42 = vpop.eup %6895  ;;  %6921 = vrcp.f32 %v3837_v57  ;;  %v3857_v50 = vadd.f32 1.0, %v6894_v4  ;;  %v3476_v22 = vadd.f32 %v9880_v62, %v3346_v38 }
 0x2c9   :  { %v6898_v33 = vpop.eup %6897  ;;  %6923 = vrcp.f32 %v3846_v18  ;;  %v3876_v43 = vadd.f32 1.0, %v6896_v42  ;;  %v3488_v18 = vadd.f32 %v9874_v63, %v3337_v17 }
 0x2ca   :  { %v6900_v53 = vpop.eup %6899  ;;  %6925 = vrcp.f32 %v3856_v37  ;;  %v3867_v46 = vadd.f32 1.0, %v6898_v33 }
 0x2cb   :  { %v6902_v24 = vpop.eup %6901  ;;  %6927 = vpow2.f32 %v5590_v60  ;;  %v3356_v21 = vmul.f32 %v6900_v53, %v9777_v15  ;;  %v3489_v31 = vadd.f32 %v3488_v18, %v3347_v41 }
 0x2cc   :  { %v6904_v12 = vpop.eup %6903  ;;  %6929 = vrcp.f32 %v3847_v7  ;;  %v3357_v20 = vmul.f32 %v6902_v24, %v9780_v55 }
 0x2cd   :  { %v6906_v48 = vpop.eup %6905  ;;  %6931 = vrcp.f32 %v3866_v34  ;;  %v3877_v14 = vadd.f32 1.0, %v6904_v12 }
 0x2ce   :  { %v6908_v8 = vpop.eup %6907  ;;  %6933 = vrcp.f32 %v3857_v50  ;;  %v3490_v33 = vadd.f32 %v3489_v31, %v3357_v20 }
 0x2cf   :  { %v6910_v13 = vpop.eup %6909  ;;  %6935 = vrcp.f32 %v3876_v43  ;;  %v3886_v54 = vadd.f32 1.0, %v6908_v8 }
 0x2d0   :  { %v6912_v28 = vpop.eup %6911  ;;  %6937 = vrcp.f32 %v3867_v46  ;;  %v3367_v60 = vmul.f32 %v6910_v13, %v9789_v32 }
 0x2d1   :  { %v6914_v44 = vpop.eup %6913  ;;  %6939 = vrcp.f32 %v3886_v54  ;;  %v4066_v37 = vmul.f32 %v6912_v28, %v9792_v6  ;;  %v3477_v6 = vadd.f32 %v3476_v22, %v3356_v21 }
 0x2d2   :  { %v6916_v51 = vpop.eup %6915  ;;  %6941 = vrcp.f32 %v3877_v14  ;;  %v4067_v34 = vmul.f32 %v6914_v44, %v9808_v61  ;;  %v3491_v24 = vadd.f32 %v3490_v33, %v3367_v60 }
 0x2d3   :  { %v6918_v16 = vpop.eup %6917  ;;  %v4076_v57 = vmul.f32 %v6916_v51, %v9816_v2  ;;  %v3366_v2 = vmul.f32 %v6906_v48, %v9784_v25 }
 0x2d4   :  { %v6920_v3 = vpop.eup %6919  ;;  %v3887_v0 = vadd.f32 1.0, %v6918_v16  ;;  %v3492_v54 = vrot.slane %v3491_v24, 4 }
 0x2d5   :  { %v6922_v11 = vpop.eup %6921  ;;  %v3896_v19 = vadd.f32 1.0, %v6920_v3  ;;  %v4242_v63 = vadd.f32 %v4076_v57, %v4066_v37  ;;  %v3478_v32 = vadd.f32 %v3477_v6, %v3366_v2 }
 0x2d6   :  { %v6924_v30 = vpop.eup %6923  ;;  %6943 = vrcp.f32 %v3887_v0  ;;  %v4077_v15 = vmul.f32 %v6922_v11, %v9819_v40  ;;  %v3493_v0 = vadd.f32 %v3492_v54, %v3491_v24 }
 0x2d7   :  { %v6926_v52 = vpop.eup %6925  ;;  %6945 = vrcp.f32 %v3896_v19  ;;  %v4086_v4 = vmul.f32 %v6924_v30, %v9838_v59  ;;  %v3479_v14 = vrot.slane %v3478_v32, 4 }
 0x2d8   :  { %v6928_v35 = vpop.eup %6927  ;;  %v4096_v55 = vmul.f32 %v6926_v52, %v9845_v39  ;;  %v4255_v43 = vadd.f32 %v4077_v15, %v4067_v34  ;;  %v3494_v52 = vrot.slane %v3493_v0, 2 }
 0x2d9   :  { %v6930_v23 = vpop.eup %6929  ;;  %v3897_v45 = vadd.f32 1.0, %v6928_v35  ;;  %v4243_v53 = vadd.f32 %v4242_v63, %v4086_v4  ;;  %v3480_v17 = vadd.f32 %v3479_v14, %v3478_v32 }
 0x2da   :  { %v6932_v27 = vpop.eup %6931  ;;  %v4087_v62 = vmul.f32 %v6930_v23, %v9852_v5  ;;  %v3495_v20 = vadd.f32 %v3494_v52, %v3493_v0 }
 0x2db   :  { %v6934_v42 = vpop.eup %6933  ;;  %6947 = vrcp.f32 %v3897_v45  ;;  %v4106_v25 = vmul.f32 %v6932_v27, %v9862_v58  ;;  %v4244_v12 = vadd.f32 %v4243_v53, %v4096_v55  ;;  %v3481_v41 = vrot.slane %v3480_v17, 2 }
 0x2dc   :  { %v6936_v7 = vpop.eup %6935  ;;  %v4097_v40 = vmul.f32 %v6934_v42, %v9867_v47  ;;  %v4256_v48 = vadd.f32 %v4255_v43, %v4087_v62  ;;  %v3496_v27 = vrot.slane %v3495_v20, 1 }
 0x2dd   :  { %v6938_v59 = vpop.eup %6937  ;;  %v4116_v39 = vmul.f32 %v6936_v7, %v9871_v26  ;;  %v4245_v8 = vadd.f32 %v4244_v12, %v4106_v25  ;;  %v3482_v21 = vadd.f32 %v3481_v41, %v3480_v17 }
 0x2de   :  { %v6940_v50 = vpop.eup %6939  ;;  %v4107_v13 = vmul.f32 %v6938_v59, %v9878_v9  ;;  %v4257_v58 = vadd.f32 %v4256_v48, %v4097_v40  ;;  %v3497_v15 = vadd.f32 %v3496_v27, %v3495_v20 }
 0x2df   :  { %v6942_v46 = vpop.eup %6941  ;;  %v4126_v61 = vmul.f32 %v6940_v50, %v9906_v56  ;;  %v4246_v28 = vadd.f32 %v4245_v8, %v4116_v39  ;;  %v3483_v4 = vrot.slane %v3482_v21, 1 }
 0x2e0   :  { %v4117_v44 = vmul.f32 %v6942_v46, %v9888_v29  ;;  %v4258_v16 = vadd.f32 %v4257_v58, %v4107_v13 }
 0x2e1   :  { %v4247_v3 = vadd.f32 %v4246_v28, %v4126_v61  ;;  %v3484_v60 = vadd.f32 %v3483_v4, %v3482_v21 }
 0x2e2   :  { %v4259_v11 = vadd.f32 %v4258_v16, %v4117_v44 }
 0x2e3   :  { %v6944_v5 = vpop.eup %6943 }
 0x2e4   :  { %v6946_v51 = vpop.eup %6945  ;;  %v4127_v47 = vmul.f32 %v6944_v5, %v9910_v49 }
 0x2e5   :  { %v4136_v26 = vmul.f32 %v6946_v51, %v9914_v10 }
 0x2e6   :  { %v4260_v56 = vadd.f32 %v4259_v11, %v4127_v47 }
 0x2e7   :  { %v4248_v9 = vadd.f32 %v4247_v3, %v4136_v26 }
 0x2e8   :  { %v6948_v19 = vpop.eup %6947 }
 0x2e9   :  { %v4249_v30 = vrot.slane %v4248_v9, 4  ;;  %v4137_v38 = vmul.f32 %v6948_v19, %v9920_v1  ;;  %v5591_v1 = vld [vmem:[%s9967_s4] ss:$0 sm:$0xff]  ;;  %s6974_s4 = smov [#allocation2]  }
 0x2ea   :  { %v4971_v63 = vadd.f32 %v9924_v36, %v5591_v1  ;;  %s5143_s20 = sshll.u32 %s6974_s4, 4  ;;  %s5144_s20 = int_to_ptr.vmem [resolvable:$true] %s5143_s20 }
 0x2eb   :  { %v4250_v57 = vadd.f32 %v4249_v30, %v4248_v9  ;;  %v4261_v29 = vadd.f32 %v4260_v56, %v4137_v38  ;;  %s6951_s2 = scalar_lea.vmem %s5144_s20, 32  ;;  %p6956_p1 = scmp.lt.s32.totalorder %s5144_s20, %s5144_s20 }
 0x2ec   :  { %p6952_p0 = scmp.ne.s32.totalorder %s5144_s20, %s6951_s2  ;;  %p6957_p2 = scmp.lt.s32.totalorder %s6951_s2, %s6951_s2 }
 0x2ed   :  { %v4251_v35 = vrot.slane %v4250_v57, 2  ;;  %v4262_v18 = vrot.slane %v4261_v29, 4 }
 0x2ee   :  { %p6958_p3 = por %p6957_p2, %p6956_p1 }
 0x2ef   :  { %v4252_v49 = vadd.f32 %v4251_v35, %v4250_v57  ;;  %v4263_v23 = vadd.f32 %v4262_v18, %v4261_v29 }
 0x2f0   :  { %p6959_p4 = pnand %p6958_p3, %p6952_p0 }
 0x2f1   :  { %v4253_v10 = vrot.slane %v4252_v49, 1  ;;  %v4264_v37 = vrot.slane %v4263_v23, 2 }
 0x2f3   :  { %v4265_v45 = vadd.f32 %v4264_v37, %v4263_v23  ;;  %v4254_v22 = vadd.f32 %v4253_v10, %v4252_v49 }
 0x2f5   :  { %v4266_v2 = vrot.slane %v4265_v45, 1  ;;  %v4277_v6 = vsel %vm4268_vm1, %v3484_v60, %v4254_v22 }
 0x2f6   :  { %v4287_v25 = vpack.c.bf16 %v4277_v6, %v4277_v6 }
 0x2f7   :  { %v4267_v55 = vadd.f32 %v4266_v2, %v4265_v45 }
 0x2f9   :  { %v5710_v31 = vpop.f32.mrf.mxu1  ;;  %v4278_v59 = vsel %vm4268_vm1, %v3497_v15, %v4267_v55 }
 0x2fa   :  { %v4288_v53 = vpack.c.bf16 %v4278_v59, %v4278_v59 }
 0x2fb   :  { %v5711_v42 = vpop.f32.mrf.mxu1 }
 0x2fc   :  { %v5712_v7 = vadd.f32 %v5711_v42, %v5710_v31  ;;  %5128 = vmatprep.mubr.bf16.mxu0 %v4288_v53 }
 0x2fd   :  { %v5713_v33 = vpop.f32.mrf.mxu1  ;;  %5129 = vmatmul.mubr.bf16.vlgmr.msra.gmra.mxu0 %v4287_v25 }
 0x2fe   :  { %v5011_v34 = vadd.f32 %v5712_v7, %v4971_v63 }
 0x2ff   :  { %v5714_v62 = vpop.f32.mrf.mxu1 }
 0x33d   :  { %v5732_v50 = vpop.f32.mrf.mxu0 }
 0x33f   :  { %v5733_v32 = vpop.f32.mrf.mxu0 }
 0x340   :  { %v5734_v24 = vadd.f32 %v5733_v32, %v5732_v50 }
 0x341   :  { %v5735_v43 = vpop.f32.mrf.mxu0 }
 0x342   :  { %v5051_v12 = vadd.f32 %v5734_v24, %v5011_v34 }
 0x343   :  { %v5736_v36 = vpop.f32.mrf.mxu0 }
 0x380   :  { %v5754_v40 = vpop.f32.mrf.mxu1 }
 0x382   :  { %v5755_v39 = vpop.f32.mrf.mxu1 }
 0x383   :  { %v5756_v8 = vadd.f32 %v5755_v39, %v5754_v40 }
 0x384   :  { %v5757_v46 = vpop.f32.mrf.mxu1 }
 0x385   :  { %v5091_v14 = vadd.f32 %v5756_v8, %v5051_v12 }
 0x386   :  { %v5758_v48 = vpop.f32.mrf.mxu1 }
 0x3bd   :  { %v5776_v13 = vpop.f32.mrf.mxu0 }
 0x3bf   :  { %v5777_v61 = vpop.f32.mrf.mxu0 }
 0x3c0   :  { %v5778_v5 = vadd.f32 %v5777_v61, %v5776_v13 }
 0x3c1   :  { %v5779_v54 = vpop.f32.mrf.mxu0 }
 0x3c2   :  { %v5131_v58 = vadd.f32 %v5778_v5, %v5091_v14 }
 0x3c3   :  { %v5780_v28 = vpop.f32.mrf.mxu0 }
 0x3c4   :  { %5136 = vst [vmem:[#allocation2] sm:$0x3] %v5131_v58 }
 0x3c5   :  { %6962 = shalt.err (!%p6959_p4)
}
 0x3c6   :  { %5146 = dma.vmem_to_hbm [thread:$0]  %s5144_s20, 32, %s9968_s5, [#allocation3]  }
 0x3c7   :  { %6971 = dma.done.wait [#allocation3], 32  }
 0x3c8   :  { %6972 = vsyncadd [#allocation3], 4294967264 }
 0x3c9   :  { %5150 = vsyncpa [#allocation3], 1 }

</bundles_post_ra>
